<compile_context>
chip_gen: v5e
topology: v5e:2x2
jax: 0.10.0
libtpu: 0.0.40
codegen_flags: <defaults>
</compile_context>

<pallas_src>
import functools
import math

import jax
import jax.numpy as jnp
from jax.experimental import pallas as pl
from jax.experimental.pallas import tpu as pltpu

F32 = jnp.float32

# ---- model hyperparameters (small, consistent with the module's forward) ----
VOCAB = 100
HIDDEN = 64          # stands in for model.config.hidden_size
N_HEADS = 2
HEAD_DIM = HIDDEN // N_HEADS
FFN = 128
N_LAYERS = 2
MAX_POS = 32
CLS_HIDDEN = 512     # classifier hidden size from the module
NUM_LABELS = 2
LOGIT_PAD = 128      # lane-dense logits slab; sliced to NUM_LABELS outside
LN_EPS = 1e-5

N_HBM_IN = 3         # classifier w1, w2, w3 (padded) go in via memory_space=ANY
N_SCRATCH = 4        # 3 VMEM landing buffers + 1 DMA semaphore array

_SQRT_HALF = 1.0 / math.sqrt(2.0)


def _erf(x):
    # Abramowitz & Stegun 7.1.26 polynomial (|err| < 1.5e-7): only exp / mul /
    # add / where, all guaranteed to lower on Mosaic.  Matches torch's exact
    # erf-GELU to float32 tolerance.
    a1, a2, a3 = 0.254829592, -0.284496736, 1.421413741
    a4, a5, p = -1.453152027, 1.061405429, 0.3275911
    sgn = jnp.where(x < 0.0, -1.0, 1.0)
    ax = jnp.abs(x)
    t = 1.0 / (1.0 + p * ax)
    poly = ((((a5 * t + a4) * t + a3) * t + a2) * t + a1) * t
    return sgn * (1.0 - poly * jnp.exp(-ax * ax))


def _gelu(x):
    # exact (erf) GELU, matching torch.nn.GELU() default
    return 0.5 * x * (1.0 + _erf(x * _SQRT_HALF))


def _layernorm(x, g, b, eps=LN_EPS):
    mu = jnp.mean(x, axis=-1, keepdims=True)
    var = jnp.mean(jnp.square(x - mu), axis=-1, keepdims=True)
    return (x - mu) * jax.lax.rsqrt(var + eps) * g + b


def _full_spec(shape):
    # whole-array block, single kernel invocation (no grid)
    return pl.BlockSpec(shape, lambda: (0,) * len(shape))


# ------------------------- fused whole-forward kernel ------------------------

def _forward_kernel(*refs, batch, seq):
    # refs = [in_refs..., out_ref, w1_vmem, w2_vmem, w3_vmem, dma_sems]
    w1_s, w2_s, w3_s, sem = refs[-N_SCRATCH:]
    out_ref = refs[-(N_SCRATCH + 1)]
    in_refs = refs[:-(N_SCRATCH + 1)]
    w1_hbm, w2_hbm, w3_hbm = in_refs[-N_HBM_IN:]
    it = iter(in_refs[:-N_HBM_IN])

    # Kick off the classifier-weight DMAs (~1.4 MB) immediately so they stream
    # in behind the encoder compute instead of serializing in the prologue.
    cp1 = pltpu.make_async_copy(w1_hbm, w1_s, sem.at[0]); cp1.start()
    cp2 = pltpu.make_async_copy(w2_hbm, w2_s, sem.at[1]); cp2.start()
    cp3 = pltpu.make_async_copy(w3_hbm, w3_s, sem.at[2]); cp3.start()

    emb_ref = next(it)          # (B*S, H) summed embeddings
    mask_ref = next(it)         # (B*S, B*S) block-diagonal additive mask
    emb_g = next(it)[...]
    emb_b = next(it)[...]

    h = _layernorm(emb_ref[...], emb_g, emb_b)          # (B*S, H), stays in VMEM
    mask_bd = mask_ref[...]                             # (B*S, B*S)

    for _ in range(N_LAYERS):
        wq = next(it); bq = next(it)                    # (N_HEADS, H, Dh) / (N_HEADS, 1, Dh)
        wk = next(it); bk = next(it)
        wv = next(it); bv = next(it)
        wo = next(it)                                   # (N_HEADS, Dh, H)
        bo = next(it)[...]                              # (1, H)
        ln1_g = next(it)[...]; ln1_b = next(it)[...]
        wi = next(it)[...];    bi = next(it)[...]
        wf = next(it)[...];    bf = next(it)[...]
        ln2_g = next(it)[...]; ln2_b = next(it)[...]

        attn = bo                                       # broadcasts to (B*S, H)
        for hh in range(N_HEADS):
            # Per-head weights are pre-sliced -> q/k/v start at lane 0, no
            # lane shuffles.  Attention scale already folded into wq/bq.
            q_h = jnp.dot(h, wq[hh], preferred_element_type=F32) + bq[hh]
            k_h = jnp.dot(h, wk[hh], preferred_element_type=F32) + bk[hh]
            v_h = jnp.dot(h, wv[hh], preferred_element_type=F32) + bv[hh]
            # Block-diagonal attention over all B*S rows in ONE matmul/head.
            s = jax.lax.dot_general(q_h, k_h, (((1,), (1,)), ((), ())),
                                    preferred_element_type=F32)
            s = s + mask_bd
            s = s - jnp.max(s, axis=-1, keepdims=True)
            p = jnp.exp(s)
            p = p / jnp.sum(p, axis=-1, keepdims=True)  # exact divide (parity)
            ctx = jnp.dot(p, v_h, preferred_element_type=F32)      # (B*S, Dh)
            attn = attn + jnp.dot(ctx, wo[hh], preferred_element_type=F32)

        # post-LN residual blocks (RoBERTa encoder layout)
        h = _layernorm(h + attn, ln1_g, ln1_b)
        inter = _gelu(jnp.dot(h, wi, preferred_element_type=F32) + bi)
        ffn_out = jnp.dot(inter, wf, preferred_element_type=F32) + bf
        h = _layernorm(h + ffn_out, ln2_g, ln2_b)

    # cls_output = last_hidden_state[:, 0, :]  -> rows b*seq, picked with one
    # tiny selection matmul (MXU slack) instead of row slices + concat.
    rows = batch * seq
    r_i = jax.lax.broadcasted_iota(jnp.int32, (batch, rows), 0)
    c_i = jax.lax.broadcasted_iota(jnp.int32, (batch, rows), 1)
    sel = (c_i == r_i * seq).astype(F32)
    cls = jnp.dot(sel, h, preferred_element_type=F32)               # (B, H)

    # classifier: Linear -> LN -> GELU -> (Dropout=id) -> Linear -> LN -> GELU
    #             -> (Dropout=id) -> Linear (padded to 128 lanes)
    b1 = next(it)[...]; g1 = next(it)[...]; be1 = next(it)[...]
    b2 = next(it)[...]; g2 = next(it)[...]; be2 = next(it)[...]
    b3 = next(it)[...]

    cp1.wait()
    z = jnp.dot(cls, w1_s[...], preferred_element_type=F32) + b1
    z = _gelu(_layernorm(z, g1, be1))
    cp2.wait()
    z = jnp.dot(z, w2_s[...], preferred_element_type=F32) + b2
    z = _gelu(_layernorm(z, g2, be2))
    cp3.wait()
    out_ref[...] = jnp.dot(z, w3_s[...], preferred_element_type=F32) + b3


# ------------------- one-time weight packing (hoisted to init) ---------------

def pack_params(params):
    """Pack raw parameters into kernel-ready layout ONCE (not per forward)."""
    scale = 1.0 / math.sqrt(HEAD_DIM)

    def head_cols(w):   # (H, H) -> (N_HEADS, H, Dh)  per-head column blocks
        return jnp.transpose(w.reshape(HIDDEN, N_HEADS, HEAD_DIM), (1, 0, 2))

    def head_bias(b):   # (H,) -> (N_HEADS, 1, Dh)
        return b.reshape(N_HEADS, 1, HEAD_DIM)

    vmem_args = [params["emb_ln_g"].reshape(1, -1),
                 params["emb_ln_b"].reshape(1, -1)]
    for lp in params["layers"]:
        vmem_args += [
            head_cols(lp["wq"]) * scale,      # attention scale folded into Q
            head_bias(lp["bq"]) * scale,
            head_cols(lp["wk"]), head_bias(lp["bk"]),
            head_cols(lp["wv"]), head_bias(lp["bv"]),
            lp["wo"].reshape(N_HEADS, HEAD_DIM, HIDDEN),   # per-head row blocks
            lp["bo"].reshape(1, -1),
            lp["ln1_g"].reshape(1, -1), lp["ln1_b"].reshape(1, -1),
            lp["wi"], lp["bi"].reshape(1, -1),
            lp["wf"], lp["bf"].reshape(1, -1),
            lp["ln2_g"].reshape(1, -1), lp["ln2_b"].reshape(1, -1),
        ]
    c = params["cls"]
    # pad the final projection to a lane-dense 128-wide slab (zeros elsewhere)
    w3p = jnp.zeros((CLS_HIDDEN, LOGIT_PAD), F32).at[:, :NUM_LABELS].set(c["w3"])
    b3p = jnp.zeros((1, LOGIT_PAD), F32).at[:, :NUM_LABELS].set(
        c["b3"].reshape(1, -1))
    vmem_args += [c["b1"].reshape(1, -1),
                  c["g1"].reshape(1, -1), c["be1"].reshape(1, -1),
                  c["b2"].reshape(1, -1),
                  c["g2"].reshape(1, -1), c["be2"].reshape(1, -1),
                  b3p]
    hbm_args = (c["w1"], c["w2"], w3p)   # big classifier weights -> manual DMA

    return {
        "word_emb": params["word_emb"],
        "pos_emb": params["pos_emb"],
        "type_emb": params["type_emb"],
        "vmem_args": tuple(jnp.asarray(a, F32) for a in vmem_args),
        "hbm_args": tuple(jnp.asarray(a, F32) for a in hbm_args),
    }


# ----------------------------- wrapper / assembly ----------------------------

def _forward_impl(packed, input_ids, attention_mask, token_type_ids):
    B, S = input_ids.shape
    BS = B * S

    # embedding gather + sum (data-dependent gather stays in plain JAX)
    emb = (packed["word_emb"][input_ids]
           + packed["pos_emb"][:S][None, :, :]
           + packed["type_emb"][token_type_ids]).reshape(BS, HIDDEN)

    # Block-diagonal additive mask over flattened rows: -1e9 off the per-batch
    # diagonal blocks, with the HF padding mask folded into the key columns.
    batch_id = jnp.arange(BS, dtype=jnp.int32) // S
    same_batch = batch_id[:, None] == batch_id[None, :]
    keep_col = attention_mask.reshape(1, BS).astype(F32) > 0.5
    mask_bd = jnp.where(same_batch & keep_col, 0.0, -1e9).astype(F32)

    vmem_args = packed["vmem_args"]
    hbm_args = packed["hbm_args"]
    args = (emb, mask_bd) + vmem_args + hbm_args
    in_specs = ([_full_spec(emb.shape), _full_spec(mask_bd.shape)]
                + [_full_spec(a.shape) for a in vmem_args]
                + [pl.BlockSpec(memory_space=pl.ANY)] * len(hbm_args))

    kernel = functools.partial(_forward_kernel, batch=B, seq=S)
    out = pl.pallas_call(
        kernel,
        out_shape=jax.ShapeDtypeStruct((B, LOGIT_PAD), F32),
        in_specs=in_specs,
        out_specs=_full_spec((B, LOGIT_PAD)),
        scratch_shapes=[
            pltpu.VMEM((HIDDEN, CLS_HIDDEN), F32),       # w1 landing buffer
            pltpu.VMEM((CLS_HIDDEN, CLS_HIDDEN), F32),   # w2 landing buffer
            pltpu.VMEM((CLS_HIDDEN, LOGIT_PAD), F32),    # w3 landing buffer
            pltpu.SemaphoreType.DMA((3,)),
        ],
        compiler_params=pltpu.CompilerParams(vmem_limit_bytes=32 * 1024 * 1024),
    )(*args)
    return out[:, :NUM_LABELS]


_forward_jit = jax.jit(_forward_impl)


def forward(packed, input_ids, attention_mask=None, token_type_ids=None):
    B, S = input_ids.shape
    if attention_mask is None:
        attention_mask = jnp.ones((B, S), F32)
    if token_type_ids is None:
        token_type_ids = jnp.zeros((B, S), jnp.int32)
    return _forward_jit(packed, input_ids, attention_mask, token_type_ids)


# --------------------------- deterministic init ------------------------------

def init_params(key):
    keys = iter(jax.random.split(key, 128))

    def dense(fan_in, fan_out):
        w = jax.random.normal(next(keys), (fan_in, fan_out), F32) * 0.02
        b = jnp.zeros((fan_out,), F32)
        return w, b

    params = {
        "word_emb": jax.random.normal(next(keys), (VOCAB, HIDDEN), F32) * 0.02,
        "pos_emb": jax.random.normal(next(keys), (MAX_POS, HIDDEN), F32) * 0.02,
        "type_emb": jax.random.normal(next(keys), (2, HIDDEN), F32) * 0.02,
        "emb_ln_g": jnp.ones((HIDDEN,), F32),
        "emb_ln_b": jnp.zeros((HIDDEN,), F32),
        "layers": [],
    }
    for _ in range(N_LAYERS):
        wq, bq = dense(HIDDEN, HIDDEN)
        wk, bk = dense(HIDDEN, HIDDEN)
        wv, bv = dense(HIDDEN, HIDDEN)
        wo, bo = dense(HIDDEN, HIDDEN)
        wi, bi = dense(HIDDEN, FFN)
        wf, bf = dense(FFN, HIDDEN)
        params["layers"].append(dict(
            wq=wq, bq=bq, wk=wk, bk=bk, wv=wv, bv=bv, wo=wo, bo=bo,
            ln1_g=jnp.ones((HIDDEN,), F32), ln1_b=jnp.zeros((HIDDEN,), F32),
            wi=wi, bi=bi, wf=wf, bf=bf,
            ln2_g=jnp.ones((HIDDEN,), F32), ln2_b=jnp.zeros((HIDDEN,), F32),
        ))
    w1, b1 = dense(HIDDEN, CLS_HIDDEN)
    w2, b2 = dense(CLS_HIDDEN, CLS_HIDDEN)
    w3, b3 = dense(CLS_HIDDEN, NUM_LABELS)
    params["cls"] = dict(
        w1=w1, b1=b1,
        g1=jnp.ones((CLS_HIDDEN,), F32), be1=jnp.zeros((CLS_HIDDEN,), F32),
        w2=w2, b2=b2,
        g2=jnp.ones((CLS_HIDDEN,), F32), be2=jnp.zeros((CLS_HIDDEN,), F32),
        w3=w3, b3=b3,
    )
    return params


if __name__ == "__main__":
    key = jax.random.PRNGKey(0)
    kp, ki = jax.random.split(key)
    params = init_params(kp)
    packed = pack_params(params)     # one-time weight packing (hoisted)

    B, S = 2, 8
    input_ids = jax.random.randint(ki, (B, S), 0, VOCAB, dtype=jnp.int32)
    attention_mask = jnp.array([[1, 1, 1, 1, 1, 1, 1, 1],
                                [1, 1, 1, 1, 1, 1, 0, 0]], F32)

    logits = forward(packed, input_ids, attention_mask)
    jax.block_until_ready(logits)
    assert logits.shape == (B, NUM_LABELS)
    print("KERNEL_OK")
</pallas_src>

<mosaic_0001>
module attributes {stable_mosaic.version = 11 : i64} {
  func.func @_forward_kernel(%arg0: memref<16x64xf32, #tpu.memory_space<vmem>>, %arg1: memref<16x16xf32, #tpu.memory_space<vmem>>, %arg2: memref<1x64xf32, #tpu.memory_space<vmem>>, %arg3: memref<1x64xf32, #tpu.memory_space<vmem>>, %arg4: memref<2x64x32xf32, #tpu.memory_space<vmem>>, %arg5: memref<2x1x32xf32, #tpu.memory_space<vmem>>, %arg6: memref<2x64x32xf32, #tpu.memory_space<vmem>>, %arg7: memref<2x1x32xf32, #tpu.memory_space<vmem>>, %arg8: memref<2x64x32xf32, #tpu.memory_space<vmem>>, %arg9: memref<2x1x32xf32, #tpu.memory_space<vmem>>, %arg10: memref<2x32x64xf32, #tpu.memory_space<vmem>>, %arg11: memref<1x64xf32, #tpu.memory_space<vmem>>, %arg12: memref<1x64xf32, #tpu.memory_space<vmem>>, %arg13: memref<1x64xf32, #tpu.memory_space<vmem>>, %arg14: memref<64x128xf32, #tpu.memory_space<vmem>>, %arg15: memref<1x128xf32, #tpu.memory_space<vmem>>, %arg16: memref<128x64xf32, #tpu.memory_space<vmem>>, %arg17: memref<1x64xf32, #tpu.memory_space<vmem>>, %arg18: memref<1x64xf32, #tpu.memory_space<vmem>>, %arg19: memref<1x64xf32, #tpu.memory_space<vmem>>, %arg20: memref<2x64x32xf32, #tpu.memory_space<vmem>>, %arg21: memref<2x1x32xf32, #tpu.memory_space<vmem>>, %arg22: memref<2x64x32xf32, #tpu.memory_space<vmem>>, %arg23: memref<2x1x32xf32, #tpu.memory_space<vmem>>, %arg24: memref<2x64x32xf32, #tpu.memory_space<vmem>>, %arg25: memref<2x1x32xf32, #tpu.memory_space<vmem>>, %arg26: memref<2x32x64xf32, #tpu.memory_space<vmem>>, %arg27: memref<1x64xf32, #tpu.memory_space<vmem>>, %arg28: memref<1x64xf32, #tpu.memory_space<vmem>>, %arg29: memref<1x64xf32, #tpu.memory_space<vmem>>, %arg30: memref<64x128xf32, #tpu.memory_space<vmem>>, %arg31: memref<1x128xf32, #tpu.memory_space<vmem>>, %arg32: memref<128x64xf32, #tpu.memory_space<vmem>>, %arg33: memref<1x64xf32, #tpu.memory_space<vmem>>, %arg34: memref<1x64xf32, #tpu.memory_space<vmem>>, %arg35: memref<1x64xf32, #tpu.memory_space<vmem>>, %arg36: memref<1x512xf32, #tpu.memory_space<vmem>>, %arg37: memref<1x512xf32, #tpu.memory_space<vmem>>, %arg38: memref<1x512xf32, #tpu.memory_space<vmem>>, %arg39: memref<1x512xf32, #tpu.memory_space<vmem>>, %arg40: memref<1x512xf32, #tpu.memory_space<vmem>>, %arg41: memref<1x512xf32, #tpu.memory_space<vmem>>, %arg42: memref<1x128xf32, #tpu.memory_space<vmem>>, %arg43: memref<64x512xf32, #tpu.memory_space<any>>, %arg44: memref<512x512xf32, #tpu.memory_space<any>>, %arg45: memref<512x128xf32, #tpu.memory_space<any>>, %arg46: memref<2x128xf32, #tpu.memory_space<vmem>>, %arg47: memref<64x512xf32, #tpu.memory_space<vmem>>, %arg48: memref<512x512xf32, #tpu.memory_space<vmem>>, %arg49: memref<512x128xf32, #tpu.memory_space<vmem>>, %arg50: memref<3x!tpu.dma_semaphore, #tpu.memory_space<semaphore_mem>>) attributes {dimension_semantics = [], scalar_prefetch = 0 : i64, scratch_operands = 4 : i64, tpu.core_type = #tpu.core_type<tc>} {
    %c0_i32 = arith.constant 0 : i32
    %0 = tpu.memref_slice %arg50[%c0_i32] : memref<3x!tpu.dma_semaphore, #tpu.memory_space<semaphore_mem>> -> memref<1x!tpu.dma_semaphore, #tpu.memory_space<semaphore_mem>>
    %1 = tpu.memref_squeeze %0 : memref<1x!tpu.dma_semaphore, #tpu.memory_space<semaphore_mem>> -> memref<!tpu.dma_semaphore, #tpu.memory_space<semaphore_mem>>
    tpu.enqueue_dma source(%arg43 : memref<64x512xf32, #tpu.memory_space<any>>) target(%arg47 : memref<64x512xf32, #tpu.memory_space<vmem>>) target_semaphore(%1 : memref<!tpu.dma_semaphore, #tpu.memory_space<semaphore_mem>>)
    %c1_i32 = arith.constant 1 : i32
    %2 = tpu.memref_slice %arg50[%c1_i32] : memref<3x!tpu.dma_semaphore, #tpu.memory_space<semaphore_mem>> -> memref<1x!tpu.dma_semaphore, #tpu.memory_space<semaphore_mem>>
    %3 = tpu.memref_squeeze %2 : memref<1x!tpu.dma_semaphore, #tpu.memory_space<semaphore_mem>> -> memref<!tpu.dma_semaphore, #tpu.memory_space<semaphore_mem>>
    tpu.enqueue_dma source(%arg44 : memref<512x512xf32, #tpu.memory_space<any>>) target(%arg48 : memref<512x512xf32, #tpu.memory_space<vmem>>) target_semaphore(%3 : memref<!tpu.dma_semaphore, #tpu.memory_space<semaphore_mem>>)
    %c2_i32 = arith.constant 2 : i32
    %4 = tpu.memref_slice %arg50[%c2_i32] : memref<3x!tpu.dma_semaphore, #tpu.memory_space<semaphore_mem>> -> memref<1x!tpu.dma_semaphore, #tpu.memory_space<semaphore_mem>>
    %5 = tpu.memref_squeeze %4 : memref<1x!tpu.dma_semaphore, #tpu.memory_space<semaphore_mem>> -> memref<!tpu.dma_semaphore, #tpu.memory_space<semaphore_mem>>
    tpu.enqueue_dma source(%arg45 : memref<512x128xf32, #tpu.memory_space<any>>) target(%arg49 : memref<512x128xf32, #tpu.memory_space<vmem>>) target_semaphore(%5 : memref<!tpu.dma_semaphore, #tpu.memory_space<semaphore_mem>>)
    %c0 = arith.constant 0 : index
    %c0_0 = arith.constant 0 : index
    %6 = vector.load %arg2[%c0, %c0_0] : memref<1x64xf32, #tpu.memory_space<vmem>>, vector<1x64xf32>
    %c0_1 = arith.constant 0 : index
    %c0_2 = arith.constant 0 : index
    %7 = vector.load %arg3[%c0_1, %c0_2] : memref<1x64xf32, #tpu.memory_space<vmem>>, vector<1x64xf32>
    %c0_3 = arith.constant 0 : index
    %c0_4 = arith.constant 0 : index
    %8 = vector.load %arg0[%c0_3, %c0_4] : memref<16x64xf32, #tpu.memory_space<vmem>>, vector<16x64xf32>
    %cst = arith.constant dense<0.000000e+00> : vector<16xf32>
    %9 = vector.multi_reduction <add>, %8, %cst [1] : vector<16x64xf32> to vector<16xf32>
    %10 = vector.shape_cast %9 : vector<16xf32> to vector<16x1xf32>
    %cst_5 = arith.constant 6.400000e+01 : f32
    %11 = vector.broadcast %cst_5 : f32 to vector<16x1xf32>
    %12 = arith.divf %10, %11 : vector<16x1xf32>
    %13 = vector.broadcast %12 : vector<16x1xf32> to vector<16x64xf32>
    %14 = arith.subf %8, %13 : vector<16x64xf32>
    %15 = arith.mulf %14, %14 : vector<16x64xf32>
    %cst_6 = arith.constant dense<0.000000e+00> : vector<16xf32>
    %16 = vector.multi_reduction <add>, %15, %cst_6 [1] : vector<16x64xf32> to vector<16xf32>
    %17 = vector.shape_cast %16 : vector<16xf32> to vector<16x1xf32>
    %cst_7 = arith.constant 6.400000e+01 : f32
    %18 = vector.broadcast %cst_7 : f32 to vector<16x1xf32>
    %19 = arith.divf %17, %18 : vector<16x1xf32>
    %20 = vector.broadcast %12 : vector<16x1xf32> to vector<16x64xf32>
    %21 = arith.subf %8, %20 : vector<16x64xf32>
    %cst_8 = arith.constant 9.99999974E-6 : f32
    %22 = vector.broadcast %cst_8 : f32 to vector<16x1xf32>
    %23 = arith.addf %19, %22 : vector<16x1xf32>
    %24 = math.rsqrt %23 : vector<16x1xf32>
    %25 = vector.broadcast %24 : vector<16x1xf32> to vector<16x64xf32>
    %26 = arith.mulf %21, %25 : vector<16x64xf32>
    %27 = vector.broadcast %6 : vector<1x64xf32> to vector<16x64xf32>
    %28 = arith.mulf %26, %27 : vector<16x64xf32>
    %29 = vector.broadcast %7 : vector<1x64xf32> to vector<16x64xf32>
    %30 = arith.addf %28, %29 : vector<16x64xf32>
    %c0_9 = arith.constant 0 : index
    %c0_10 = arith.constant 0 : index
    %31 = vector.load %arg1[%c0_9, %c0_10] : memref<16x16xf32, #tpu.memory_space<vmem>>, vector<16x16xf32>
    %c0_11 = arith.constant 0 : index
    %c0_12 = arith.constant 0 : index
    %32 = vector.load %arg11[%c0_11, %c0_12] : memref<1x64xf32, #tpu.memory_space<vmem>>, vector<1x64xf32>
    %c0_13 = arith.constant 0 : index
    %c0_14 = arith.constant 0 : index
    %33 = vector.load %arg12[%c0_13, %c0_14] : memref<1x64xf32, #tpu.memory_space<vmem>>, vector<1x64xf32>
    %c0_15 = arith.constant 0 : index
    %c0_16 = arith.constant 0 : index
    %34 = vector.load %arg13[%c0_15, %c0_16] : memref<1x64xf32, #tpu.memory_space<vmem>>, vector<1x64xf32>
    %c0_17 = arith.constant 0 : index
    %c0_18 = arith.constant 0 : index
    %35 = vector.load %arg14[%c0_17, %c0_18] : memref<64x128xf32, #tpu.memory_space<vmem>>, vector<64x128xf32>
    %c0_19 = arith.constant 0 : index
    %c0_20 = arith.constant 0 : index
    %36 = vector.load %arg15[%c0_19, %c0_20] : memref<1x128xf32, #tpu.memory_space<vmem>>, vector<1x128xf32>
    %c0_21 = arith.constant 0 : index
    %c0_22 = arith.constant 0 : index
    %37 = vector.load %arg16[%c0_21, %c0_22] : memref<128x64xf32, #tpu.memory_space<vmem>>, vector<128x64xf32>
    %c0_23 = arith.constant 0 : index
    %c0_24 = arith.constant 0 : index
    %38 = vector.load %arg17[%c0_23, %c0_24] : memref<1x64xf32, #tpu.memory_space<vmem>>, vector<1x64xf32>
    %c0_25 = arith.constant 0 : index
    %c0_26 = arith.constant 0 : index
    %39 = vector.load %arg18[%c0_25, %c0_26] : memref<1x64xf32, #tpu.memory_space<vmem>>, vector<1x64xf32>
    %c0_27 = arith.constant 0 : index
    %c0_28 = arith.constant 0 : index
    %40 = vector.load %arg19[%c0_27, %c0_28] : memref<1x64xf32, #tpu.memory_space<vmem>>, vector<1x64xf32>
    %c0_29 = arith.constant 0 : index
    %c0_30 = arith.constant 0 : index
    %c0_31 = arith.constant 0 : index
    %41 = vector.load %arg4[%c0_29, %c0_30, %c0_31] : memref<2x64x32xf32, #tpu.memory_space<vmem>>, vector<1x64x32xf32>
    %42 = vector.shape_cast %41 : vector<1x64x32xf32> to vector<64x32xf32>
    %cst_32 = arith.constant dense<0.000000e+00> : vector<16x32xf32>
    %43 = tpu.matmul %30, %42, %cst_32 {dimension_numbers = #tpu.dot_dimension_numbers<[1], [0], [0], [1], [0, 0, 1, 1], [], []>} : vector<16x64xf32>, vector<64x32xf32>, vector<16x32xf32> -> vector<16x32xf32>
    %c0_33 = arith.constant 0 : index
    %c0_34 = arith.constant 0 : index
    %c0_35 = arith.constant 0 : index
    %44 = vector.load %arg5[%c0_33, %c0_34, %c0_35] : memref<2x1x32xf32, #tpu.memory_space<vmem>>, vector<1x1x32xf32>
    %45 = vector.shape_cast %44 : vector<1x1x32xf32> to vector<1x32xf32>
    %46 = vector.broadcast %45 : vector<1x32xf32> to vector<16x32xf32>
    %47 = arith.addf %43, %46 : vector<16x32xf32>
    %c0_36 = arith.constant 0 : index
    %c0_37 = arith.constant 0 : index
    %c0_38 = arith.constant 0 : index
    %48 = vector.load %arg6[%c0_36, %c0_37, %c0_38] : memref<2x64x32xf32, #tpu.memory_space<vmem>>, vector<1x64x32xf32>
    %49 = vector.shape_cast %48 : vector<1x64x32xf32> to vector<64x32xf32>
    %cst_39 = arith.constant dense<0.000000e+00> : vector<16x32xf32>
    %50 = tpu.matmul %30, %49, %cst_39 {dimension_numbers = #tpu.dot_dimension_numbers<[1], [0], [0], [1], [0, 0, 1, 1], [], []>} : vector<16x64xf32>, vector<64x32xf32>, vector<16x32xf32> -> vector<16x32xf32>
    %c0_40 = arith.constant 0 : index
    %c0_41 = arith.constant 0 : index
    %c0_42 = arith.constant 0 : index
    %51 = vector.load %arg7[%c0_40, %c0_41, %c0_42] : memref<2x1x32xf32, #tpu.memory_space<vmem>>, vector<1x1x32xf32>
    %52 = vector.shape_cast %51 : vector<1x1x32xf32> to vector<1x32xf32>
    %53 = vector.broadcast %52 : vector<1x32xf32> to vector<16x32xf32>
    %54 = arith.addf %50, %53 : vector<16x32xf32>
    %c0_43 = arith.constant 0 : index
    %c0_44 = arith.constant 0 : index
    %c0_45 = arith.constant 0 : index
    %55 = vector.load %arg8[%c0_43, %c0_44, %c0_45] : memref<2x64x32xf32, #tpu.memory_space<vmem>>, vector<1x64x32xf32>
    %56 = vector.shape_cast %55 : vector<1x64x32xf32> to vector<64x32xf32>
    %cst_46 = arith.constant dense<0.000000e+00> : vector<16x32xf32>
    %57 = tpu.matmul %30, %56, %cst_46 {dimension_numbers = #tpu.dot_dimension_numbers<[1], [0], [0], [1], [0, 0, 1, 1], [], []>} : vector<16x64xf32>, vector<64x32xf32>, vector<16x32xf32> -> vector<16x32xf32>
    %c0_47 = arith.constant 0 : index
    %c0_48 = arith.constant 0 : index
    %c0_49 = arith.constant 0 : index
    %58 = vector.load %arg9[%c0_47, %c0_48, %c0_49] : memref<2x1x32xf32, #tpu.memory_space<vmem>>, vector<1x1x32xf32>
    %59 = vector.shape_cast %58 : vector<1x1x32xf32> to vector<1x32xf32>
    %60 = vector.broadcast %59 : vector<1x32xf32> to vector<16x32xf32>
    %61 = arith.addf %57, %60 : vector<16x32xf32>
    %cst_50 = arith.constant dense<0.000000e+00> : vector<16x16xf32>
    %62 = tpu.matmul %47, %54, %cst_50 {dimension_numbers = #tpu.dot_dimension_numbers<[1], [1], [0], [0], [0, 0, 1, 0], [], []>} : vector<16x32xf32>, vector<16x32xf32>, vector<16x16xf32> -> vector<16x16xf32>
    %63 = arith.addf %62, %31 : vector<16x16xf32>
    %cst_51 = arith.constant dense<0xFF800000> : vector<16xf32>
    %64 = vector.multi_reduction <maximumf>, %63, %cst_51 [1] : vector<16x16xf32> to vector<16xf32>
    %65 = vector.shape_cast %64 : vector<16xf32> to vector<16x1xf32>
    %66 = vector.broadcast %65 : vector<16x1xf32> to vector<16x16xf32>
    %67 = arith.subf %63, %66 : vector<16x16xf32>
    %68 = math.exp %67 : vector<16x16xf32>
    %cst_52 = arith.constant dense<0.000000e+00> : vector<16xf32>
    %69 = vector.multi_reduction <add>, %68, %cst_52 [1] : vector<16x16xf32> to vector<16xf32>
    %70 = vector.shape_cast %69 : vector<16xf32> to vector<16x1xf32>
    %71 = vector.broadcast %70 : vector<16x1xf32> to vector<16x16xf32>
    %72 = arith.divf %68, %71 : vector<16x16xf32>
    %cst_53 = arith.constant dense<0.000000e+00> : vector<16x32xf32>
    %73 = tpu.matmul %72, %61, %cst_53 {dimension_numbers = #tpu.dot_dimension_numbers<[1], [0], [0], [1], [0, 0, 1, 1], [], []>} : vector<16x16xf32>, vector<16x32xf32>, vector<16x32xf32> -> vector<16x32xf32>
    %c0_54 = arith.constant 0 : index
    %c0_55 = arith.constant 0 : index
    %c0_56 = arith.constant 0 : index
    %74 = vector.load %arg10[%c0_54, %c0_55, %c0_56] : memref<2x32x64xf32, #tpu.memory_space<vmem>>, vector<1x32x64xf32>
    %75 = vector.shape_cast %74 : vector<1x32x64xf32> to vector<32x64xf32>
    %cst_57 = arith.constant dense<0.000000e+00> : vector<16x64xf32>
    %76 = tpu.matmul %73, %75, %cst_57 {dimension_numbers = #tpu.dot_dimension_numbers<[1], [0], [0], [1], [0, 0, 1, 1], [], []>} : vector<16x32xf32>, vector<32x64xf32>, vector<16x64xf32> -> vector<16x64xf32>
    %77 = vector.broadcast %32 : vector<1x64xf32> to vector<16x64xf32>
    %78 = arith.addf %77, %76 : vector<16x64xf32>
    %c1 = arith.constant 1 : index
    %c0_58 = arith.constant 0 : index
    %c0_59 = arith.constant 0 : index
    %79 = vector.load %arg4[%c1, %c0_58, %c0_59] : memref<2x64x32xf32, #tpu.memory_space<vmem>>, vector<1x64x32xf32>
    %80 = vector.shape_cast %79 : vector<1x64x32xf32> to vector<64x32xf32>
    %cst_60 = arith.constant dense<0.000000e+00> : vector<16x32xf32>
    %81 = tpu.matmul %30, %80, %cst_60 {dimension_numbers = #tpu.dot_dimension_numbers<[1], [0], [0], [1], [0, 0, 1, 1], [], []>} : vector<16x64xf32>, vector<64x32xf32>, vector<16x32xf32> -> vector<16x32xf32>
    %c1_61 = arith.constant 1 : index
    %c0_62 = arith.constant 0 : index
    %c0_63 = arith.constant 0 : index
    %82 = vector.load %arg5[%c1_61, %c0_62, %c0_63] : memref<2x1x32xf32, #tpu.memory_space<vmem>>, vector<1x1x32xf32>
    %83 = vector.shape_cast %82 : vector<1x1x32xf32> to vector<1x32xf32>
    %84 = vector.broadcast %83 : vector<1x32xf32> to vector<16x32xf32>
    %85 = arith.addf %81, %84 : vector<16x32xf32>
    %c1_64 = arith.constant 1 : index
    %c0_65 = arith.constant 0 : index
    %c0_66 = arith.constant 0 : index
    %86 = vector.load %arg6[%c1_64, %c0_65, %c0_66] : memref<2x64x32xf32, #tpu.memory_space<vmem>>, vector<1x64x32xf32>
    %87 = vector.shape_cast %86 : vector<1x64x32xf32> to vector<64x32xf32>
    %cst_67 = arith.constant dense<0.000000e+00> : vector<16x32xf32>
    %88 = tpu.matmul %30, %87, %cst_67 {dimension_numbers = #tpu.dot_dimension_numbers<[1], [0], [0], [1], [0, 0, 1, 1], [], []>} : vector<16x64xf32>, vector<64x32xf32>, vector<16x32xf32> -> vector<16x32xf32>
    %c1_68 = arith.constant 1 : index
    %c0_69 = arith.constant 0 : index
    %c0_70 = arith.constant 0 : index
    %89 = vector.load %arg7[%c1_68, %c0_69, %c0_70] : memref<2x1x32xf32, #tpu.memory_space<vmem>>, vector<1x1x32xf32>
    %90 = vector.shape_cast %89 : vector<1x1x32xf32> to vector<1x32xf32>
    %91 = vector.broadcast %90 : vector<1x32xf32> to vector<16x32xf32>
    %92 = arith.addf %88, %91 : vector<16x32xf32>
    %c1_71 = arith.constant 1 : index
    %c0_72 = arith.constant 0 : index
    %c0_73 = arith.constant 0 : index
    %93 = vector.load %arg8[%c1_71, %c0_72, %c0_73] : memref<2x64x32xf32, #tpu.memory_space<vmem>>, vector<1x64x32xf32>
    %94 = vector.shape_cast %93 : vector<1x64x32xf32> to vector<64x32xf32>
    %cst_74 = arith.constant dense<0.000000e+00> : vector<16x32xf32>
    %95 = tpu.matmul %30, %94, %cst_74 {dimension_numbers = #tpu.dot_dimension_numbers<[1], [0], [0], [1], [0, 0, 1, 1], [], []>} : vector<16x64xf32>, vector<64x32xf32>, vector<16x32xf32> -> vector<16x32xf32>
    %c1_75 = arith.constant 1 : index
    %c0_76 = arith.constant 0 : index
    %c0_77 = arith.constant 0 : index
    %96 = vector.load %arg9[%c1_75, %c0_76, %c0_77] : memref<2x1x32xf32, #tpu.memory_space<vmem>>, vector<1x1x32xf32>
    %97 = vector.shape_cast %96 : vector<1x1x32xf32> to vector<1x32xf32>
    %98 = vector.broadcast %97 : vector<1x32xf32> to vector<16x32xf32>
    %99 = arith.addf %95, %98 : vector<16x32xf32>
    %cst_78 = arith.constant dense<0.000000e+00> : vector<16x16xf32>
    %100 = tpu.matmul %85, %92, %cst_78 {dimension_numbers = #tpu.dot_dimension_numbers<[1], [1], [0], [0], [0, 0, 1, 0], [], []>} : vector<16x32xf32>, vector<16x32xf32>, vector<16x16xf32> -> vector<16x16xf32>
    %101 = arith.addf %100, %31 : vector<16x16xf32>
    %cst_79 = arith.constant dense<0xFF800000> : vector<16xf32>
    %102 = vector.multi_reduction <maximumf>, %101, %cst_79 [1] : vector<16x16xf32> to vector<16xf32>
    %103 = vector.shape_cast %102 : vector<16xf32> to vector<16x1xf32>
    %104 = vector.broadcast %103 : vector<16x1xf32> to vector<16x16xf32>
    %105 = arith.subf %101, %104 : vector<16x16xf32>
    %106 = math.exp %105 : vector<16x16xf32>
    %cst_80 = arith.constant dense<0.000000e+00> : vector<16xf32>
    %107 = vector.multi_reduction <add>, %106, %cst_80 [1] : vector<16x16xf32> to vector<16xf32>
    %108 = vector.shape_cast %107 : vector<16xf32> to vector<16x1xf32>
    %109 = vector.broadcast %108 : vector<16x1xf32> to vector<16x16xf32>
    %110 = arith.divf %106, %109 : vector<16x16xf32>
    %cst_81 = arith.constant dense<0.000000e+00> : vector<16x32xf32>
    %111 = tpu.matmul %110, %99, %cst_81 {dimension_numbers = #tpu.dot_dimension_numbers<[1], [0], [0], [1], [0, 0, 1, 1], [], []>} : vector<16x16xf32>, vector<16x32xf32>, vector<16x32xf32> -> vector<16x32xf32>
    %c1_82 = arith.constant 1 : index
    %c0_83 = arith.constant 0 : index
    %c0_84 = arith.constant 0 : index
    %112 = vector.load %arg10[%c1_82, %c0_83, %c0_84] : memref<2x32x64xf32, #tpu.memory_space<vmem>>, vector<1x32x64xf32>
    %113 = vector.shape_cast %112 : vector<1x32x64xf32> to vector<32x64xf32>
    %cst_85 = arith.constant dense<0.000000e+00> : vector<16x64xf32>
    %114 = tpu.matmul %111, %113, %cst_85 {dimension_numbers = #tpu.dot_dimension_numbers<[1], [0], [0], [1], [0, 0, 1, 1], [], []>} : vector<16x32xf32>, vector<32x64xf32>, vector<16x64xf32> -> vector<16x64xf32>
    %115 = arith.addf %78, %114 : vector<16x64xf32>
    %116 = arith.addf %30, %115 : vector<16x64xf32>
    %cst_86 = arith.constant dense<0.000000e+00> : vector<16xf32>
    %117 = vector.multi_reduction <add>, %116, %cst_86 [1] : vector<16x64xf32> to vector<16xf32>
    %118 = vector.shape_cast %117 : vector<16xf32> to vector<16x1xf32>
    %cst_87 = arith.constant 6.400000e+01 : f32
    %119 = vector.broadcast %cst_87 : f32 to vector<16x1xf32>
    %120 = arith.divf %118, %119 : vector<16x1xf32>
    %121 = vector.broadcast %120 : vector<16x1xf32> to vector<16x64xf32>
    %122 = arith.subf %116, %121 : vector<16x64xf32>
    %123 = arith.mulf %122, %122 : vector<16x64xf32>
    %cst_88 = arith.constant dense<0.000000e+00> : vector<16xf32>
    %124 = vector.multi_reduction <add>, %123, %cst_88 [1] : vector<16x64xf32> to vector<16xf32>
    %125 = vector.shape_cast %124 : vector<16xf32> to vector<16x1xf32>
    %cst_89 = arith.constant 6.400000e+01 : f32
    %126 = vector.broadcast %cst_89 : f32 to vector<16x1xf32>
    %127 = arith.divf %125, %126 : vector<16x1xf32>
    %128 = vector.broadcast %120 : vector<16x1xf32> to vector<16x64xf32>
    %129 = arith.subf %116, %128 : vector<16x64xf32>
    %cst_90 = arith.constant 9.99999974E-6 : f32
    %130 = vector.broadcast %cst_90 : f32 to vector<16x1xf32>
    %131 = arith.addf %127, %130 : vector<16x1xf32>
    %132 = math.rsqrt %131 : vector<16x1xf32>
    %133 = vector.broadcast %132 : vector<16x1xf32> to vector<16x64xf32>
    %134 = arith.mulf %129, %133 : vector<16x64xf32>
    %135 = vector.broadcast %33 : vector<1x64xf32> to vector<16x64xf32>
    %136 = arith.mulf %134, %135 : vector<16x64xf32>
    %137 = vector.broadcast %34 : vector<1x64xf32> to vector<16x64xf32>
    %138 = arith.addf %136, %137 : vector<16x64xf32>
    %cst_91 = arith.constant dense<0.000000e+00> : vector<16x128xf32>
    %139 = tpu.matmul %138, %35, %cst_91 {dimension_numbers = #tpu.dot_dimension_numbers<[1], [0], [0], [1], [0, 0, 1, 1], [], []>} : vector<16x64xf32>, vector<64x128xf32>, vector<16x128xf32> -> vector<16x128xf32>
    %140 = vector.broadcast %36 : vector<1x128xf32> to vector<16x128xf32>
    %141 = arith.addf %139, %140 : vector<16x128xf32>
    %cst_92 = arith.constant 5.000000e-01 : f32
    %142 = vector.broadcast %cst_92 : f32 to vector<16x128xf32>
    %143 = arith.mulf %142, %141 : vector<16x128xf32>
    %cst_93 = arith.constant 0.707106769 : f32
    %144 = vector.broadcast %cst_93 : f32 to vector<16x128xf32>
    %145 = arith.mulf %141, %144 : vector<16x128xf32>
    %cst_94 = arith.constant 0.000000e+00 : f32
    %146 = vector.broadcast %cst_94 : f32 to vector<16x128xf32>
    %147 = arith.cmpf olt, %145, %146 : vector<16x128xf32>
    %cst_95 = arith.constant -1.000000e+00 : f32
    %cst_96 = arith.constant 1.000000e+00 : f32
    %148 = vector.broadcast %cst_95 : f32 to vector<16x128xf32>
    %149 = vector.broadcast %cst_96 : f32 to vector<16x128xf32>
    %150 = arith.select %147, %148, %149 : vector<16x128xi1>, vector<16x128xf32>
    %151 = math.absf %145 : vector<16x128xf32>
    %cst_97 = arith.constant 0.327591091 : f32
    %152 = vector.broadcast %cst_97 : f32 to vector<16x128xf32>
    %153 = arith.mulf %152, %151 : vector<16x128xf32>
    %cst_98 = arith.constant 1.000000e+00 : f32
    %154 = vector.broadcast %cst_98 : f32 to vector<16x128xf32>
    %155 = arith.addf %154, %153 : vector<16x128xf32>
    %cst_99 = arith.constant 1.000000e+00 : f32
    %156 = vector.broadcast %cst_99 : f32 to vector<16x128xf32>
    %157 = arith.divf %156, %155 : vector<16x128xf32>
    %cst_100 = arith.constant 1.06140542 : f32
    %158 = vector.broadcast %cst_100 : f32 to vector<16x128xf32>
    %159 = arith.mulf %158, %157 : vector<16x128xf32>
    %cst_101 = arith.constant -1.45315206 : f32
    %160 = vector.broadcast %cst_101 : f32 to vector<16x128xf32>
    %161 = arith.addf %159, %160 : vector<16x128xf32>
    %162 = arith.mulf %161, %157 : vector<16x128xf32>
    %cst_102 = arith.constant 1.42141378 : f32
    %163 = vector.broadcast %cst_102 : f32 to vector<16x128xf32>
    %164 = arith.addf %162, %163 : vector<16x128xf32>
    %165 = arith.mulf %164, %157 : vector<16x128xf32>
    %cst_103 = arith.constant -0.284496725 : f32
    %166 = vector.broadcast %cst_103 : f32 to vector<16x128xf32>
    %167 = arith.addf %165, %166 : vector<16x128xf32>
    %168 = arith.mulf %167, %157 : vector<16x128xf32>
    %cst_104 = arith.constant 0.254829586 : f32
    %169 = vector.broadcast %cst_104 : f32 to vector<16x128xf32>
    %170 = arith.addf %168, %169 : vector<16x128xf32>
    %171 = arith.mulf %170, %157 : vector<16x128xf32>
    %cst_105 = arith.constant 0.000000e+00 : f32
    %172 = vector.broadcast %cst_105 : f32 to vector<16x128xf32>
    %173 = arith.subf %172, %151 : vector<16x128xf32>
    %174 = arith.mulf %173, %151 : vector<16x128xf32>
    %175 = math.exp %174 : vector<16x128xf32>
    %176 = arith.mulf %171, %175 : vector<16x128xf32>
    %cst_106 = arith.constant 1.000000e+00 : f32
    %177 = vector.broadcast %cst_106 : f32 to vector<16x128xf32>
    %178 = arith.subf %177, %176 : vector<16x128xf32>
    %179 = arith.mulf %150, %178 : vector<16x128xf32>
    %cst_107 = arith.constant 1.000000e+00 : f32
    %180 = vector.broadcast %cst_107 : f32 to vector<16x128xf32>
    %181 = arith.addf %180, %179 : vector<16x128xf32>
    %182 = arith.mulf %143, %181 : vector<16x128xf32>
    %cst_108 = arith.constant dense<0.000000e+00> : vector<16x64xf32>
    %183 = tpu.matmul %182, %37, %cst_108 {dimension_numbers = #tpu.dot_dimension_numbers<[1], [0], [0], [1], [0, 0, 1, 1], [], []>} : vector<16x128xf32>, vector<128x64xf32>, vector<16x64xf32> -> vector<16x64xf32>
    %184 = vector.broadcast %38 : vector<1x64xf32> to vector<16x64xf32>
    %185 = arith.addf %183, %184 : vector<16x64xf32>
    %186 = arith.addf %138, %185 : vector<16x64xf32>
    %cst_109 = arith.constant dense<0.000000e+00> : vector<16xf32>
    %187 = vector.multi_reduction <add>, %186, %cst_109 [1] : vector<16x64xf32> to vector<16xf32>
    %188 = vector.shape_cast %187 : vector<16xf32> to vector<16x1xf32>
    %cst_110 = arith.constant 6.400000e+01 : f32
    %189 = vector.broadcast %cst_110 : f32 to vector<16x1xf32>
    %190 = arith.divf %188, %189 : vector<16x1xf32>
    %191 = vector.broadcast %190 : vector<16x1xf32> to vector<16x64xf32>
    %192 = arith.subf %186, %191 : vector<16x64xf32>
    %193 = arith.mulf %192, %192 : vector<16x64xf32>
    %cst_111 = arith.constant dense<0.000000e+00> : vector<16xf32>
    %194 = vector.multi_reduction <add>, %193, %cst_111 [1] : vector<16x64xf32> to vector<16xf32>
    %195 = vector.shape_cast %194 : vector<16xf32> to vector<16x1xf32>
    %cst_112 = arith.constant 6.400000e+01 : f32
    %196 = vector.broadcast %cst_112 : f32 to vector<16x1xf32>
    %197 = arith.divf %195, %196 : vector<16x1xf32>
    %198 = vector.broadcast %190 : vector<16x1xf32> to vector<16x64xf32>
    %199 = arith.subf %186, %198 : vector<16x64xf32>
    %cst_113 = arith.constant 9.99999974E-6 : f32
    %200 = vector.broadcast %cst_113 : f32 to vector<16x1xf32>
    %201 = arith.addf %197, %200 : vector<16x1xf32>
    %202 = math.rsqrt %201 : vector<16x1xf32>
    %203 = vector.broadcast %202 : vector<16x1xf32> to vector<16x64xf32>
    %204 = arith.mulf %199, %203 : vector<16x64xf32>
    %205 = vector.broadcast %39 : vector<1x64xf32> to vector<16x64xf32>
    %206 = arith.mulf %204, %205 : vector<16x64xf32>
    %207 = vector.broadcast %40 : vector<1x64xf32> to vector<16x64xf32>
    %208 = arith.addf %206, %207 : vector<16x64xf32>
    %c0_114 = arith.constant 0 : index
    %c0_115 = arith.constant 0 : index
    %209 = vector.load %arg27[%c0_114, %c0_115] : memref<1x64xf32, #tpu.memory_space<vmem>>, vector<1x64xf32>
    %c0_116 = arith.constant 0 : index
    %c0_117 = arith.constant 0 : index
    %210 = vector.load %arg28[%c0_116, %c0_117] : memref<1x64xf32, #tpu.memory_space<vmem>>, vector<1x64xf32>
    %c0_118 = arith.constant 0 : index
    %c0_119 = arith.constant 0 : index
    %211 = vector.load %arg29[%c0_118, %c0_119] : memref<1x64xf32, #tpu.memory_space<vmem>>, vector<1x64xf32>
    %c0_120 = arith.constant 0 : index
    %c0_121 = arith.constant 0 : index
    %212 = vector.load %arg30[%c0_120, %c0_121] : memref<64x128xf32, #tpu.memory_space<vmem>>, vector<64x128xf32>
    %c0_122 = arith.constant 0 : index
    %c0_123 = arith.constant 0 : index
    %213 = vector.load %arg31[%c0_122, %c0_123] : memref<1x128xf32, #tpu.memory_space<vmem>>, vector<1x128xf32>
    %c0_124 = arith.constant 0 : index
    %c0_125 = arith.constant 0 : index
    %214 = vector.load %arg32[%c0_124, %c0_125] : memref<128x64xf32, #tpu.memory_space<vmem>>, vector<128x64xf32>
    %c0_126 = arith.constant 0 : index
    %c0_127 = arith.constant 0 : index
    %215 = vector.load %arg33[%c0_126, %c0_127] : memref<1x64xf32, #tpu.memory_space<vmem>>, vector<1x64xf32>
    %c0_128 = arith.constant 0 : index
    %c0_129 = arith.constant 0 : index
    %216 = vector.load %arg34[%c0_128, %c0_129] : memref<1x64xf32, #tpu.memory_space<vmem>>, vector<1x64xf32>
    %c0_130 = arith.constant 0 : index
    %c0_131 = arith.constant 0 : index
    %217 = vector.load %arg35[%c0_130, %c0_131] : memref<1x64xf32, #tpu.memory_space<vmem>>, vector<1x64xf32>
    %c0_132 = arith.constant 0 : index
    %c0_133 = arith.constant 0 : index
    %c0_134 = arith.constant 0 : index
    %218 = vector.load %arg20[%c0_132, %c0_133, %c0_134] : memref<2x64x32xf32, #tpu.memory_space<vmem>>, vector<1x64x32xf32>
    %219 = vector.shape_cast %218 : vector<1x64x32xf32> to vector<64x32xf32>
    %cst_135 = arith.constant dense<0.000000e+00> : vector<16x32xf32>
    %220 = tpu.matmul %208, %219, %cst_135 {dimension_numbers = #tpu.dot_dimension_numbers<[1], [0], [0], [1], [0, 0, 1, 1], [], []>} : vector<16x64xf32>, vector<64x32xf32>, vector<16x32xf32> -> vector<16x32xf32>
    %c0_136 = arith.constant 0 : index
    %c0_137 = arith.constant 0 : index
    %c0_138 = arith.constant 0 : index
    %221 = vector.load %arg21[%c0_136, %c0_137, %c0_138] : memref<2x1x32xf32, #tpu.memory_space<vmem>>, vector<1x1x32xf32>
    %222 = vector.shape_cast %221 : vector<1x1x32xf32> to vector<1x32xf32>
    %223 = vector.broadcast %222 : vector<1x32xf32> to vector<16x32xf32>
    %224 = arith.addf %220, %223 : vector<16x32xf32>
    %c0_139 = arith.constant 0 : index
    %c0_140 = arith.constant 0 : index
    %c0_141 = arith.constant 0 : index
    %225 = vector.load %arg22[%c0_139, %c0_140, %c0_141] : memref<2x64x32xf32, #tpu.memory_space<vmem>>, vector<1x64x32xf32>
    %226 = vector.shape_cast %225 : vector<1x64x32xf32> to vector<64x32xf32>
    %cst_142 = arith.constant dense<0.000000e+00> : vector<16x32xf32>
    %227 = tpu.matmul %208, %226, %cst_142 {dimension_numbers = #tpu.dot_dimension_numbers<[1], [0], [0], [1], [0, 0, 1, 1], [], []>} : vector<16x64xf32>, vector<64x32xf32>, vector<16x32xf32> -> vector<16x32xf32>
    %c0_143 = arith.constant 0 : index
    %c0_144 = arith.constant 0 : index
    %c0_145 = arith.constant 0 : index
    %228 = vector.load %arg23[%c0_143, %c0_144, %c0_145] : memref<2x1x32xf32, #tpu.memory_space<vmem>>, vector<1x1x32xf32>
    %229 = vector.shape_cast %228 : vector<1x1x32xf32> to vector<1x32xf32>
    %230 = vector.broadcast %229 : vector<1x32xf32> to vector<16x32xf32>
    %231 = arith.addf %227, %230 : vector<16x32xf32>
    %c0_146 = arith.constant 0 : index
    %c0_147 = arith.constant 0 : index
    %c0_148 = arith.constant 0 : index
    %232 = vector.load %arg24[%c0_146, %c0_147, %c0_148] : memref<2x64x32xf32, #tpu.memory_space<vmem>>, vector<1x64x32xf32>
    %233 = vector.shape_cast %232 : vector<1x64x32xf32> to vector<64x32xf32>
    %cst_149 = arith.constant dense<0.000000e+00> : vector<16x32xf32>
    %234 = tpu.matmul %208, %233, %cst_149 {dimension_numbers = #tpu.dot_dimension_numbers<[1], [0], [0], [1], [0, 0, 1, 1], [], []>} : vector<16x64xf32>, vector<64x32xf32>, vector<16x32xf32> -> vector<16x32xf32>
    %c0_150 = arith.constant 0 : index
    %c0_151 = arith.constant 0 : index
    %c0_152 = arith.constant 0 : index
    %235 = vector.load %arg25[%c0_150, %c0_151, %c0_152] : memref<2x1x32xf32, #tpu.memory_space<vmem>>, vector<1x1x32xf32>
    %236 = vector.shape_cast %235 : vector<1x1x32xf32> to vector<1x32xf32>
    %237 = vector.broadcast %236 : vector<1x32xf32> to vector<16x32xf32>
    %238 = arith.addf %234, %237 : vector<16x32xf32>
    %cst_153 = arith.constant dense<0.000000e+00> : vector<16x16xf32>
    %239 = tpu.matmul %224, %231, %cst_153 {dimension_numbers = #tpu.dot_dimension_numbers<[1], [1], [0], [0], [0, 0, 1, 0], [], []>} : vector<16x32xf32>, vector<16x32xf32>, vector<16x16xf32> -> vector<16x16xf32>
    %240 = arith.addf %239, %31 : vector<16x16xf32>
    %cst_154 = arith.constant dense<0xFF800000> : vector<16xf32>
    %241 = vector.multi_reduction <maximumf>, %240, %cst_154 [1] : vector<16x16xf32> to vector<16xf32>
    %242 = vector.shape_cast %241 : vector<16xf32> to vector<16x1xf32>
    %243 = vector.broadcast %242 : vector<16x1xf32> to vector<16x16xf32>
    %244 = arith.subf %240, %243 : vector<16x16xf32>
    %245 = math.exp %244 : vector<16x16xf32>
    %cst_155 = arith.constant dense<0.000000e+00> : vector<16xf32>
    %246 = vector.multi_reduction <add>, %245, %cst_155 [1] : vector<16x16xf32> to vector<16xf32>
    %247 = vector.shape_cast %246 : vector<16xf32> to vector<16x1xf32>
    %248 = vector.broadcast %247 : vector<16x1xf32> to vector<16x16xf32>
    %249 = arith.divf %245, %248 : vector<16x16xf32>
    %cst_156 = arith.constant dense<0.000000e+00> : vector<16x32xf32>
    %250 = tpu.matmul %249, %238, %cst_156 {dimension_numbers = #tpu.dot_dimension_numbers<[1], [0], [0], [1], [0, 0, 1, 1], [], []>} : vector<16x16xf32>, vector<16x32xf32>, vector<16x32xf32> -> vector<16x32xf32>
    %c0_157 = arith.constant 0 : index
    %c0_158 = arith.constant 0 : index
    %c0_159 = arith.constant 0 : index
    %251 = vector.load %arg26[%c0_157, %c0_158, %c0_159] : memref<2x32x64xf32, #tpu.memory_space<vmem>>, vector<1x32x64xf32>
    %252 = vector.shape_cast %251 : vector<1x32x64xf32> to vector<32x64xf32>
    %cst_160 = arith.constant dense<0.000000e+00> : vector<16x64xf32>
    %253 = tpu.matmul %250, %252, %cst_160 {dimension_numbers = #tpu.dot_dimension_numbers<[1], [0], [0], [1], [0, 0, 1, 1], [], []>} : vector<16x32xf32>, vector<32x64xf32>, vector<16x64xf32> -> vector<16x64xf32>
    %254 = vector.broadcast %209 : vector<1x64xf32> to vector<16x64xf32>
    %255 = arith.addf %254, %253 : vector<16x64xf32>
    %c1_161 = arith.constant 1 : index
    %c0_162 = arith.constant 0 : index
    %c0_163 = arith.constant 0 : index
    %256 = vector.load %arg20[%c1_161, %c0_162, %c0_163] : memref<2x64x32xf32, #tpu.memory_space<vmem>>, vector<1x64x32xf32>
    %257 = vector.shape_cast %256 : vector<1x64x32xf32> to vector<64x32xf32>
    %cst_164 = arith.constant dense<0.000000e+00> : vector<16x32xf32>
    %258 = tpu.matmul %208, %257, %cst_164 {dimension_numbers = #tpu.dot_dimension_numbers<[1], [0], [0], [1], [0, 0, 1, 1], [], []>} : vector<16x64xf32>, vector<64x32xf32>, vector<16x32xf32> -> vector<16x32xf32>
    %c1_165 = arith.constant 1 : index
    %c0_166 = arith.constant 0 : index
    %c0_167 = arith.constant 0 : index
    %259 = vector.load %arg21[%c1_165, %c0_166, %c0_167] : memref<2x1x32xf32, #tpu.memory_space<vmem>>, vector<1x1x32xf32>
    %260 = vector.shape_cast %259 : vector<1x1x32xf32> to vector<1x32xf32>
    %261 = vector.broadcast %260 : vector<1x32xf32> to vector<16x32xf32>
    %262 = arith.addf %258, %261 : vector<16x32xf32>
    %c1_168 = arith.constant 1 : index
    %c0_169 = arith.constant 0 : index
    %c0_170 = arith.constant 0 : index
    %263 = vector.load %arg22[%c1_168, %c0_169, %c0_170] : memref<2x64x32xf32, #tpu.memory_space<vmem>>, vector<1x64x32xf32>
    %264 = vector.shape_cast %263 : vector<1x64x32xf32> to vector<64x32xf32>
    %cst_171 = arith.constant dense<0.000000e+00> : vector<16x32xf32>
    %265 = tpu.matmul %208, %264, %cst_171 {dimension_numbers = #tpu.dot_dimension_numbers<[1], [0], [0], [1], [0, 0, 1, 1], [], []>} : vector<16x64xf32>, vector<64x32xf32>, vector<16x32xf32> -> vector<16x32xf32>
    %c1_172 = arith.constant 1 : index
    %c0_173 = arith.constant 0 : index
    %c0_174 = arith.constant 0 : index
    %266 = vector.load %arg23[%c1_172, %c0_173, %c0_174] : memref<2x1x32xf32, #tpu.memory_space<vmem>>, vector<1x1x32xf32>
    %267 = vector.shape_cast %266 : vector<1x1x32xf32> to vector<1x32xf32>
    %268 = vector.broadcast %267 : vector<1x32xf32> to vector<16x32xf32>
    %269 = arith.addf %265, %268 : vector<16x32xf32>
    %c1_175 = arith.constant 1 : index
    %c0_176 = arith.constant 0 : index
    %c0_177 = arith.constant 0 : index
    %270 = vector.load %arg24[%c1_175, %c0_176, %c0_177] : memref<2x64x32xf32, #tpu.memory_space<vmem>>, vector<1x64x32xf32>
    %271 = vector.shape_cast %270 : vector<1x64x32xf32> to vector<64x32xf32>
    %cst_178 = arith.constant dense<0.000000e+00> : vector<16x32xf32>
    %272 = tpu.matmul %208, %271, %cst_178 {dimension_numbers = #tpu.dot_dimension_numbers<[1], [0], [0], [1], [0, 0, 1, 1], [], []>} : vector<16x64xf32>, vector<64x32xf32>, vector<16x32xf32> -> vector<16x32xf32>
    %c1_179 = arith.constant 1 : index
    %c0_180 = arith.constant 0 : index
    %c0_181 = arith.constant 0 : index
    %273 = vector.load %arg25[%c1_179, %c0_180, %c0_181] : memref<2x1x32xf32, #tpu.memory_space<vmem>>, vector<1x1x32xf32>
    %274 = vector.shape_cast %273 : vector<1x1x32xf32> to vector<1x32xf32>
    %275 = vector.broadcast %274 : vector<1x32xf32> to vector<16x32xf32>
    %276 = arith.addf %272, %275 : vector<16x32xf32>
    %cst_182 = arith.constant dense<0.000000e+00> : vector<16x16xf32>
    %277 = tpu.matmul %262, %269, %cst_182 {dimension_numbers = #tpu.dot_dimension_numbers<[1], [1], [0], [0], [0, 0, 1, 0], [], []>} : vector<16x32xf32>, vector<16x32xf32>, vector<16x16xf32> -> vector<16x16xf32>
    %278 = arith.addf %277, %31 : vector<16x16xf32>
    %cst_183 = arith.constant dense<0xFF800000> : vector<16xf32>
    %279 = vector.multi_reduction <maximumf>, %278, %cst_183 [1] : vector<16x16xf32> to vector<16xf32>
    %280 = vector.shape_cast %279 : vector<16xf32> to vector<16x1xf32>
    %281 = vector.broadcast %280 : vector<16x1xf32> to vector<16x16xf32>
    %282 = arith.subf %278, %281 : vector<16x16xf32>
    %283 = math.exp %282 : vector<16x16xf32>
    %cst_184 = arith.constant dense<0.000000e+00> : vector<16xf32>
    %284 = vector.multi_reduction <add>, %283, %cst_184 [1] : vector<16x16xf32> to vector<16xf32>
    %285 = vector.shape_cast %284 : vector<16xf32> to vector<16x1xf32>
    %286 = vector.broadcast %285 : vector<16x1xf32> to vector<16x16xf32>
    %287 = arith.divf %283, %286 : vector<16x16xf32>
    %cst_185 = arith.constant dense<0.000000e+00> : vector<16x32xf32>
    %288 = tpu.matmul %287, %276, %cst_185 {dimension_numbers = #tpu.dot_dimension_numbers<[1], [0], [0], [1], [0, 0, 1, 1], [], []>} : vector<16x16xf32>, vector<16x32xf32>, vector<16x32xf32> -> vector<16x32xf32>
    %c1_186 = arith.constant 1 : index
    %c0_187 = arith.constant 0 : index
    %c0_188 = arith.constant 0 : index
    %289 = vector.load %arg26[%c1_186, %c0_187, %c0_188] : memref<2x32x64xf32, #tpu.memory_space<vmem>>, vector<1x32x64xf32>
    %290 = vector.shape_cast %289 : vector<1x32x64xf32> to vector<32x64xf32>
    %cst_189 = arith.constant dense<0.000000e+00> : vector<16x64xf32>
    %291 = tpu.matmul %288, %290, %cst_189 {dimension_numbers = #tpu.dot_dimension_numbers<[1], [0], [0], [1], [0, 0, 1, 1], [], []>} : vector<16x32xf32>, vector<32x64xf32>, vector<16x64xf32> -> vector<16x64xf32>
    %292 = arith.addf %255, %291 : vector<16x64xf32>
    %293 = arith.addf %208, %292 : vector<16x64xf32>
    %cst_190 = arith.constant dense<0.000000e+00> : vector<16xf32>
    %294 = vector.multi_reduction <add>, %293, %cst_190 [1] : vector<16x64xf32> to vector<16xf32>
    %295 = vector.shape_cast %294 : vector<16xf32> to vector<16x1xf32>
    %cst_191 = arith.constant 6.400000e+01 : f32
    %296 = vector.broadcast %cst_191 : f32 to vector<16x1xf32>
    %297 = arith.divf %295, %296 : vector<16x1xf32>
    %298 = vector.broadcast %297 : vector<16x1xf32> to vector<16x64xf32>
    %299 = arith.subf %293, %298 : vector<16x64xf32>
    %300 = arith.mulf %299, %299 : vector<16x64xf32>
    %cst_192 = arith.constant dense<0.000000e+00> : vector<16xf32>
    %301 = vector.multi_reduction <add>, %300, %cst_192 [1] : vector<16x64xf32> to vector<16xf32>
    %302 = vector.shape_cast %301 : vector<16xf32> to vector<16x1xf32>
    %cst_193 = arith.constant 6.400000e+01 : f32
    %303 = vector.broadcast %cst_193 : f32 to vector<16x1xf32>
    %304 = arith.divf %302, %303 : vector<16x1xf32>
    %305 = vector.broadcast %297 : vector<16x1xf32> to vector<16x64xf32>
    %306 = arith.subf %293, %305 : vector<16x64xf32>
    %cst_194 = arith.constant 9.99999974E-6 : f32
    %307 = vector.broadcast %cst_194 : f32 to vector<16x1xf32>
    %308 = arith.addf %304, %307 : vector<16x1xf32>
    %309 = math.rsqrt %308 : vector<16x1xf32>
    %310 = vector.broadcast %309 : vector<16x1xf32> to vector<16x64xf32>
    %311 = arith.mulf %306, %310 : vector<16x64xf32>
    %312 = vector.broadcast %210 : vector<1x64xf32> to vector<16x64xf32>
    %313 = arith.mulf %311, %312 : vector<16x64xf32>
    %314 = vector.broadcast %211 : vector<1x64xf32> to vector<16x64xf32>
    %315 = arith.addf %313, %314 : vector<16x64xf32>
    %cst_195 = arith.constant dense<0.000000e+00> : vector<16x128xf32>
    %316 = tpu.matmul %315, %212, %cst_195 {dimension_numbers = #tpu.dot_dimension_numbers<[1], [0], [0], [1], [0, 0, 1, 1], [], []>} : vector<16x64xf32>, vector<64x128xf32>, vector<16x128xf32> -> vector<16x128xf32>
    %317 = vector.broadcast %213 : vector<1x128xf32> to vector<16x128xf32>
    %318 = arith.addf %316, %317 : vector<16x128xf32>
    %cst_196 = arith.constant 5.000000e-01 : f32
    %319 = vector.broadcast %cst_196 : f32 to vector<16x128xf32>
    %320 = arith.mulf %319, %318 : vector<16x128xf32>
    %cst_197 = arith.constant 0.707106769 : f32
    %321 = vector.broadcast %cst_197 : f32 to vector<16x128xf32>
    %322 = arith.mulf %318, %321 : vector<16x128xf32>
    %cst_198 = arith.constant 0.000000e+00 : f32
    %323 = vector.broadcast %cst_198 : f32 to vector<16x128xf32>
    %324 = arith.cmpf olt, %322, %323 : vector<16x128xf32>
    %cst_199 = arith.constant -1.000000e+00 : f32
    %cst_200 = arith.constant 1.000000e+00 : f32
    %325 = vector.broadcast %cst_199 : f32 to vector<16x128xf32>
    %326 = vector.broadcast %cst_200 : f32 to vector<16x128xf32>
    %327 = arith.select %324, %325, %326 : vector<16x128xi1>, vector<16x128xf32>
    %328 = math.absf %322 : vector<16x128xf32>
    %cst_201 = arith.constant 0.327591091 : f32
    %329 = vector.broadcast %cst_201 : f32 to vector<16x128xf32>
    %330 = arith.mulf %329, %328 : vector<16x128xf32>
    %cst_202 = arith.constant 1.000000e+00 : f32
    %331 = vector.broadcast %cst_202 : f32 to vector<16x128xf32>
    %332 = arith.addf %331, %330 : vector<16x128xf32>
    %cst_203 = arith.constant 1.000000e+00 : f32
    %333 = vector.broadcast %cst_203 : f32 to vector<16x128xf32>
    %334 = arith.divf %333, %332 : vector<16x128xf32>
    %cst_204 = arith.constant 1.06140542 : f32
    %335 = vector.broadcast %cst_204 : f32 to vector<16x128xf32>
    %336 = arith.mulf %335, %334 : vector<16x128xf32>
    %cst_205 = arith.constant -1.45315206 : f32
    %337 = vector.broadcast %cst_205 : f32 to vector<16x128xf32>
    %338 = arith.addf %336, %337 : vector<16x128xf32>
    %339 = arith.mulf %338, %334 : vector<16x128xf32>
    %cst_206 = arith.constant 1.42141378 : f32
    %340 = vector.broadcast %cst_206 : f32 to vector<16x128xf32>
    %341 = arith.addf %339, %340 : vector<16x128xf32>
    %342 = arith.mulf %341, %334 : vector<16x128xf32>
    %cst_207 = arith.constant -0.284496725 : f32
    %343 = vector.broadcast %cst_207 : f32 to vector<16x128xf32>
    %344 = arith.addf %342, %343 : vector<16x128xf32>
    %345 = arith.mulf %344, %334 : vector<16x128xf32>
    %cst_208 = arith.constant 0.254829586 : f32
    %346 = vector.broadcast %cst_208 : f32 to vector<16x128xf32>
    %347 = arith.addf %345, %346 : vector<16x128xf32>
    %348 = arith.mulf %347, %334 : vector<16x128xf32>
    %cst_209 = arith.constant 0.000000e+00 : f32
    %349 = vector.broadcast %cst_209 : f32 to vector<16x128xf32>
    %350 = arith.subf %349, %328 : vector<16x128xf32>
    %351 = arith.mulf %350, %328 : vector<16x128xf32>
    %352 = math.exp %351 : vector<16x128xf32>
    %353 = arith.mulf %348, %352 : vector<16x128xf32>
    %cst_210 = arith.constant 1.000000e+00 : f32
    %354 = vector.broadcast %cst_210 : f32 to vector<16x128xf32>
    %355 = arith.subf %354, %353 : vector<16x128xf32>
    %356 = arith.mulf %327, %355 : vector<16x128xf32>
    %cst_211 = arith.constant 1.000000e+00 : f32
    %357 = vector.broadcast %cst_211 : f32 to vector<16x128xf32>
    %358 = arith.addf %357, %356 : vector<16x128xf32>
    %359 = arith.mulf %320, %358 : vector<16x128xf32>
    %cst_212 = arith.constant dense<0.000000e+00> : vector<16x64xf32>
    %360 = tpu.matmul %359, %214, %cst_212 {dimension_numbers = #tpu.dot_dimension_numbers<[1], [0], [0], [1], [0, 0, 1, 1], [], []>} : vector<16x128xf32>, vector<128x64xf32>, vector<16x64xf32> -> vector<16x64xf32>
    %361 = vector.broadcast %215 : vector<1x64xf32> to vector<16x64xf32>
    %362 = arith.addf %360, %361 : vector<16x64xf32>
    %363 = arith.addf %315, %362 : vector<16x64xf32>
    %cst_213 = arith.constant dense<0.000000e+00> : vector<16xf32>
    %364 = vector.multi_reduction <add>, %363, %cst_213 [1] : vector<16x64xf32> to vector<16xf32>
    %365 = vector.shape_cast %364 : vector<16xf32> to vector<16x1xf32>
    %cst_214 = arith.constant 6.400000e+01 : f32
    %366 = vector.broadcast %cst_214 : f32 to vector<16x1xf32>
    %367 = arith.divf %365, %366 : vector<16x1xf32>
    %368 = vector.broadcast %367 : vector<16x1xf32> to vector<16x64xf32>
    %369 = arith.subf %363, %368 : vector<16x64xf32>
    %370 = arith.mulf %369, %369 : vector<16x64xf32>
    %cst_215 = arith.constant dense<0.000000e+00> : vector<16xf32>
    %371 = vector.multi_reduction <add>, %370, %cst_215 [1] : vector<16x64xf32> to vector<16xf32>
    %372 = vector.shape_cast %371 : vector<16xf32> to vector<16x1xf32>
    %cst_216 = arith.constant 6.400000e+01 : f32
    %373 = vector.broadcast %cst_216 : f32 to vector<16x1xf32>
    %374 = arith.divf %372, %373 : vector<16x1xf32>
    %375 = vector.broadcast %367 : vector<16x1xf32> to vector<16x64xf32>
    %376 = arith.subf %363, %375 : vector<16x64xf32>
    %cst_217 = arith.constant 9.99999974E-6 : f32
    %377 = vector.broadcast %cst_217 : f32 to vector<16x1xf32>
    %378 = arith.addf %374, %377 : vector<16x1xf32>
    %379 = math.rsqrt %378 : vector<16x1xf32>
    %380 = vector.broadcast %379 : vector<16x1xf32> to vector<16x64xf32>
    %381 = arith.mulf %376, %380 : vector<16x64xf32>
    %382 = vector.broadcast %216 : vector<1x64xf32> to vector<16x64xf32>
    %383 = arith.mulf %381, %382 : vector<16x64xf32>
    %384 = vector.broadcast %217 : vector<1x64xf32> to vector<16x64xf32>
    %385 = arith.addf %383, %384 : vector<16x64xf32>
    %386 = tpu.iota {dimensions = array<i32: 0>} : vector<2x16xi32>
    %387 = tpu.iota {dimensions = array<i32: 1>} : vector<2x16xi32>
    %c8_i32 = arith.constant 8 : i32
    %388 = vector.broadcast %c8_i32 : i32 to vector<2x16xi32>
    %389 = arith.muli %386, %388 : vector<2x16xi32>
    %390 = arith.cmpi eq, %387, %389 : vector<2x16xi32>
    %391 = arith.extui %390 : vector<2x16xi1> to vector<2x16xi32>
    %392 = arith.sitofp %391 : vector<2x16xi32> to vector<2x16xf32>
    %cst_218 = arith.constant dense<0.000000e+00> : vector<2x64xf32>
    %393 = tpu.matmul %392, %385, %cst_218 {dimension_numbers = #tpu.dot_dimension_numbers<[1], [0], [0], [1], [0, 0, 1, 1], [], []>} : vector<2x16xf32>, vector<16x64xf32>, vector<2x64xf32> -> vector<2x64xf32>
    %c0_219 = arith.constant 0 : index
    %c0_220 = arith.constant 0 : index
    %394 = vector.load %arg36[%c0_219, %c0_220] : memref<1x512xf32, #tpu.memory_space<vmem>>, vector<1x512xf32>
    %c0_221 = arith.constant 0 : index
    %c0_222 = arith.constant 0 : index
    %395 = vector.load %arg37[%c0_221, %c0_222] : memref<1x512xf32, #tpu.memory_space<vmem>>, vector<1x512xf32>
    %c0_223 = arith.constant 0 : index
    %c0_224 = arith.constant 0 : index
    %396 = vector.load %arg38[%c0_223, %c0_224] : memref<1x512xf32, #tpu.memory_space<vmem>>, vector<1x512xf32>
    %c0_225 = arith.constant 0 : index
    %c0_226 = arith.constant 0 : index
    %397 = vector.load %arg39[%c0_225, %c0_226] : memref<1x512xf32, #tpu.memory_space<vmem>>, vector<1x512xf32>
    %c0_227 = arith.constant 0 : index
    %c0_228 = arith.constant 0 : index
    %398 = vector.load %arg40[%c0_227, %c0_228] : memref<1x512xf32, #tpu.memory_space<vmem>>, vector<1x512xf32>
    %c0_229 = arith.constant 0 : index
    %c0_230 = arith.constant 0 : index
    %399 = vector.load %arg41[%c0_229, %c0_230] : memref<1x512xf32, #tpu.memory_space<vmem>>, vector<1x512xf32>
    %c0_231 = arith.constant 0 : index
    %c0_232 = arith.constant 0 : index
    %400 = vector.load %arg42[%c0_231, %c0_232] : memref<1x128xf32, #tpu.memory_space<vmem>>, vector<1x128xf32>
    %c0_i32_233 = arith.constant 0 : i32
    %401 = tpu.memref_slice %arg50[%c0_i32_233] : memref<3x!tpu.dma_semaphore, #tpu.memory_space<semaphore_mem>> -> memref<1x!tpu.dma_semaphore, #tpu.memory_space<semaphore_mem>>
    %402 = tpu.memref_squeeze %401 : memref<1x!tpu.dma_semaphore, #tpu.memory_space<semaphore_mem>> -> memref<!tpu.dma_semaphore, #tpu.memory_space<semaphore_mem>>
    tpu.wait_dma2 semaphore(%402 : memref<!tpu.dma_semaphore, #tpu.memory_space<semaphore_mem>>) src(%arg43 : memref<64x512xf32, #tpu.memory_space<any>>) dst(%arg47 : memref<64x512xf32, #tpu.memory_space<vmem>>)
    %c0_234 = arith.constant 0 : index
    %c0_235 = arith.constant 0 : index
    %403 = vector.load %arg47[%c0_234, %c0_235] : memref<64x512xf32, #tpu.memory_space<vmem>>, vector<64x512xf32>
    %cst_236 = arith.constant dense<0.000000e+00> : vector<2x512xf32>
    %404 = tpu.matmul %393, %403, %cst_236 {dimension_numbers = #tpu.dot_dimension_numbers<[1], [0], [0], [1], [0, 0, 1, 1], [], []>} : vector<2x64xf32>, vector<64x512xf32>, vector<2x512xf32> -> vector<2x512xf32>
    %405 = vector.broadcast %394 : vector<1x512xf32> to vector<2x512xf32>
    %406 = arith.addf %404, %405 : vector<2x512xf32>
    %cst_237 = arith.constant dense<0.000000e+00> : vector<2xf32>
    %407 = vector.multi_reduction <add>, %406, %cst_237 [1] : vector<2x512xf32> to vector<2xf32>
    %408 = vector.shape_cast %407 : vector<2xf32> to vector<2x1xf32>
    %cst_238 = arith.constant 5.120000e+02 : f32
    %409 = vector.broadcast %cst_238 : f32 to vector<2x1xf32>
    %410 = arith.divf %408, %409 : vector<2x1xf32>
    %411 = vector.broadcast %410 : vector<2x1xf32> to vector<2x512xf32>
    %412 = arith.subf %406, %411 : vector<2x512xf32>
    %413 = arith.mulf %412, %412 : vector<2x512xf32>
    %cst_239 = arith.constant dense<0.000000e+00> : vector<2xf32>
    %414 = vector.multi_reduction <add>, %413, %cst_239 [1] : vector<2x512xf32> to vector<2xf32>
    %415 = vector.shape_cast %414 : vector<2xf32> to vector<2x1xf32>
    %cst_240 = arith.constant 5.120000e+02 : f32
    %416 = vector.broadcast %cst_240 : f32 to vector<2x1xf32>
    %417 = arith.divf %415, %416 : vector<2x1xf32>
    %418 = vector.broadcast %410 : vector<2x1xf32> to vector<2x512xf32>
    %419 = arith.subf %406, %418 : vector<2x512xf32>
    %cst_241 = arith.constant 9.99999974E-6 : f32
    %420 = vector.broadcast %cst_241 : f32 to vector<2x1xf32>
    %421 = arith.addf %417, %420 : vector<2x1xf32>
    %422 = math.rsqrt %421 : vector<2x1xf32>
    %423 = vector.broadcast %422 : vector<2x1xf32> to vector<2x512xf32>
    %424 = arith.mulf %419, %423 : vector<2x512xf32>
    %425 = vector.broadcast %395 : vector<1x512xf32> to vector<2x512xf32>
    %426 = arith.mulf %424, %425 : vector<2x512xf32>
    %427 = vector.broadcast %396 : vector<1x512xf32> to vector<2x512xf32>
    %428 = arith.addf %426, %427 : vector<2x512xf32>
    %cst_242 = arith.constant 5.000000e-01 : f32
    %429 = vector.broadcast %cst_242 : f32 to vector<2x512xf32>
    %430 = arith.mulf %429, %428 : vector<2x512xf32>
    %cst_243 = arith.constant 0.707106769 : f32
    %431 = vector.broadcast %cst_243 : f32 to vector<2x512xf32>
    %432 = arith.mulf %428, %431 : vector<2x512xf32>
    %cst_244 = arith.constant 0.000000e+00 : f32
    %433 = vector.broadcast %cst_244 : f32 to vector<2x512xf32>
    %434 = arith.cmpf olt, %432, %433 : vector<2x512xf32>
    %cst_245 = arith.constant -1.000000e+00 : f32
    %cst_246 = arith.constant 1.000000e+00 : f32
    %435 = vector.broadcast %cst_245 : f32 to vector<2x512xf32>
    %436 = vector.broadcast %cst_246 : f32 to vector<2x512xf32>
    %437 = arith.select %434, %435, %436 : vector<2x512xi1>, vector<2x512xf32>
    %438 = math.absf %432 : vector<2x512xf32>
    %cst_247 = arith.constant 0.327591091 : f32
    %439 = vector.broadcast %cst_247 : f32 to vector<2x512xf32>
    %440 = arith.mulf %439, %438 : vector<2x512xf32>
    %cst_248 = arith.constant 1.000000e+00 : f32
    %441 = vector.broadcast %cst_248 : f32 to vector<2x512xf32>
    %442 = arith.addf %441, %440 : vector<2x512xf32>
    %cst_249 = arith.constant 1.000000e+00 : f32
    %443 = vector.broadcast %cst_249 : f32 to vector<2x512xf32>
    %444 = arith.divf %443, %442 : vector<2x512xf32>
    %cst_250 = arith.constant 1.06140542 : f32
    %445 = vector.broadcast %cst_250 : f32 to vector<2x512xf32>
    %446 = arith.mulf %445, %444 : vector<2x512xf32>
    %cst_251 = arith.constant -1.45315206 : f32
    %447 = vector.broadcast %cst_251 : f32 to vector<2x512xf32>
    %448 = arith.addf %446, %447 : vector<2x512xf32>
    %449 = arith.mulf %448, %444 : vector<2x512xf32>
    %cst_252 = arith.constant 1.42141378 : f32
    %450 = vector.broadcast %cst_252 : f32 to vector<2x512xf32>
    %451 = arith.addf %449, %450 : vector<2x512xf32>
    %452 = arith.mulf %451, %444 : vector<2x512xf32>
    %cst_253 = arith.constant -0.284496725 : f32
    %453 = vector.broadcast %cst_253 : f32 to vector<2x512xf32>
    %454 = arith.addf %452, %453 : vector<2x512xf32>
    %455 = arith.mulf %454, %444 : vector<2x512xf32>
    %cst_254 = arith.constant 0.254829586 : f32
    %456 = vector.broadcast %cst_254 : f32 to vector<2x512xf32>
    %457 = arith.addf %455, %456 : vector<2x512xf32>
    %458 = arith.mulf %457, %444 : vector<2x512xf32>
    %cst_255 = arith.constant 0.000000e+00 : f32
    %459 = vector.broadcast %cst_255 : f32 to vector<2x512xf32>
    %460 = arith.subf %459, %438 : vector<2x512xf32>
    %461 = arith.mulf %460, %438 : vector<2x512xf32>
    %462 = math.exp %461 : vector<2x512xf32>
    %463 = arith.mulf %458, %462 : vector<2x512xf32>
    %cst_256 = arith.constant 1.000000e+00 : f32
    %464 = vector.broadcast %cst_256 : f32 to vector<2x512xf32>
    %465 = arith.subf %464, %463 : vector<2x512xf32>
    %466 = arith.mulf %437, %465 : vector<2x512xf32>
    %cst_257 = arith.constant 1.000000e+00 : f32
    %467 = vector.broadcast %cst_257 : f32 to vector<2x512xf32>
    %468 = arith.addf %467, %466 : vector<2x512xf32>
    %469 = arith.mulf %430, %468 : vector<2x512xf32>
    %c1_i32_258 = arith.constant 1 : i32
    %470 = tpu.memref_slice %arg50[%c1_i32_258] : memref<3x!tpu.dma_semaphore, #tpu.memory_space<semaphore_mem>> -> memref<1x!tpu.dma_semaphore, #tpu.memory_space<semaphore_mem>>
    %471 = tpu.memref_squeeze %470 : memref<1x!tpu.dma_semaphore, #tpu.memory_space<semaphore_mem>> -> memref<!tpu.dma_semaphore, #tpu.memory_space<semaphore_mem>>
    tpu.wait_dma2 semaphore(%471 : memref<!tpu.dma_semaphore, #tpu.memory_space<semaphore_mem>>) src(%arg44 : memref<512x512xf32, #tpu.memory_space<any>>) dst(%arg48 : memref<512x512xf32, #tpu.memory_space<vmem>>)
    %c0_259 = arith.constant 0 : index
    %c0_260 = arith.constant 0 : index
    %472 = vector.load %arg48[%c0_259, %c0_260] : memref<512x512xf32, #tpu.memory_space<vmem>>, vector<512x512xf32>
    %cst_261 = arith.constant dense<0.000000e+00> : vector<2x512xf32>
    %473 = tpu.matmul %469, %472, %cst_261 {dimension_numbers = #tpu.dot_dimension_numbers<[1], [0], [0], [1], [0, 0, 1, 1], [], []>} : vector<2x512xf32>, vector<512x512xf32>, vector<2x512xf32> -> vector<2x512xf32>
    %474 = vector.broadcast %397 : vector<1x512xf32> to vector<2x512xf32>
    %475 = arith.addf %473, %474 : vector<2x512xf32>
    %cst_262 = arith.constant dense<0.000000e+00> : vector<2xf32>
    %476 = vector.multi_reduction <add>, %475, %cst_262 [1] : vector<2x512xf32> to vector<2xf32>
    %477 = vector.shape_cast %476 : vector<2xf32> to vector<2x1xf32>
    %cst_263 = arith.constant 5.120000e+02 : f32
    %478 = vector.broadcast %cst_263 : f32 to vector<2x1xf32>
    %479 = arith.divf %477, %478 : vector<2x1xf32>
    %480 = vector.broadcast %479 : vector<2x1xf32> to vector<2x512xf32>
    %481 = arith.subf %475, %480 : vector<2x512xf32>
    %482 = arith.mulf %481, %481 : vector<2x512xf32>
    %cst_264 = arith.constant dense<0.000000e+00> : vector<2xf32>
    %483 = vector.multi_reduction <add>, %482, %cst_264 [1] : vector<2x512xf32> to vector<2xf32>
    %484 = vector.shape_cast %483 : vector<2xf32> to vector<2x1xf32>
    %cst_265 = arith.constant 5.120000e+02 : f32
    %485 = vector.broadcast %cst_265 : f32 to vector<2x1xf32>
    %486 = arith.divf %484, %485 : vector<2x1xf32>
    %487 = vector.broadcast %479 : vector<2x1xf32> to vector<2x512xf32>
    %488 = arith.subf %475, %487 : vector<2x512xf32>
    %cst_266 = arith.constant 9.99999974E-6 : f32
    %489 = vector.broadcast %cst_266 : f32 to vector<2x1xf32>
    %490 = arith.addf %486, %489 : vector<2x1xf32>
    %491 = math.rsqrt %490 : vector<2x1xf32>
    %492 = vector.broadcast %491 : vector<2x1xf32> to vector<2x512xf32>
    %493 = arith.mulf %488, %492 : vector<2x512xf32>
    %494 = vector.broadcast %398 : vector<1x512xf32> to vector<2x512xf32>
    %495 = arith.mulf %493, %494 : vector<2x512xf32>
    %496 = vector.broadcast %399 : vector<1x512xf32> to vector<2x512xf32>
    %497 = arith.addf %495, %496 : vector<2x512xf32>
    %cst_267 = arith.constant 5.000000e-01 : f32
    %498 = vector.broadcast %cst_267 : f32 to vector<2x512xf32>
    %499 = arith.mulf %498, %497 : vector<2x512xf32>
    %cst_268 = arith.constant 0.707106769 : f32
    %500 = vector.broadcast %cst_268 : f32 to vector<2x512xf32>
    %501 = arith.mulf %497, %500 : vector<2x512xf32>
    %cst_269 = arith.constant 0.000000e+00 : f32
    %502 = vector.broadcast %cst_269 : f32 to vector<2x512xf32>
    %503 = arith.cmpf olt, %501, %502 : vector<2x512xf32>
    %cst_270 = arith.constant -1.000000e+00 : f32
    %cst_271 = arith.constant 1.000000e+00 : f32
    %504 = vector.broadcast %cst_270 : f32 to vector<2x512xf32>
    %505 = vector.broadcast %cst_271 : f32 to vector<2x512xf32>
    %506 = arith.select %503, %504, %505 : vector<2x512xi1>, vector<2x512xf32>
    %507 = math.absf %501 : vector<2x512xf32>
    %cst_272 = arith.constant 0.327591091 : f32
    %508 = vector.broadcast %cst_272 : f32 to vector<2x512xf32>
    %509 = arith.mulf %508, %507 : vector<2x512xf32>
    %cst_273 = arith.constant 1.000000e+00 : f32
    %510 = vector.broadcast %cst_273 : f32 to vector<2x512xf32>
    %511 = arith.addf %510, %509 : vector<2x512xf32>
    %cst_274 = arith.constant 1.000000e+00 : f32
    %512 = vector.broadcast %cst_274 : f32 to vector<2x512xf32>
    %513 = arith.divf %512, %511 : vector<2x512xf32>
    %cst_275 = arith.constant 1.06140542 : f32
    %514 = vector.broadcast %cst_275 : f32 to vector<2x512xf32>
    %515 = arith.mulf %514, %513 : vector<2x512xf32>
    %cst_276 = arith.constant -1.45315206 : f32
    %516 = vector.broadcast %cst_276 : f32 to vector<2x512xf32>
    %517 = arith.addf %515, %516 : vector<2x512xf32>
    %518 = arith.mulf %517, %513 : vector<2x512xf32>
    %cst_277 = arith.constant 1.42141378 : f32
    %519 = vector.broadcast %cst_277 : f32 to vector<2x512xf32>
    %520 = arith.addf %518, %519 : vector<2x512xf32>
    %521 = arith.mulf %520, %513 : vector<2x512xf32>
    %cst_278 = arith.constant -0.284496725 : f32
    %522 = vector.broadcast %cst_278 : f32 to vector<2x512xf32>
    %523 = arith.addf %521, %522 : vector<2x512xf32>
    %524 = arith.mulf %523, %513 : vector<2x512xf32>
    %cst_279 = arith.constant 0.254829586 : f32
    %525 = vector.broadcast %cst_279 : f32 to vector<2x512xf32>
    %526 = arith.addf %524, %525 : vector<2x512xf32>
    %527 = arith.mulf %526, %513 : vector<2x512xf32>
    %cst_280 = arith.constant 0.000000e+00 : f32
    %528 = vector.broadcast %cst_280 : f32 to vector<2x512xf32>
    %529 = arith.subf %528, %507 : vector<2x512xf32>
    %530 = arith.mulf %529, %507 : vector<2x512xf32>
    %531 = math.exp %530 : vector<2x512xf32>
    %532 = arith.mulf %527, %531 : vector<2x512xf32>
    %cst_281 = arith.constant 1.000000e+00 : f32
    %533 = vector.broadcast %cst_281 : f32 to vector<2x512xf32>
    %534 = arith.subf %533, %532 : vector<2x512xf32>
    %535 = arith.mulf %506, %534 : vector<2x512xf32>
    %cst_282 = arith.constant 1.000000e+00 : f32
    %536 = vector.broadcast %cst_282 : f32 to vector<2x512xf32>
    %537 = arith.addf %536, %535 : vector<2x512xf32>
    %538 = arith.mulf %499, %537 : vector<2x512xf32>
    %c2_i32_283 = arith.constant 2 : i32
    %539 = tpu.memref_slice %arg50[%c2_i32_283] : memref<3x!tpu.dma_semaphore, #tpu.memory_space<semaphore_mem>> -> memref<1x!tpu.dma_semaphore, #tpu.memory_space<semaphore_mem>>
    %540 = tpu.memref_squeeze %539 : memref<1x!tpu.dma_semaphore, #tpu.memory_space<semaphore_mem>> -> memref<!tpu.dma_semaphore, #tpu.memory_space<semaphore_mem>>
    tpu.wait_dma2 semaphore(%540 : memref<!tpu.dma_semaphore, #tpu.memory_space<semaphore_mem>>) src(%arg45 : memref<512x128xf32, #tpu.memory_space<any>>) dst(%arg49 : memref<512x128xf32, #tpu.memory_space<vmem>>)
    %c0_284 = arith.constant 0 : index
    %c0_285 = arith.constant 0 : index
    %541 = vector.load %arg49[%c0_284, %c0_285] : memref<512x128xf32, #tpu.memory_space<vmem>>, vector<512x128xf32>
    %cst_286 = arith.constant dense<0.000000e+00> : vector<2x128xf32>
    %542 = tpu.matmul %538, %541, %cst_286 {dimension_numbers = #tpu.dot_dimension_numbers<[1], [0], [0], [1], [0, 0, 1, 1], [], []>} : vector<2x512xf32>, vector<512x128xf32>, vector<2x128xf32> -> vector<2x128xf32>
    %543 = vector.broadcast %400 : vector<1x128xf32> to vector<2x128xf32>
    %544 = arith.addf %542, %543 : vector<2x128xf32>
    %c0_287 = arith.constant 0 : index
    %c0_288 = arith.constant 0 : index
    %545 = vector.load %arg46[%c0_287, %c0_288] : memref<2x128xf32, #tpu.memory_space<vmem>>, vector<2x128xf32>
    tpu.vector_store %arg46[%c0_287, %c0_288], %544 {strides = array<i32>} : memref<2x128xf32, #tpu.memory_space<vmem>>, vector<2x128xf32>,
    return
  }
}

</mosaic_0001>

<bundles_post_ra>
// kernel: _forward_impl.1
= control target key start
LH: loop header
LB: loop body
LE: loop exit
PB: predicated region body
PF: predicated region fallthrough
CT: control target
= control target key end

     0   :  { %s3825_s6 = smov 1   ;;  %s3826_s10 = smov 2   ;;  %s4982_s0 = inlined_call_operand.smem [shape: u32[47], index: -1, kind: input, shape index: {}] }
   0x1   :  { %s3886_s5 = sld [smem:[%s4982_s0]]   ;;  %s3827_s14 = smov 3  }
   0x2   :  { %s3891_s9 = sld [smem:[%s4982_s0 + %s3825_s6]]   ;;  %s3828_s18 = smov 4  }
   0x3   :  { %s3896_s13 = sld [smem:[%s4982_s0 + %s3826_s10]]   ;;  %s3829_s22 = smov 5  }
   0x4   :  { %s3901_s17 = sld [smem:[%s4982_s0 + %s3827_s14]]   ;;  %s3830_s26 = smov 6  }
   0x5   :  { %s3906_s21 = sld [smem:[%s4982_s0 + %s3828_s18]]   ;;  %s3831_s30 = smov 7  }
   0x6   :  { %s3911_s25 = sld [smem:[%s4982_s0 + %s3829_s22]]   ;;  %s3832_s4 = smov 8  }
   0x7   :  { %s3916_s29 = sld [smem:[%s4982_s0 + %s3830_s26]]   ;;  %s3833_s10 = smov 9  }
   0x8   :  { %s3921_s3 = sld [smem:[%s4982_s0 + %s3831_s30]]   ;;  %s3834_s15 = smov 10  }
   0x9   :  { %s3926_s8 = sld [smem:[%s4982_s0 + %s3832_s4]]   ;;  %s3835_s20 = smov 11  }
   0xa   :  { %s3931_s14 = sld [smem:[%s4982_s0 + %s3833_s10]]   ;;  %s3836_s26 = smov 12  }
   0xb   :  { %s3936_s19 = sld [smem:[%s4982_s0 + %s3834_s15]]   ;;  %s3837_s1 = smov 13  }
   0xc   :  { %s3941_s24 = sld [smem:[%s4982_s0 + %s3835_s20]]   ;;  %s3838_s7 = smov 14  }
   0xd   :  { %s3946_s30 = sld [smem:[%s4982_s0 + %s3836_s26]]   ;;  %s3839_s15 = smov 15  }
   0xe   :  { %s3951_s6 = sld [smem:[%s4982_s0 + %s3837_s1]]   ;;  %s3840_s22 = smov 16  }
   0xf   :  { %s3956_s12 = sld [smem:[%s4982_s0 + %s3838_s7]]   ;;  %s3841_s28 = smov 17  }
  0x10   :  { %s3961_s20 = sld [smem:[%s4982_s0 + %s3839_s15]]   ;;  %s3842_s7 = smov 18  }
  0x11   :  { %s3966_s27 = sld [smem:[%s4982_s0 + %s3840_s22]]   ;;  %s3843_s15 = smov 19  }
  0x12   :  { %s3971_s4 = sld [smem:[%s4982_s0 + %s3841_s28]]   ;;  %s3844_s22 = smov 20  }
  0x13   :  { %s3845_s28 = smov 21  }
  0x14   :  { %4995 = sst [smem:[#allocation19_spill]] %s3951_s6 }
  0x15   :  { %s3976_s6 = sld [smem:[%s4982_s0 + %s3842_s7]]   ;;  %s3846_s7 = smov 22  }
  0x16   :  { %4996 = sst [smem:[#allocation20_spill]] %s3961_s20 }
  0x17   :  { %4997 = sst [smem:[#allocation21_spill]] %s3966_s27 }
  0x18   :  { %4998 = sst [smem:[#allocation22_spill]] %s3971_s4 }
  0x19   :  { %s3981_s20 = sld [smem:[%s4982_s0 + %s3843_s15]]   ;;  %s3847_s15 = smov 23  }
  0x1a   :  { %s3986_s27 = sld [smem:[%s4982_s0 + %s3844_s22]]   ;;  %s3848_s22 = smov 24  }
  0x1b   :  { %4999 = sst [smem:[#allocation23_spill]] %s3976_s6 }
  0x1c   :  { %s3991_s4 = sld [smem:[%s4982_s0 + %s3845_s28]]   ;;  %s3849_s28 = smov 25  }
  0x1d   :  { %s3996_s6 = sld [smem:[%s4982_s0 + %s3846_s7]]   ;;  %s3850_s7 = smov 26  }
  0x1f   :  { %5000 = sst [smem:[#allocation24_spill]] %s3981_s20 }
  0x20   :  { %5001 = sst [smem:[#allocation25_spill]] %s3986_s27 }
  0x21   :  { %s4001_s20 = sld [smem:[%s4982_s0 + %s3847_s15]]   ;;  %s3851_s15 = smov 27  }
  0x22   :  { %5002 = sst [smem:[#allocation26_spill]] %s3991_s4 }
  0x23   :  { %5003 = sst [smem:[#allocation27_spill]] %s3996_s6 }
  0x24   :  { %s4006_s27 = sld [smem:[%s4982_s0 + %s3848_s22]]   ;;  %s3852_s22 = smov 28  }
  0x25   :  { %s4011_s4 = sld [smem:[%s4982_s0 + %s3849_s28]]   ;;  %s3853_s28 = smov 29  }
  0x26   :  { %s4016_s6 = sld [smem:[%s4982_s0 + %s3850_s7]]   ;;  %s3854_s7 = smov 30  }
  0x27   :  { %5004 = sst [smem:[#allocation28_spill]] %s4001_s20 }
  0x28   :  { %s4021_s20 = sld [smem:[%s4982_s0 + %s3851_s15]]   ;;  %s3855_s15 = smov 31  }
  0x2a   :  { %5005 = sst [smem:[#allocation29_spill]] %s4006_s27 }
  0x2b   :  { %5006 = sst [smem:[#allocation30_spill]] %s4011_s4 }
  0x2c   :  { %5007 = sst [smem:[#allocation31_spill]] %s4016_s6 }
  0x2d   :  { %s4026_s27 = sld [smem:[%s4982_s0 + %s3852_s22]]   ;;  %s3856_s22 = smov 32  }
  0x2e   :  { %5008 = sst [smem:[#allocation32_spill]] %s4021_s20 }
  0x2f   :  { %s4031_s4 = sld [smem:[%s4982_s0 + %s3853_s28]]   ;;  %s3857_s28 = smov 33  }
  0x30   :  { %s4036_s6 = sld [smem:[%s4982_s0 + %s3854_s7]]   ;;  %s3858_s7 = smov 34  }
  0x31   :  { %s4041_s20 = sld [smem:[%s4982_s0 + %s3855_s15]]   ;;  %s3859_s15 = smov 35  }
  0x33   :  { %5009 = sst [smem:[#allocation33_spill]] %s4026_s27 }
  0x34   :  { %s4046_s27 = sld [smem:[%s4982_s0 + %s3856_s22]]   ;;  %s3860_s22 = smov 36  }
  0x35   :  { %5010 = sst [smem:[#allocation34_spill]] %s4031_s4 }
  0x36   :  { %5011 = sst [smem:[#allocation35_spill]] %s4036_s6 }
  0x37   :  { %5012 = sst [smem:[#allocation36_spill]] %s4041_s20 }
  0x38   :  { %s4051_s4 = sld [smem:[%s4982_s0 + %s3857_s28]]   ;;  %s3861_s28 = smov 37  }
  0x39   :  { %s4056_s6 = sld [smem:[%s4982_s0 + %s3858_s7]]   ;;  %s3862_s7 = smov 38  }
  0x3a   :  { %5013 = sst [smem:[#allocation37_spill]] %s4046_s27 }
  0x3b   :  { %s4061_s20 = sld [smem:[%s4982_s0 + %s3859_s15]]   ;;  %s3863_s15 = smov 39  }
  0x3c   :  { %s4066_s27 = sld [smem:[%s4982_s0 + %s3860_s22]]   ;;  %s3864_s22 = smov 40  }
  0x3e   :  { %5014 = sst [smem:[#allocation38_spill]] %s4051_s4 }
  0x3f   :  { %5015 = sst [smem:[#allocation39_spill]] %s4056_s6 }
  0x40   :  { %s4071_s4 = sld [smem:[%s4982_s0 + %s3861_s28]]   ;;  %s3865_s28 = smov 41  }
  0x41   :  { %5016 = sst [smem:[#allocation40_spill]] %s4061_s20 }
  0x42   :  { %5017 = sst [smem:[#allocation41_spill]] %s4066_s27 }
  0x43   :  { %s4076_s6 = sld [smem:[%s4982_s0 + %s3862_s7]]   ;;  %s3866_s7 = smov 42  }
  0x44   :  { %s4081_s20 = sld [smem:[%s4982_s0 + %s3863_s15]]   ;;  %s3867_s15 = smov 43  }
  0x45   :  { %s4086_s27 = sld [smem:[%s4982_s0 + %s3864_s22]]   ;;  %s3868_s22 = smov 44  }
  0x46   :  { %5018 = sst [smem:[#allocation42_spill]] %s4071_s4 }
  0x47   :  { %s4091_s4 = sld [smem:[%s4982_s0 + %s3865_s28]]   ;;  %s3869_s28 = smov 45  }
  0x49   :  { %5019 = sst [smem:[#allocation43_spill]] %s4076_s6 }
  0x4a   :  { %5020 = sst [smem:[#allocation44_spill]] %s4081_s20 }
  0x4b   :  { %5021 = sst [smem:[#allocation45_spill]] %s4086_s27 }
  0x4c   :  { %s4096_s6 = sld [smem:[%s4982_s0 + %s3866_s7]]   ;;  %s3870_s7 = smov 46  }
  0x4d   :  { %5022 = sst [smem:[#allocation46_spill]] %s4091_s4 }
  0x4e   :  { %s4101_s20 = sld [smem:[%s4982_s0 + %s3867_s15]]  }
  0x4f   :  { %s4106_s27 = sld [smem:[%s4982_s0 + %s3868_s22]]  }
  0x50   :  { %s4111_s4 = sld [smem:[%s4982_s0 + %s3869_s28]]  }
  0x52   :  { %5023 = sst [smem:[#allocation47_spill]] %s4096_s6 }
  0x53   :  { %s4116_s6 = sld [smem:[%s4982_s0 + %s3870_s7]]  }
  0x54   :  { %98 = vsyncpa [#allocation7], 0  ;;  %v4119_v0 = vld [vmem:[%s4101_s20] sm:$0xff]  ;;  %v4122_v1 = vld [vmem:[%s4101_s20 + $0x8] sm:$0xff]  ;;  %vm297_vm0 = vcmask 523264  }
  0x55   :  { %v4125_v2 = vld [vmem:[%s4101_s20 + $0x10] sm:$0xff]  ;;  %v4128_v3 = vld [vmem:[%s4101_s20 + $0x18] sm:$0xff]  ;;  %v4131_v4 = vld [vmem:[%s4101_s20 + $0x20] sm:$0xff] }
  0x56   :  { %5024 = vst [vmem:[#allocation48_spill] sm:$0xff] %v4128_v3  ;;  %v4134_v5 = vld [vmem:[%s4101_s20 + $0x28] sm:$0xff]  ;;  %v4137_v6 = vld [vmem:[%s4101_s20 + $0x30] sm:$0xff]  ;;  %v4140_v7 = vld [vmem:[%s4101_s20 + $0x38] sm:$0xff] }
  0x57   :  { %v4143_v8 = vld [vmem:[%s4101_s20 + $0x40] sm:$0xff]  ;;  %v4146_v9 = vld [vmem:[%s4101_s20 + $0x48] sm:$0xff]  ;;  %v4149_v10 = vld [vmem:[%s4101_s20 + $0x50] sm:$0xff] }
  0x58   :  { %v4152_v11 = vld [vmem:[%s4101_s20 + $0x58] sm:$0xff]  ;;  %v4155_v12 = vld [vmem:[%s4101_s20 + $0x60] sm:$0xff]  ;;  %v4158_v13 = vld [vmem:[%s4101_s20 + $0x68] sm:$0xff] }
  0x59   :  { %v4161_v14 = vld [vmem:[%s4101_s20 + $0x70] sm:$0xff]  ;;  %v4164_v15 = vld [vmem:[%s4101_s20 + $0x78] sm:$0xff]  ;;  %v4167_v16 = vld [vmem:[%s4101_s20 + $0x80] sm:$0xff] }
  0x5a   :  { %v4170_v17 = vld [vmem:[%s4101_s20 + $0x88] sm:$0xff]  ;;  %v4173_v18 = vld [vmem:[%s4101_s20 + $0x90] sm:$0xff]  ;;  %v4176_v19 = vld [vmem:[%s4101_s20 + $0x98] sm:$0xff] }
  0x5b   :  { %v4179_v20 = vld [vmem:[%s4101_s20 + $0xa0] sm:$0xff]  ;;  %v4182_v21 = vld [vmem:[%s4101_s20 + $0xa8] sm:$0xff]  ;;  %v4185_v22 = vld [vmem:[%s4101_s20 + $0xb0] sm:$0xff] }
  0x5c   :  { %v4188_v23 = vld [vmem:[%s4101_s20 + $0xb8] sm:$0xff]  ;;  %v4191_v24 = vld [vmem:[%s4101_s20 + $0xc0] sm:$0xff]  ;;  %v4194_v25 = vld [vmem:[%s4101_s20 + $0xc8] sm:$0xff] }
  0x5d   :  { %v4197_v26 = vld [vmem:[%s4101_s20 + $0xd0] sm:$0xff]  ;;  %v4200_v27 = vld [vmem:[%s4101_s20 + $0xd8] sm:$0xff]  ;;  %v4203_v28 = vld [vmem:[%s4101_s20 + $0xe0] sm:$0xff] }
  0x5e   :  { %v4206_v29 = vld [vmem:[%s4101_s20 + $0xe8] sm:$0xff]  ;;  %v4209_v30 = vld [vmem:[%s4101_s20 + $0xf0] sm:$0xff]  ;;  %v4212_v31 = vld [vmem:[%s4101_s20 + $0xf8] sm:$0xff] }
  0x5f   :  { %v295_v32 = vld [vmem:[%s3886_s5] sm:$0xff]  ;;  %v296_v33 = vld [vmem:[%s3886_s5 + $0x8] sm:$0xff] }
  0x60   :  { %v298_v34 = vsel %vm297_vm0, %v295_v32, 0.0  ;;  %v301_v35 = vsel %vm297_vm0, %v296_v33, 0.0 }
  0x61   :  { %299 = vadd.xlane.f32.xlu0 %v298_v34 }
  0x69   :  { %302 = vadd.xlane.f32.xlu0 %v301_v35 }
  0x6a   :  { %264 = vsyncadd [#allocation5], 4096  ;;  %v3871_v36 = vmov 64.0   ;;  %v399_v53 = vld [vmem:[%s3906_s21 + $0x38] sm:$0xff]  ;;  %v398_v56 = vld [vmem:[%s3906_s21 + $0x30] sm:$0xff]  ;;  %vm503_vm8 = vcmask 261120  }
  0x6b   :  { %3635 = vrcp.f32 %v3871_v36  ;;  %v440_v54 = vld [vmem:[%s3916_s29 + $0x38] sm:$0xff]  ;;  %418 = vmatpush.msra.mxu0 %v399_v53  ;;  %v439_v57 = vld [vmem:[%s3916_s29 + $0x30] sm:$0xff]  ;;  %v397_v59 = vld [vmem:[%s3906_s21 + $0x28] sm:$0xff]  ;;  %vm539_vm9 = vcmask 130048   ;;  %s5025_s0 = sld [smem:[#allocation19_spill]]  ;;  %s273_s23 = sshll.u32 %s4106_s27, 4  ;;  %s274_s23 = int_to_ptr.hbm [resolvable:$true] %s273_s23 }
  0x6c   :  { %v475_v55 = vld [vmem:[%s3926_s8 + $0x38] sm:$0xff]  ;;  %453 = vmatpush.msra.mxu1 %v440_v54  ;;  %v474_v58 = vld [vmem:[%s3926_s8 + $0x30] sm:$0xff]  ;;  %v438_v60 = vld [vmem:[%s3916_s29 + $0x28] sm:$0xff]  ;;  %s5026_s5 = sld [smem:[#allocation21_spill]]  ;;  %s3873_s26 = smov [#allocation3]  }
  0x6d   :  { %488 = vmatpush.msra.mxu2 %v475_v55  ;;  %419 = vmatpush.msra.mxu0 %v398_v56  ;;  %v473_v61 = vld [vmem:[%s3926_s8 + $0x28] sm:$0xff]  ;;  %v396_v62 = vld [vmem:[%s3906_s21 + $0x20] sm:$0xff]  ;;  %v436_v34 = vld [vmem:[%s3916_s29 + $0x18] sm:$0xff]  ;;  %s5040_s20 = sld [smem:[#allocation33_spill]]  ;;  %s275_s28 = sshll.u32 %s3873_s26, 4  ;;  %s276_s28 = int_to_ptr.vmem [resolvable:$true] %s275_s28 }
  0x6e   :  { %454 = vmatpush.msra.mxu1 %v439_v57  ;;  %v437_v63 = vld [vmem:[%s3916_s29 + $0x20] sm:$0xff]  ;;  %v471_v35 = vld [vmem:[%s3926_s8 + $0x18] sm:$0xff]  ;;  %v394_v36 = vld [vmem:[%s3906_s21 + $0x10] sm:$0xff]  ;;  %s5041_s15 = sld [smem:[#allocation34_spill]]  ;;  %s287_s1 = sshll.u32 %s4111_s4, 4  ;;  %s288_s1 = int_to_ptr.hbm [resolvable:$true] %s287_s1 }
  0x6f   :  { %489 = vmatpush.msra.mxu2 %v474_v58  ;;  %420 = vmatpush.msra.mxu0 %v397_v59  ;;  %v3442_v54 = vld [vmem:[%s3906_s21 + $0x68] sm:$0xff]  ;;  %v3441_v57 = vld [vmem:[%s3906_s21 + $0x60] sm:$0xff]  ;;  %v3440_v59 = vld [vmem:[%s3906_s21 + $0x58] sm:$0xff]  ;;  %s5042_s16 = sld [smem:[#allocation37_spill]]  ;;  %s3745_s2 = sshra.s32 %s274_s23, 4  ;;  %s3746_s2 = int_to_ptr.hbm [resolvable:$true] %s3745_s2 }
  0x70   :  { %455 = vmatpush.msra.mxu1 %v438_v60  ;;  %v3453_v55 = vld [vmem:[%s3916_s29 + $0x68] sm:$0xff]  ;;  %v3452_v58 = vld [vmem:[%s3916_s29 + $0x60] sm:$0xff]  ;;  %v3451_v60 = vld [vmem:[%s3916_s29 + $0x58] sm:$0xff]  ;;  %s5043_s18 = sld [smem:[#allocation36_spill]]  ;;  %s3747_s7 = scalar_lea.hbm %s3746_s2, 2048 }
  0x71   :  { %v3636_v37 = vpop.eup %3635  ;;  %490 = vmatpush.msra.mxu2 %v473_v61  ;;  %421 = vmatpush.msra.mxu0 %v396_v62  ;;  %v3439_v61 = vld [vmem:[%s3906_s21 + $0x50] sm:$0xff]  ;;  %s5045_s22 = sld [smem:[#allocation38_spill]]  ;;  %p3748_p0 = scmp.ne.s32.totalorder %s3746_s2, %s3747_s7 }
  0x72   :  { %v305_v38 = vmul.f32 64.0, %v3636_v37  ;;  %vm309_vm1 = vweird.f32 %v3636_v37  ;;  %456 = vmatpush.msra.mxu1 %v437_v63  ;;  %v3450_v62 = vld [vmem:[%s3916_s29 + $0x50] sm:$0xff]  ;;  %s3749_s10 = scalar_lea.hbm %s4106_s27, 2048  ;;  %p3750_p1 = scmp.lt.s32.totalorder %s3746_s2, %s4106_s27 }
  0x73   :  { %p3751_p2 = scmp.lt.s32.totalorder %s3749_s10, %s3747_s7 }
  0x74   :  { %v306_v39 = vsub.f32 1.0, %v305_v38  ;;  %457 = vmatpush.msra.mxu1 %v436_v34  ;;  %v470_v38 = vld [vmem:[%s3926_s8 + $0x10] sm:$0xff] }
  0x75   :  { %p3752_p3 = por %p3751_p2, %p3750_p1 }
  0x76   :  { %v307_v40 = vmul.f32 %v3636_v37, %v306_v39  ;;  %v393_v39 = vld [vmem:[%s3906_s21 + $0x8] sm:$0xff] }
  0x77   :  { %p3753_p4 = pnand %p3752_p3, %p3748_p0 }
  0x78   :  { %v308_v41 = vadd.f32 %v3636_v37, %v307_v40  ;;  %v434_v40 = vld [vmem:[%s3916_s29 + $0x8] sm:$0xff] }
  0x7a   :  { %v4218_v42 = vsel %vm309_vm1, %v3636_v37, %v308_v41  ;;  %v435_v37 = vld [vmem:[%s3916_s29 + $0x10] sm:$0xff]  ;;  %v469_v41 = vld [vmem:[%s3926_s8 + $0x8] sm:$0xff] }
  0x7b   :  { %458 = vmatpush.msra.mxu1 %v435_v37 }
  0x7d   :  { %459 = vmatpush.msra.mxu1 %v434_v40 }
  0xd4   :  { %v300_v43 = vpop.xlane.xlu0 %299 }
  0xd5   :  { %v311_v44 = vmul.f32 %v4218_v42, %v300_v43  ;;  %v392_v43 = vld [vmem:[%s3906_s21] sm:$0xff] }
  0xd7   :  { %v4221_v45 = vsub.f32 %v295_v32, %v311_v44  ;;  %v472_v32 = vld [vmem:[%s3926_s8 + $0x20] sm:$0xff] }
  0xd8   :  { %491 = vmatpush.msra.mxu2 %v472_v32  ;;  %v433_v44 = vld [vmem:[%s3916_s29] sm:$0xff]  ;;  %v3438_v32 = vld [vmem:[%s3906_s21 + $0x48] sm:$0xff] }
  0xd9   :  { %v315_v46 = vmul.f32 %v4221_v45, %v4221_v45  ;;  %460 = vmatpush.msra.mxu1 %v433_v44 }
  0xda   :  { %492 = vmatpush.msra.mxu2 %v471_v35  ;;  %v3437_v35 = vld [vmem:[%s3906_s21 + $0x40] sm:$0xff] }
  0xdb   :  { %v317_v47 = vsel %vm297_vm0, %v315_v46, 0.0  ;;  %v468_v46 = vld [vmem:[%s3926_s8] sm:$0xff] }
  0xdc   :  { %318 = vadd.xlane.f32.xlu1 %v317_v47  ;;  %v303_v48 = vpop.xlane.xlu0 %302  ;;  %493 = vmatpush.msra.mxu2 %v470_v38  ;;  %v3444_v47 = vld [vmem:[%s3906_s21 + $0x78] sm:$0xff] }
  0xdd   :  { %v312_v49 = vmul.f32 %v4218_v42, %v303_v48  ;;  %v3455_v48 = vld [vmem:[%s3916_s29 + $0x78] sm:$0xff]  ;;  %677 = vmatpush.msrb.mxu1 %v3444_v47 }
  0xde   :  { %494 = vmatpush.msra.mxu2 %v469_v41 }
  0xdf   :  { %v4227_v50 = vsub.f32 %v296_v33, %v312_v49  ;;  %v395_v33 = vld [vmem:[%s3906_s21 + $0x18] sm:$0xff] }
  0xe0   :  { %422 = vmatpush.msra.mxu0 %v395_v33  ;;  %495 = vmatpush.msra.mxu2 %v468_v46  ;;  %v3449_v33 = vld [vmem:[%s3916_s29 + $0x48] sm:$0xff] }
  0xe1   :  { %v316_v51 = vmul.f32 %v4227_v50, %v4227_v50 }
  0xe2   :  { %423 = vmatpush.msra.mxu0 %v394_v36  ;;  %714 = vmatpush.msrb.mxu2 %v3455_v48  ;;  %v3448_v36 = vld [vmem:[%s3916_s29 + $0x40] sm:$0xff] }
  0xe3   :  { %v320_v52 = vsel %vm297_vm0, %v316_v51, 0.0  ;;  %v3443_v51 = vld [vmem:[%s3906_s21 + $0x70] sm:$0xff]  ;;  %v3607_v48 = vld [vmem:[%s3896_s13] ss:$0 sm:$0xff]  ;;  %s5027_s13 = sld [smem:[#allocation20_spill]] }
  0xe4   :  { %321 = vadd.xlane.f32.xlu1 %v320_v52  ;;  %424 = vmatpush.msra.mxu0 %v393_v39  ;;  %v3454_v52 = vld [vmem:[%s3916_s29 + $0x70] sm:$0xff]  ;;  %s5029_s21 = sld [smem:[#allocation25_spill]] }
  0xe5   :  { %678 = vmatpush.msrb.mxu1 %v3443_v51  ;;  %715 = vmatpush.msrb.mxu2 %v3454_v52  ;;  %s5031_s29 = sld [smem:[#allocation29_spill]] }
  0xe6   :  { %425 = vmatpush.msra.mxu0 %v392_v43 }
  0xe7   :  { %679 = vmatpush.msrb.mxu1 %v3442_v54  ;;  %716 = vmatpush.msrb.mxu2 %v3453_v55 }
  0xe9   :  { %680 = vmatpush.msrb.mxu1 %v3441_v57  ;;  %717 = vmatpush.msrb.mxu2 %v3452_v58 }
  0xeb   :  { %681 = vmatpush.msrb.mxu1 %v3440_v59  ;;  %718 = vmatpush.msrb.mxu2 %v3451_v60 }
  0xed   :  { %682 = vmatpush.msrb.mxu1 %v3439_v61  ;;  %719 = vmatpush.msrb.mxu2 %v3450_v62  ;;  %v619_v62 = vld [vmem:[%s3936_s19 + $0x10] sm:$0xff] }
  0xef   :  { %683 = vmatpush.msrb.mxu1 %v3438_v32  ;;  %720 = vmatpush.msrb.mxu2 %v3449_v33  ;;  %v617_v33 = vld [vmem:[%s3936_s19] sm:$0xff] }
  0xf1   :  { %684 = vmatpush.msrb.mxu1 %v3437_v35  ;;  %721 = vmatpush.msrb.mxu2 %v3448_v36 }
 0x14f   :  { %v319_v49 = vpop.xlane.xlu1 %318 }
 0x150   :  { %v323_v53 = vmul.f32 %v319_v49, %v4218_v42 }
 0x152   :  { %v325_v56 = vadd.f32 1e-05, %v323_v53  ;;  %v3608_v53 = vld [vmem:[%s3901_s17] ss:$0 sm:$0xff]  ;;  %s5028_s17 = sld [smem:[#allocation22_spill]] }
 0x154   :  { %3637 = vrsqrt.f32 %v325_v56  ;;  %vm333_vm3 = vweird.f32 %v325_v56 }
 0x157   :  { %v322_v63 = vpop.xlane.xlu1 %321 }
 0x158   :  { %v324_v34 = vmul.f32 %v322_v63, %v4218_v42  ;;  %v618_v63 = vld [vmem:[%s3936_s19 + $0x8] sm:$0xff] }
 0x15a   :  { %v3638_v37 = vpop.eup %3637  ;;  %v326_v38 = vadd.f32 1e-05, %v324_v34  ;;  %v3610_v34 = vld [vmem:[%s3921_s3] ss:$0 sm:$0xff] }
 0x15b   :  { %v328_v39 = vmul.f32 %v3638_v37, %v325_v56  ;;  %vm334_vm2 = vweird.f32 %v3638_v37 }
 0x15c   :  { %3639 = vrsqrt.f32 %v326_v38  ;;  %vm335_vm4 = vmor %vm333_vm3, %vm334_vm2  ;;  %vm343_vm6 = vweird.f32 %v326_v38 }
 0x15d   :  { %v329_v40 = vmul.f32 %v3638_v37, %v328_v39  ;;  %v3609_v39 = vld [vmem:[%s3911_s25] ss:$0 sm:$0xff] }
 0x15f   :  { %v330_v41 = vmul.f32 0.5, %v329_v40 }
 0x161   :  { %v331_v43 = vsub.f32 1.5, %v330_v41  ;;  %v3611_v41 = vld [vmem:[%s3931_s14] ss:$0 sm:$0xff] }
 0x162   :  { %v3640_v44 = vpop.eup %3639 }
 0x163   :  { %v332_v46 = vmul.f32 %v3638_v37, %v331_v43  ;;  %v338_v47 = vmul.f32 %v3640_v44, %v326_v38  ;;  %vm344_vm5 = vweird.f32 %v3640_v44 }
 0x164   :  { %vm345_vm7 = vmor %vm343_vm6, %vm344_vm5 }
 0x165   :  { %v336_v49 = vsel %vm335_vm4, %v3638_v37, %v332_v46  ;;  %v339_v51 = vmul.f32 %v3640_v44, %v338_v47 }
 0x166   :  { %v347_v52 = vmul.f32 %v336_v49, %v4221_v45 }
 0x167   :  { %v340_v54 = vmul.f32 0.5, %v339_v51 }
 0x168   :  { %v352_v55 = vmul.f32 %v3607_v48, %v347_v52  ;;  %v3613_v52 = vld [vmem:[%s3921_s3 + $0x1] ss:$0 sm:$0xff]  ;;  %s5032_s3 = sld [smem:[#allocation23_spill]] }
 0x169   :  { %v341_v57 = vsub.f32 1.5, %v340_v54 }
 0x16a   :  { %v4277_v58 = vadd.f32 %v3608_v53, %v352_v55 }
 0x16b   :  { %v342_v59 = vmul.f32 %v3640_v44, %v341_v57  ;;  %v4317_v57 = vld [vmem:[%s3891_s9] sm:$0xff] }
 0x16c   :  { %3423 = vmatmul.msk.f32.vlgmr.msra.gmra.mxu0 %vm297_vm0, %v4277_v58  ;;  %3425 = vmatmul.msk.f32.vlgmr.msra.gmra.mxu1 %vm297_vm0, %v4277_v58 }
 0x16d   :  { %v346_v45 = vsel %vm345_vm7, %v3640_v44, %v342_v59  ;;  %3427 = vmatmul.msk.f32.vlgmr.msra.gmra.mxu2 %vm297_vm0, %v4277_v58 }
 0x16e   :  { %v348_v56 = vmul.f32 %v346_v45, %v4227_v50  ;;  %v620_v50 = vld [vmem:[%s3936_s19 + $0x18] sm:$0xff] }
 0x16f   :  { %639 = vmatpush.msrb.mxu0 %v620_v50 }
 0x170   :  { %v353_v60 = vmul.f32 %v3607_v48, %v348_v56 }
 0x171   :  { %640 = vmatpush.msrb.mxu0 %v619_v62 }
 0x172   :  { %v4286_v61 = vadd.f32 %v3608_v53, %v353_v60  ;;  %v4322_v60 = vld [vmem:[%s3891_s9 + $0x8] sm:$0xff] }
 0x173   :  { %641 = vmatpush.msrb.mxu0 %v618_v63 }
 0x174   :  { %3424 = vmatmul.msk.f32.gmra.mxu0 %vm297_vm0, %v4286_v61  ;;  %3426 = vmatmul.msk.f32.gmra.mxu1 %vm297_vm0, %v4286_v61 }
 0x175   :  { %3428 = vmatmul.msk.f32.gmra.mxu2 %vm297_vm0, %v4286_v61  ;;  %642 = vmatpush.msrb.mxu0 %v617_v33 }
 0x17c   :  { %3446 = vmatmul.msk.f32.vlgmr.msrb.gmra.mxu1 %vm297_vm0, %v4277_v58 }
 0x17d   :  { %3457 = vmatmul.msk.f32.vlgmr.msrb.gmra.mxu2 %vm297_vm0, %v4277_v58 }
 0x184   :  { %3447 = vmatmul.msk.f32.gmra.mxu1 %vm297_vm0, %v4286_v61 }
 0x185   :  { %3458 = vmatmul.msk.f32.gmra.mxu2 %vm297_vm0, %v4286_v61 }
 0x1e9   :  { %v462_v32 = vpop.f32.mrf.mxu1  ;;  %v427_v38 = vpop.f32.mrf.mxu0 }
 0x1ea   :  { %v463_v40 = vadd.f32 %v3610_v34, %v462_v32  ;;  %v428_v46 = vadd.f32 %v3609_v39, %v427_v38 }
 0x1f0   :  { %v497_v35 = vpop.f32.mrf.mxu2 }
 0x1f1   :  { %v465_v36 = vpop.f32.mrf.mxu1  ;;  %v498_v47 = vadd.f32 %v3611_v41, %v497_v35  ;;  %v430_v48 = vpop.f32.mrf.mxu0 }
 0x1f2   :  { %v466_v37 = vadd.f32 %v3610_v34, %v465_v36  ;;  %v431_v51 = vadd.f32 %v3609_v39, %v430_v48  ;;  %v3462_v48 = vld [vmem:[%s3926_s8 + $0x58] sm:$0xff] }
 0x1f4   :  { %3429 = vmatpush.xpose.msk.msra.mxu3 %vm503_vm8, %v466_v37 }
 0x1f8   :  { %v500_v43 = vpop.f32.mrf.mxu2  ;;  %3430 = vmatpush.xpose.msk.msra.mxu3 %vm503_vm8, %v463_v40 }
 0x1f9   :  { %v501_v44 = vadd.f32 %v3611_v41, %v500_v43  ;;  %v3466_v43 = vld [vmem:[%s3926_s8 + $0x78] sm:$0xff] }
 0x1fb   :  { %3431 = vmatmul.msk.f32.vlgmr.msra.gmra.mxu3 %vm503_vm8, %v428_v46  ;;  %v3464_v46 = vld [vmem:[%s3926_s8 + $0x68] sm:$0xff] }
 0x1fc   :  { %608 = vmatpush.msrb.mxu3 %v501_v44  ;;  %v3465_v44 = vld [vmem:[%s3926_s8 + $0x70] sm:$0xff] }
 0x1fe   :  { %609 = vmatpush.msrb.mxu3 %v498_v47  ;;  %v3463_v47 = vld [vmem:[%s3926_s8 + $0x60] sm:$0xff] }
 0x200   :  { %v723_v49 = vpop.f32.mrf.mxu2  ;;  %751 = vmatpush.msra.mxu3 %v3466_v43 }
 0x201   :  { %v724_v55 = vadd.f32 %v3613_v52, %v723_v49  ;;  %v3461_v49 = vld [vmem:[%s3926_s8 + $0x50] sm:$0xff] }
 0x202   :  { %752 = vmatpush.msra.mxu3 %v3465_v44 }
 0x203   :  { %3432 = vmatmul.msk.f32.gmra.mxu3 %vm503_vm8, %v431_v51  ;;  %v3460_v51 = vld [vmem:[%s3926_s8 + $0x48] sm:$0xff] }
 0x204   :  { %753 = vmatpush.msra.mxu3 %v3464_v46 }
 0x206   :  { %754 = vmatpush.msra.mxu3 %v3463_v47 }
 0x208   :  { %v726_v53 = vpop.f32.mrf.mxu2  ;;  %755 = vmatpush.msra.mxu3 %v3462_v48 }
 0x209   :  { %v727_v54 = vadd.f32 %v3613_v52, %v726_v53  ;;  %v3459_v53 = vld [vmem:[%s3926_s8 + $0x40] sm:$0xff]  ;;  %s5033_s8 = sld [smem:[#allocation24_spill]] }
 0x20a   :  { %756 = vmatpush.msra.mxu3 %v3461_v49 }
 0x20b   :  { %3470 = vmatpush.xpose.msk.msra.mxu0 %vm503_vm8, %v727_v54 }
 0x20c   :  { %757 = vmatpush.msra.mxu3 %v3460_v51 }
 0x20e   :  { %758 = vmatpush.msra.mxu3 %v3459_v53  ;;  %v686_v53 = vpop.f32.mrf.mxu1 }
 0x20f   :  { %3471 = vmatpush.xpose.msk.msra.mxu0 %vm503_vm8, %v724_v55 }
 0x27e   :  { %v533_v59 = vpop.f32.mrf.mxu3 }
 0x27f   :  { %v534_v45 = vadd.f32 %v533_v59, %v4317_v57 }
 0x281   :  { %v540_v56 = vsel %vm539_vm9, %v534_v45, -inf }
 0x282   :  { %541 = vmax.xlane.f32.xlu2 %v540_v56 }
 0x286   :  { %v536_v50 = vpop.f32.mrf.mxu3 }
 0x287   :  { %v537_v62 = vadd.f32 %v536_v50, %v4322_v60 }
 0x289   :  { %v543_v63 = vsel %vm539_vm9, %v537_v62, -inf }
 0x28a   :  { %544 = vmax.xlane.f32.xlu2 %v543_v63 }
 0x2f5   :  { %v542_v32 = vpop.xlane.xlu2 %541 }
 0x2f6   :  { %v546_v33 = vsub.f32 %v534_v45, %v542_v32 }
 0x2f8   :  { %v548_v34 = vmul.f32 1.442695, %v546_v33 }
 0x2fa   :  { %3641 = vpow2.f32 %v548_v34 }
 0x2fd   :  { %v545_v35 = vpop.xlane.xlu2 %544 }
 0x2fe   :  { %v547_v36 = vsub.f32 %v537_v62, %v545_v35 }
 0x300   :  { %v3642_v37 = vpop.eup %3641  ;;  %v550_v38 = vmul.f32 1.442695, %v547_v36 }
 0x301   :  { %v552_v39 = vsel %vm539_vm9, %v3642_v37, 0.0 }
 0x302   :  { %3643 = vpow2.f32 %v550_v38  ;;  %553 = vadd.xlane.f32.xlu0 %v552_v39 }
 0x308   :  { %v3644_v40 = vpop.eup %3643 }
 0x309   :  { %v555_v41 = vsel %vm539_vm9, %v3644_v40, 0.0 }
 0x30a   :  { %556 = vadd.xlane.f32.xlu1 %v555_v41 }
 0x375   :  { %v554_v52 = vpop.xlane.xlu0 %553 }
 0x376   :  { %3645 = vrcp.f32 %v554_v52  ;;  %v569_v56 = vand.u32 2147483648, %v554_v52  ;;  %v567_v62 = vand.u32 2147483647, %v554_v52  ;;  %vm563_vm11 = vweird.f32 %v554_v52 }
 0x378   :  { %v570_v33 = vor.u32 1.1754944e-38, %v569_v56  ;;  %vm568_vm13 = vcmp.eq.f32.partialorder %v567_v62, 8.507059e+37  ;;  %v3614_v56 = vld [vmem:[%s3931_s14 + $0x1] ss:$0 sm:$0xff]  ;;  %s5034_s14 = sld [smem:[#allocation28_spill]] }
 0x37c   :  { %v3646_v54 = vpop.eup %3645 }
 0x37d   :  { %v559_v55 = vmul.f32 %v3646_v54, %v554_v52  ;;  %v557_v59 = vpop.xlane.xlu1 %556  ;;  %vm564_vm10 = vweird.f32 %v3646_v54 }
 0x37e   :  { %3647 = vrcp.f32 %v557_v59  ;;  %vm565_vm12 = vmor %vm563_vm11, %vm564_vm10  ;;  %v584_v41 = vand.u32 2147483648, %v557_v59  ;;  %v582_v44 = vand.u32 2147483647, %v557_v59  ;;  %vm578_vm15 = vweird.f32 %v557_v59 }
 0x37f   :  { %v560_v45 = vsub.f32 1.0, %v559_v55 }
 0x380   :  { %v585_v47 = vor.u32 1.1754944e-38, %v584_v41  ;;  %vm583_vm2 = vcmp.eq.f32.partialorder %v582_v44, 8.507059e+37 }
 0x381   :  { %v561_v50 = vmul.f32 %v3646_v54, %v560_v45 }
 0x383   :  { %v562_v63 = vadd.f32 %v3646_v54, %v561_v50 }
 0x384   :  { %v3648_v32 = vpop.eup %3647 }
 0x385   :  { %v574_v34 = vmul.f32 %v3648_v32, %v557_v59  ;;  %v566_v35 = vsel %vm565_vm12, %v3646_v54, %v562_v63  ;;  %vm579_vm14 = vweird.f32 %v3648_v32  ;;  %v3612_v54 = vld [vmem:[%s3911_s25 + $0x1] ss:$0 sm:$0xff]  ;;  %s5030_s25 = sld [smem:[#allocation27_spill]] }
 0x386   :  { %v571_v36 = vsel %vm568_vm13, %v570_v33, %v566_v35  ;;  %vm580_vm1 = vmor %vm578_vm15, %vm579_vm14  ;;  %v687_v55 = vadd.f32 %v3612_v54, %v686_v53  ;;  %v3478_v53 = vld [vmem:[%s3936_s19 + $0x30] sm:$0xff] }
 0x387   :  { %v575_v38 = vsub.f32 1.0, %v574_v34  ;;  %v572_v39 = vmul.f32 %v3642_v37, %v571_v36 }
 0x389   :  { %v576_v43 = vmul.f32 %v3648_v32, %v575_v38  ;;  %3433 = vmatmul.msk.f32.vlgmr.msrb.gmra.mxu3 %vm539_vm9, %v572_v39 }
 0x38b   :  { %v577_v46 = vadd.f32 %v3648_v32, %v576_v43 }
 0x38d   :  { %v581_v48 = vsel %vm580_vm1, %v3648_v32, %v577_v46 }
 0x38e   :  { %v586_v49 = vsel %vm583_vm2, %v585_v47, %v581_v48 }
 0x38f   :  { %v587_v51 = vmul.f32 %v3644_v40, %v586_v49  ;;  %v689_v40 = vpop.f32.mrf.mxu1 }
 0x390   :  { %v690_v45 = vadd.f32 %v3612_v54, %v689_v40  ;;  %v3477_v54 = vld [vmem:[%s3936_s19 + $0x28] sm:$0xff] }
 0x391   :  { %3434 = vmatmul.msk.f32.gmra.mxu3 %vm539_vm9, %v587_v51 }
 0x399   :  { %3468 = vmatmul.msk.f32.vlgmr.msra.gmra.mxu3 %vm297_vm0, %v4277_v58 }
 0x3a1   :  { %3469 = vmatmul.msk.f32.gmra.mxu3 %vm297_vm0, %v4286_v61 }
 0x40c   :  { %v611_v37 = vpop.f32.mrf.mxu3 }
 0x40d   :  { %3435 = vmatmul.msk.f32.vlgmr.msrb.gmra.mxu0 %vm503_vm8, %v611_v37 }
 0x414   :  { %v614_v52 = vpop.f32.mrf.mxu3 }
 0x415   :  { %3436 = vmatmul.msk.f32.gmra.mxu0 %vm503_vm8, %v614_v52  ;;  %v3479_v52 = vld [vmem:[%s3936_s19 + $0x38] sm:$0xff] }
 0x416   :  { %901 = vmatpush.msra.mxu2 %v3479_v52 }
 0x418   :  { %902 = vmatpush.msra.mxu2 %v3478_v53 }
 0x41a   :  { %903 = vmatpush.msra.mxu2 %v3477_v54  ;;  %v3476_v54 = vld [vmem:[%s3936_s19 + $0x20] sm:$0xff]  ;;  %s5035_s19 = sld [smem:[#allocation30_spill]] }
 0x41c   :  { %v760_v59 = vpop.f32.mrf.mxu3  ;;  %904 = vmatpush.msra.mxu2 %v3476_v54  ;;  %v364_v54 = vld [vmem:[%s3956_s12] sm:$0xff] }
 0x41d   :  { %3472 = vmatmul.msk.f32.vlgmr.msra.gmra.mxu0 %vm503_vm8, %v687_v55  ;;  %v761_v63 = vadd.f32 %v3614_v56, %v760_v59 }
 0x424   :  { %v763_v50 = vpop.f32.mrf.mxu3 }
 0x425   :  { %v764_v62 = vadd.f32 %v3614_v56, %v763_v50  ;;  %3473 = vmatmul.msk.f32.gmra.mxu0 %vm503_vm8, %v690_v45 }
 0x427   :  { %869 = vmatpush.msra.mxu1 %v764_v62 }
 0x429   :  { %870 = vmatpush.msra.mxu1 %v761_v63 }
 0x48a   :  { %v4348_v32 = vpop.f32.mrf.mxu0 }
 0x492   :  { %v4350_v33 = vpop.f32.mrf.mxu0 }
 0x49a   :  { %v795_v34 = vpop.f32.mrf.mxu0 }
 0x49b   :  { %v796_v35 = vadd.f32 %v795_v34, %v4317_v57 }
 0x49d   :  { %v801_v36 = vsel %vm539_vm9, %v796_v35, -inf }
 0x49e   :  { %802 = vmax.xlane.f32.xlu2 %v801_v36 }
 0x4a2   :  { %v798_v38 = vpop.f32.mrf.mxu0 }
 0x4a3   :  { %v799_v39 = vadd.f32 %v798_v38, %v4322_v60 }
 0x4a5   :  { %v804_v41 = vsel %vm539_vm9, %v799_v39, -inf }
 0x4a6   :  { %805 = vmax.xlane.f32.xlu0 %v804_v41 }
 0x511   :  { %v803_v43 = vpop.xlane.xlu2 %802 }
 0x512   :  { %v807_v44 = vsub.f32 %v796_v35, %v803_v43 }
 0x514   :  { %v809_v46 = vmul.f32 1.442695, %v807_v44 }
 0x516   :  { %3649 = vpow2.f32 %v809_v46 }
 0x519   :  { %v806_v47 = vpop.xlane.xlu0 %805 }
 0x51a   :  { %v808_v48 = vsub.f32 %v799_v39, %v806_v47 }
 0x51c   :  { %v3650_v49 = vpop.eup %3649  ;;  %v811_v57 = vmul.f32 1.442695, %v808_v48 }
 0x51d   :  { %v813_v51 = vsel %vm539_vm9, %v3650_v49, 0.0 }
 0x51e   :  { %3651 = vpow2.f32 %v811_v57  ;;  %814 = vadd.xlane.f32.xlu1 %v813_v51 }
 0x524   :  { %v3652_v37 = vpop.eup %3651 }
 0x525   :  { %v816_v60 = vsel %vm539_vm9, %v3652_v37, 0.0 }
 0x526   :  { %817 = vadd.xlane.f32.xlu2 %v816_v60 }
 0x591   :  { %v815_v55 = vpop.xlane.xlu1 %814 }
 0x592   :  { %3653 = vrcp.f32 %v815_v55  ;;  %v830_v50 = vand.u32 2147483648, %v815_v55  ;;  %v828_v63 = vand.u32 2147483647, %v815_v55  ;;  %vm824_vm4 = vweird.f32 %v815_v55 }
 0x594   :  { %v831_v36 = vor.u32 1.1754944e-38, %v830_v50  ;;  %vm829_vm6 = vcmp.eq.f32.partialorder %v828_v63, 8.507059e+37 }
 0x598   :  { %v3654_v59 = vpop.eup %3653 }
 0x599   :  { %v820_v40 = vmul.f32 %v3654_v59, %v815_v55  ;;  %v818_v45 = vpop.xlane.xlu2 %817  ;;  %vm825_vm3 = vweird.f32 %v3654_v59 }
 0x59a   :  { %3655 = vrcp.f32 %v818_v45  ;;  %vm826_vm5 = vmor %vm824_vm4, %vm825_vm3  ;;  %v845_v46 = vand.u32 2147483648, %v818_v45  ;;  %v843_v48 = vand.u32 2147483647, %v818_v45  ;;  %vm839_vm10 = vweird.f32 %v818_v45 }
 0x59b   :  { %v821_v56 = vsub.f32 1.0, %v820_v40 }
 0x59c   :  { %v846_v51 = vor.u32 1.1754944e-38, %v845_v46  ;;  %vm844_vm12 = vcmp.eq.f32.partialorder %v843_v48, 8.507059e+37  ;;  %v370_v48 = vld [vmem:[%s3956_s12 + $0x30] sm:$0xff] }
 0x59d   :  { %v822_v62 = vmul.f32 %v3654_v59, %v821_v56 }
 0x59f   :  { %v823_v34 = vadd.f32 %v3654_v59, %v822_v62 }
 0x5a0   :  { %v3656_v35 = vpop.eup %3655 }
 0x5a1   :  { %v827_v38 = vsel %vm826_vm5, %v3654_v59, %v823_v34  ;;  %v835_v39 = vmul.f32 %v3656_v35, %v818_v45  ;;  %vm840_vm7 = vweird.f32 %v3656_v35  ;;  %v3615_v59 = vld [vmem:[%s3941_s24] ss:$0 sm:$0xff]  ;;  %s5036_s24 = sld [smem:[#allocation26_spill]] }
 0x5a2   :  { %v832_v41 = vsel %vm829_vm6, %v831_v36, %v827_v38  ;;  %vm841_vm11 = vmor %vm839_vm10, %vm840_vm7  ;;  %v653_v40 = vadd.f32 %v3615_v59, %v4348_v32 }
 0x5a3   :  { %v836_v43 = vsub.f32 1.0, %v835_v39  ;;  %v833_v44 = vmul.f32 %v3650_v49, %v832_v41 }
 0x5a5   :  { %v837_v47 = vmul.f32 %v3656_v35, %v836_v43  ;;  %3474 = vmatmul.msk.f32.vlgmr.msra.gmra.mxu1 %vm539_vm9, %v833_v44 }
 0x5a7   :  { %v838_v57 = vadd.f32 %v3656_v35, %v837_v47  ;;  %v371_v47 = vld [vmem:[%s3956_s12 + $0x38] sm:$0xff] }
 0x5a8   :  { %987 = vmatpush.msrb.mxu3 %v371_v47 }
 0x5a9   :  { %v842_v60 = vsel %vm841_vm11, %v3656_v35, %v838_v57  ;;  %v369_v57 = vld [vmem:[%s3956_s12 + $0x28] sm:$0xff] }
 0x5aa   :  { %v847_v52 = vsel %vm844_vm12, %v846_v51, %v842_v60  ;;  %988 = vmatpush.msrb.mxu3 %v370_v48  ;;  %v368_v51 = vld [vmem:[%s3956_s12 + $0x20] sm:$0xff]  ;;  %v367_v60 = vld [vmem:[%s3956_s12 + $0x18] sm:$0xff] }
 0x5ab   :  { %v848_v53 = vmul.f32 %v3652_v37, %v847_v52  ;;  %v654_v37 = vadd.f32 %v3615_v59, %v4350_v33  ;;  %v366_v52 = vld [vmem:[%s3956_s12 + $0x10] sm:$0xff] }
 0x5ac   :  { %989 = vmatpush.msrb.mxu3 %v369_v57 }
 0x5ad   :  { %3475 = vmatmul.msk.f32.gmra.mxu1 %vm539_vm9, %v848_v53  ;;  %v365_v53 = vld [vmem:[%s3956_s12 + $0x8] sm:$0xff]  ;;  %s5039_s12 = sld [smem:[#allocation35_spill]] }
 0x5ae   :  { %990 = vmatpush.msrb.mxu3 %v368_v51 }
 0x5b0   :  { %991 = vmatpush.msrb.mxu3 %v367_v60 }
 0x5b2   :  { %992 = vmatpush.msrb.mxu3 %v366_v52 }
 0x5b4   :  { %993 = vmatpush.msrb.mxu3 %v365_v53  ;;  %v388_v53 = vld [vmem:[%s5026_s5 + $0x78] sm:$0xff] }
 0x5b5   :  { %1085 = vmatpush.msrb.mxu0 %v388_v53 }
 0x5b6   :  { %994 = vmatpush.msrb.mxu3 %v364_v54  ;;  %v387_v54 = vld [vmem:[%s5026_s5 + $0x70] sm:$0xff] }
 0x5b7   :  { %1086 = vmatpush.msrb.mxu0 %v387_v54 }
 0x622   :  { %v872_v49 = vpop.f32.mrf.mxu1 }
 0x623   :  { %3480 = vmatmul.msk.f32.vlgmr.msra.gmra.mxu2 %vm503_vm8, %v872_v49 }
 0x62a   :  { %v875_v55 = vpop.f32.mrf.mxu1 }
 0x62b   :  { %3481 = vmatmul.msk.f32.gmra.mxu2 %vm503_vm8, %v875_v55 }
 0x6a6   :  { %v906_v45 = vpop.f32.mrf.mxu2 }
 0x6a7   :  { %v912_v56 = vadd.f32 %v906_v45, %v653_v40 }
 0x6a9   :  { %v914_v50 = vadd.f32 %v912_v56, %v4277_v58 }
 0x6ab   :  { %v916_v62 = vsel %vm297_vm0, %v914_v50, 0.0 }
 0x6ac   :  { %917 = vadd.xlane.f32.xlu0 %v916_v62 }
 0x6ae   :  { %v909_v63 = vpop.f32.mrf.mxu2 }
 0x6af   :  { %v913_v34 = vadd.f32 %v909_v63, %v654_v37 }
 0x6b1   :  { %v915_v35 = vadd.f32 %v913_v34, %v4286_v61 }
 0x6b3   :  { %v919_v36 = vsel %vm297_vm0, %v915_v35, 0.0 }
 0x6b4   :  { %920 = vadd.xlane.f32.xlu1 %v919_v36 }
 0x71f   :  { %v918_v38 = vpop.xlane.xlu0 %917 }
 0x720   :  { %v922_v32 = vmul.f32 %v918_v38, %v4218_v42 }
 0x722   :  { %v924_v39 = vsub.f32 %v914_v50, %v922_v32  ;;  %v3616_v32 = vld [vmem:[%s3946_s30] ss:$0 sm:$0xff]  ;;  %s5037_s30 = sld [smem:[#allocation31_spill]] }
 0x724   :  { %v926_v58 = vmul.f32 %v924_v39, %v924_v39 }
 0x726   :  { %v928_v41 = vsel %vm297_vm0, %v926_v58, 0.0 }
 0x727   :  { %929 = vadd.xlane.f32.xlu2 %v928_v41  ;;  %v921_v33 = vpop.xlane.xlu1 %920 }
 0x728   :  { %v923_v43 = vmul.f32 %v921_v33, %v4218_v42 }
 0x72a   :  { %v925_v61 = vsub.f32 %v915_v35, %v923_v43  ;;  %v3617_v43 = vld [vmem:[%s5025_s0] ss:$0 sm:$0xff] }
 0x72c   :  { %v927_v44 = vmul.f32 %v925_v61, %v925_v61 }
 0x72e   :  { %v931_v46 = vsel %vm297_vm0, %v927_v44, 0.0 }
 0x72f   :  { %932 = vadd.xlane.f32.xlu0 %v931_v46 }
 0x79a   :  { %v930_v49 = vpop.xlane.xlu2 %929 }
 0x79b   :  { %v934_v55 = vmul.f32 %v930_v49, %v4218_v42  ;;  %v3618_v49 = vld [vmem:[%s5027_s13] ss:$0 sm:$0xff] }
 0x79d   :  { %v936_v59 = vadd.f32 1e-05, %v934_v55  ;;  %v386_v55 = vld [vmem:[%s5026_s5 + $0x68] sm:$0xff] }
 0x79e   :  { %1087 = vmatpush.msrb.mxu0 %v386_v55 }
 0x79f   :  { %3657 = vrsqrt.f32 %v936_v59  ;;  %vm944_vm14 = vweird.f32 %v936_v59 }
 0x7a2   :  { %v933_v40 = vpop.xlane.xlu0 %932 }
 0x7a3   :  { %v935_v45 = vmul.f32 %v933_v40, %v4218_v42 }
 0x7a5   :  { %v3658_v56 = vpop.eup %3657  ;;  %v937_v50 = vadd.f32 1e-05, %v935_v45  ;;  %v384_v45 = vld [vmem:[%s5026_s5 + $0x58] sm:$0xff] }
 0x7a6   :  { %v939_v62 = vmul.f32 %v3658_v56, %v936_v59  ;;  %vm945_vm13 = vweird.f32 %v3658_v56  ;;  %v385_v59 = vld [vmem:[%s5026_s5 + $0x60] sm:$0xff] }
 0x7a7   :  { %3659 = vrsqrt.f32 %v937_v50  ;;  %vm946_vm15 = vmor %vm944_vm14, %vm945_vm13  ;;  %vm954_vm2 = vweird.f32 %v937_v50  ;;  %1088 = vmatpush.msrb.mxu0 %v385_v59 }
 0x7a8   :  { %v940_v37 = vmul.f32 %v3658_v56, %v939_v62 }
 0x7a9   :  { %1089 = vmatpush.msrb.mxu0 %v384_v45 }
 0x7aa   :  { %v941_v63 = vmul.f32 0.5, %v940_v37  ;;  %v382_v37 = vld [vmem:[%s5026_s5 + $0x48] sm:$0xff] }
 0x7ac   :  { %v942_v34 = vsub.f32 1.5, %v941_v63 }
 0x7ad   :  { %v3660_v35 = vpop.eup %3659 }
 0x7ae   :  { %v943_v36 = vmul.f32 %v3658_v56, %v942_v34  ;;  %v949_v38 = vmul.f32 %v3660_v35, %v937_v50  ;;  %vm955_vm1 = vweird.f32 %v3660_v35  ;;  %v383_v50 = vld [vmem:[%s5026_s5 + $0x50] sm:$0xff]  ;;  %v381_v34 = vld [vmem:[%s5026_s5 + $0x40] sm:$0xff] }
 0x7af   :  { %vm956_vm3 = vmor %vm954_vm2, %vm955_vm1  ;;  %1090 = vmatpush.msrb.mxu0 %v383_v50 }
 0x7b0   :  { %v947_v58 = vsel %vm946_vm15, %v3658_v56, %v943_v36  ;;  %v950_v41 = vmul.f32 %v3660_v35, %v949_v38 }
 0x7b1   :  { %v958_v33 = vmul.f32 %v947_v58, %v924_v39  ;;  %1091 = vmatpush.msrb.mxu0 %v382_v37  ;;  %v379_v58 = vld [vmem:[%s5026_s5 + $0x30] sm:$0xff] }
 0x7b2   :  { %v951_v44 = vmul.f32 0.5, %v950_v41 }
 0x7b3   :  { %v963_v46 = vmul.f32 %v3616_v32, %v958_v33  ;;  %1092 = vmatpush.msrb.mxu0 %v381_v34  ;;  %v378_v33 = vld [vmem:[%s5026_s5 + $0x28] sm:$0xff] }
 0x7b4   :  { %v952_v47 = vsub.f32 1.5, %v951_v44  ;;  %v377_v44 = vld [vmem:[%s5026_s5 + $0x20] sm:$0xff] }
 0x7b5   :  { %v4389_v48 = vadd.f32 %v3617_v43, %v963_v46 }
 0x7b6   :  { %v953_v57 = vmul.f32 %v3660_v35, %v952_v47 }
 0x7b7   :  { %3482 = vmatmul.msk.f32.vlgmr.msrb.gmra.mxu3 %vm297_vm0, %v4389_v48 }
 0x7b8   :  { %v957_v51 = vsel %vm956_vm3, %v3660_v35, %v953_v57  ;;  %v376_v57 = vld [vmem:[%s5026_s5 + $0x18] sm:$0xff] }
 0x7b9   :  { %v959_v39 = vmul.f32 %v957_v51, %v925_v61 }
 0x7bb   :  { %v964_v60 = vmul.f32 %v3616_v32, %v959_v39  ;;  %v380_v32 = vld [vmem:[%s5026_s5 + $0x38] sm:$0xff] }
 0x7bc   :  { %1093 = vmatpush.msrb.mxu0 %v380_v32 }
 0x7bd   :  { %v4393_v52 = vadd.f32 %v3617_v43, %v964_v60  ;;  %v375_v60 = vld [vmem:[%s5026_s5 + $0x10] sm:$0xff] }
 0x7be   :  { %1094 = vmatpush.msrb.mxu0 %v379_v58 }
 0x7bf   :  { %3483 = vmatmul.msk.f32.gmra.mxu3 %vm297_vm0, %v4393_v52 }
 0x7c0   :  { %1095 = vmatpush.msrb.mxu0 %v378_v33 }
 0x7c2   :  { %1096 = vmatpush.msrb.mxu0 %v377_v44 }
 0x7c4   :  { %1097 = vmatpush.msrb.mxu0 %v376_v57 }
 0x7c6   :  { %1098 = vmatpush.msrb.mxu0 %v375_v60 }
 0x83a   :  { %v996_v40 = vpop.f32.mrf.mxu3 }
 0x83b   :  { %v4402_v61 = vadd.f32 %v3618_v49, %v996_v40  ;;  %v373_v40 = vld [vmem:[%s5026_s5] sm:$0xff] }
 0x83d   :  { %v4406_v56 = vmul.f32 0.70710677, %v4402_v61 }
 0x83f   :  { %v1010_v62 = vand.u32 2147483647, %v4406_v56  ;;  %vm1006_vm14 = vcmp.lt.f32.partialorder %v4406_v56, 0.0 }
 0x841   :  { %v1012_v63 = vmul.f32 0.3275911, %v1010_v62 }
 0x842   :  { %v999_v35 = vpop.f32.mrf.mxu3 }
 0x843   :  { %v1014_v36 = vadd.f32 1.0, %v1012_v63  ;;  %v4412_v38 = vadd.f32 %v3618_v49, %v999_v35  ;;  %v374_v49 = vld [vmem:[%s5026_s5 + $0x8] sm:$0xff]  ;;  %v1064_v35 = vsub.f32 0.0, %v1010_v62 }
 0x844   :  { %1099 = vmatpush.msrb.mxu0 %v374_v49 }
 0x845   :  { %3661 = vrcp.f32 %v1014_v36  ;;  %v4417_v41 = vmul.f32 0.70710677, %v4412_v38  ;;  %v1027_v54 = vand.u32 2147483648, %v1014_v36  ;;  %v1025_v59 = vand.u32 2147483647, %v1014_v36 }
 0x846   :  { %vm1021_vm5 = vweird.f32 %v1014_v36  ;;  %1100 = vmatpush.msrb.mxu0 %v373_v40  ;;  %v1066_v57 = vmul.f32 %v1064_v35, %v1010_v62 }
 0x847   :  { %v1011_v43 = vand.u32 2147483647, %v4417_v41  ;;  %v1028_v50 = vor.u32 1.1754944e-38, %v1027_v54  ;;  %vm1026_vm7 = vcmp.eq.f32.partialorder %v1025_v59, 8.507059e+37  ;;  %vm1007_vm15 = vcmp.lt.f32.partialorder %v4417_v41, 0.0 }
 0x849   :  { %v1013_v46 = vmul.f32 0.3275911, %v1011_v43  ;;  %v1065_v40 = vsub.f32 0.0, %v1011_v43 }
 0x84b   :  { %v3662_v47 = vpop.eup %3661  ;;  %v1015_v39 = vadd.f32 1.0, %v1013_v46  ;;  %v1067_v35 = vmul.f32 %v1065_v40, %v1011_v43  ;;  %v1002_v43 = vmul.f32 0.5, %v4402_v61 }
 0x84c   :  { %v1017_v51 = vmul.f32 %v3662_v47, %v1014_v36  ;;  %vm1022_vm4 = vweird.f32 %v3662_v47 }
 0x84d   :  { %3663 = vrcp.f32 %v1015_v39  ;;  %vm1023_vm6 = vmor %vm1021_vm5, %vm1022_vm4  ;;  %v1042_v46 = vand.u32 2147483648, %v1015_v39  ;;  %v1040_v60 = vand.u32 2147483647, %v1015_v39  ;;  %vm1036_vm11 = vweird.f32 %v1015_v39 }
 0x84e   :  { %v1018_v53 = vsub.f32 1.0, %v1017_v51 }
 0x84f   :  { %v1043_v54 = vor.u32 1.1754944e-38, %v1042_v46  ;;  %vm1041_vm13 = vcmp.eq.f32.partialorder %v1040_v60, 8.507059e+37  ;;  %v4993_v60 = vmov 1.0  }
 0x850   :  { %v1019_v55 = vmul.f32 %v3662_v47, %v1018_v53 }
 0x852   :  { %v1020_v45 = vadd.f32 %v3662_v47, %v1019_v55  ;;  %v1068_v55 = vmul.f32 1.442695, %v1066_v57 }
 0x853   :  { %v3664_v37 = vpop.eup %3663 }
 0x854   :  { %v1024_v63 = vsel %vm1023_vm6, %v3662_v47, %v1020_v45  ;;  %v1032_v32 = vmul.f32 %v3664_v37, %v1015_v39  ;;  %vm1037_vm10 = vweird.f32 %v3664_v37  ;;  %3665 = vpow2.f32 %v1068_v55 }
 0x855   :  { %v1029_v34 = vsel %vm1026_vm7, %v1028_v50, %v1024_v63  ;;  %vm1038_vm12 = vmor %vm1036_vm11, %vm1037_vm10  ;;  %v1070_v39 = vmul.f32 1.442695, %v1067_v35 }
 0x856   :  { %v1046_v58 = vmul.f32 1.0614054, %v1029_v34  ;;  %v1033_v33 = vsub.f32 1.0, %v1032_v32 }
 0x857   :  { %3667 = vpow2.f32 %v1070_v39 }
 0x858   :  { %v1048_v44 = vadd.f32 -1.4531521, %v1046_v58  ;;  %v1034_v51 = vmul.f32 %v3664_v37, %v1033_v33 }
 0x85a   :  { %v1050_v53 = vmul.f32 %v1048_v44, %v1029_v34  ;;  %v1035_v49 = vadd.f32 %v3664_v37, %v1034_v51 }
 0x85c   :  { %v1052_v36 = vadd.f32 1.4214138, %v1050_v53  ;;  %v1039_v47 = vsel %vm1038_vm12, %v3664_v37, %v1035_v49  ;;  %v3666_v53 = vpop.eup %3665  ;;  %v1008_v49 = vsel %vm1006_vm14, -1.0, %v4993_v60 }
 0x85d   :  { %v1044_v45 = vsel %vm1041_vm13, %v1043_v54, %v1039_v47 }
 0x85e   :  { %v1054_v59 = vmul.f32 %v1052_v36, %v1029_v34  ;;  %v1047_v50 = vmul.f32 1.0614054, %v1044_v45 }
 0x860   :  { %v1056_v63 = vadd.f32 -0.28449672, %v1054_v59  ;;  %v1049_v32 = vadd.f32 -1.4531521, %v1047_v50  ;;  %v3668_v59 = vpop.eup %3667  ;;  %v1009_v50 = vsel %vm1007_vm15, -1.0, %v4993_v60 }
 0x862   :  { %v1058_v62 = vmul.f32 %v1056_v63, %v1029_v34  ;;  %v1051_v58 = vmul.f32 %v1049_v32, %v1044_v45  ;;  %v1003_v32 = vmul.f32 0.5, %v4412_v38 }
 0x864   :  { %v1060_v33 = vadd.f32 0.2548296, %v1058_v62  ;;  %v1053_v44 = vadd.f32 1.4214138, %v1051_v58  ;;  %v3619_v58 = vld [vmem:[%s5028_s17] ss:$0 sm:$0xff] }
 0x866   :  { %v1062_v51 = vmul.f32 %v1060_v33, %v1029_v34  ;;  %v1055_v3 = vmul.f32 %v1053_v44, %v1044_v45 }
 0x868   :  { %v1072_v37 = vmul.f32 %v3666_v53, %v1062_v51  ;;  %v1057_v46 = vadd.f32 -0.28449672, %v1055_v3 }
 0x86a   :  { %v1074_v57 = vsub.f32 1.0, %v1072_v37  ;;  %v1059_v36 = vmul.f32 %v1057_v46, %v1044_v45 }
 0x86c   :  { %v1076_v54 = vmul.f32 %v1074_v57, %v1008_v49  ;;  %v1061_v55 = vadd.f32 0.2548296, %v1059_v36 }
 0x86e   :  { %v1078_v47 = vadd.f32 1.0, %v1076_v54  ;;  %v1063_v34 = vmul.f32 %v1061_v55, %v1044_v45 }
 0x870   :  { %v1080_v40 = vmul.f32 %v1078_v47, %v1002_v43  ;;  %v1073_v56 = vmul.f32 %v3668_v59, %v1063_v34  ;;  %v1202_v43 = vld [vmem:[%s5029_s21 + $0x38] sm:$0xff] }
 0x871   :  { %v1243_v47 = vld [vmem:[%s5030_s25 + $0x38] sm:$0xff]  ;;  %1221 = vmatpush.msrb.mxu1 %v1202_v43  ;;  %v1236_v43 = vld [vmem:[%s5030_s25] sm:$0xff] }
 0x872   :  { %1101 = vmatmul.f32.vlgmr.msrb.gmra.mxu0 %v1080_v40  ;;  %v1075_v3 = vsub.f32 1.0, %v1073_v56  ;;  %v1278_v34 = vld [vmem:[%s5031_s29 + $0x38] sm:$0xff]  ;;  %1256 = vmatpush.msrb.mxu2 %v1243_v47  ;;  %v1201_v40 = vld [vmem:[%s5029_s21 + $0x30] sm:$0xff]  ;;  %v1271_v47 = vld [vmem:[%s5031_s29] sm:$0xff] }
 0x873   :  { %v3505_v59 = vld [vmem:[%s5029_s21 + $0x78] sm:$0xff]  ;;  %1291 = vmatpush.msra.mxu3 %v1278_v34  ;;  %v1242_v56 = vld [vmem:[%s5030_s25 + $0x30] sm:$0xff]  ;;  %1222 = vmatpush.msrb.mxu1 %v1201_v40  ;;  %v3498_v34 = vld [vmem:[%s5029_s21 + $0x40] sm:$0xff] }
 0x874   :  { %v1077_v63 = vmul.f32 %v1075_v3, %v1009_v50  ;;  %1478 = vmatpush.msra.mxu0 %v3505_v59  ;;  %v1277_v3 = vld [vmem:[%s5031_s29 + $0x30] sm:$0xff]  ;;  %1257 = vmatpush.msrb.mxu2 %v1242_v56 }
 0x875   :  { %v3504_v50 = vld [vmem:[%s5029_s21 + $0x70] sm:$0xff]  ;;  %1292 = vmatpush.msra.mxu3 %v1277_v3 }
 0x876   :  { %v1079_v62 = vadd.f32 1.0, %v1077_v63  ;;  %1479 = vmatpush.msra.mxu0 %v3504_v50  ;;  %v1200_v63 = vld [vmem:[%s5029_s21 + $0x28] sm:$0xff] }
 0x877   :  { %1223 = vmatpush.msrb.mxu1 %v1200_v63 }
 0x878   :  { %v1081_v35 = vmul.f32 %v1079_v62, %v1003_v32  ;;  %v1241_v32 = vld [vmem:[%s5030_s25 + $0x28] sm:$0xff] }
 0x879   :  { %v1276_v62 = vld [vmem:[%s5031_s29 + $0x28] sm:$0xff]  ;;  %1258 = vmatpush.msrb.mxu2 %v1241_v32 }
 0x87a   :  { %1104 = vmatmul.f32.gmra.mxu0 %v1081_v35  ;;  %v3503_v35 = vld [vmem:[%s5029_s21 + $0x68] sm:$0xff]  ;;  %1293 = vmatpush.msra.mxu3 %v1276_v62 }
 0x87b   :  { %1480 = vmatpush.msra.mxu0 %v3503_v35 }
 0x8ef   :  { %v1102_v33 = vpop.f32.mrf.mxu0 }
 0x8f0   :  { %v1103_v61 = vadd.f32 %v3619_v58, %v1102_v33  ;;  %v1240_v33 = vld [vmem:[%s5030_s25 + $0x20] sm:$0xff] }
 0x8f1   :  { %1259 = vmatpush.msrb.mxu2 %v1240_v33 }
 0x8f2   :  { %v1108_v45 = vadd.f32 %v1103_v61, %v4389_v48  ;;  %v1275_v61 = vld [vmem:[%s5031_s29 + $0x20] sm:$0xff] }
 0x8f3   :  { %1294 = vmatpush.msra.mxu3 %v1275_v61 }
 0x8f4   :  { %v1110_v44 = vsel %vm297_vm0, %v1108_v45, 0.0 }
 0x8f5   :  { %1111 = vadd.xlane.f32.xlu1 %v1110_v44  ;;  %v1198_v44 = vld [vmem:[%s5029_s21 + $0x18] sm:$0xff] }
 0x8f7   :  { %v1105_v41 = vpop.f32.mrf.mxu0 }
 0x8f8   :  { %v1106_v51 = vadd.f32 %v3619_v58, %v1105_v41  ;;  %v1199_v58 = vld [vmem:[%s5029_s21 + $0x20] sm:$0xff]  ;;  %v1239_v41 = vld [vmem:[%s5030_s25 + $0x18] sm:$0xff] }
 0x8f9   :  { %1224 = vmatpush.msrb.mxu1 %v1199_v58  ;;  %1260 = vmatpush.msrb.mxu2 %v1239_v41 }
 0x8fa   :  { %v1109_v39 = vadd.f32 %v1106_v51, %v4393_v52  ;;  %v1274_v51 = vld [vmem:[%s5031_s29 + $0x18] sm:$0xff] }
 0x8fb   :  { %1225 = vmatpush.msrb.mxu1 %v1198_v44  ;;  %1295 = vmatpush.msra.mxu3 %v1274_v51  ;;  %v3620_v44 = vld [vmem:[%s5032_s3] ss:$0 sm:$0xff] }
 0x8fc   :  { %v1113_v53 = vsel %vm297_vm0, %v1109_v39, 0.0 }
 0x8fd   :  { %1114 = vadd.xlane.f32.xlu2 %v1113_v53  ;;  %v1197_v53 = vld [vmem:[%s5029_s21 + $0x10] sm:$0xff] }
 0x8fe   :  { %1226 = vmatpush.msrb.mxu1 %v1197_v53 }
 0x968   :  { %v1112_v38 = vpop.xlane.xlu1 %1111 }
 0x969   :  { %v1116_v37 = vmul.f32 %v1112_v38, %v4218_v42  ;;  %v1238_v38 = vld [vmem:[%s5030_s25 + $0x10] sm:$0xff] }
 0x96a   :  { %1261 = vmatpush.msrb.mxu2 %v1238_v38 }
 0x96b   :  { %v4438_v46 = vsub.f32 %v1108_v45, %v1116_v37  ;;  %v3502_v45 = vld [vmem:[%s5029_s21 + $0x60] sm:$0xff]  ;;  %v1273_v37 = vld [vmem:[%s5031_s29 + $0x10] sm:$0xff] }
 0x96c   :  { %1481 = vmatpush.msra.mxu0 %v3502_v45  ;;  %1296 = vmatpush.msra.mxu3 %v1273_v37 }
 0x96d   :  { %v1120_v48 = vmul.f32 %v4438_v46, %v4438_v46 }
 0x96f   :  { %v1122_v57 = vsel %vm297_vm0, %v1120_v48, 0.0  ;;  %v3500_v48 = vld [vmem:[%s5029_s21 + $0x50] sm:$0xff] }
 0x970   :  { %1123 = vadd.xlane.f32.xlu0 %v1122_v57  ;;  %v1115_v52 = vpop.xlane.xlu2 %1114  ;;  %v1196_v57 = vld [vmem:[%s5029_s21 + $0x8] sm:$0xff] }
 0x971   :  { %v1117_v49 = vmul.f32 %v1115_v52, %v4218_v42  ;;  %v1237_v52 = vld [vmem:[%s5030_s25 + $0x8] sm:$0xff]  ;;  %1227 = vmatpush.msrb.mxu1 %v1196_v57 }
 0x972   :  { %1262 = vmatpush.msrb.mxu2 %v1237_v52 }
 0x973   :  { %v4444_v36 = vsub.f32 %v1109_v39, %v1117_v49  ;;  %v3501_v39 = vld [vmem:[%s5029_s21 + $0x58] sm:$0xff]  ;;  %v1272_v49 = vld [vmem:[%s5031_s29 + $0x8] sm:$0xff] }
 0x974   :  { %1482 = vmatpush.msra.mxu0 %v3501_v39  ;;  %1297 = vmatpush.msra.mxu3 %v1272_v49  ;;  %v3621_v39 = vld [vmem:[%s5033_s8] ss:$0 sm:$0xff] }
 0x975   :  { %v1121_v54 = vmul.f32 %v4444_v36, %v4444_v36  ;;  %1263 = vmatpush.msrb.mxu2 %v1236_v43 }
 0x976   :  { %1483 = vmatpush.msra.mxu0 %v3500_v48  ;;  %1298 = vmatpush.msra.mxu3 %v1271_v47 }
 0x977   :  { %v1125_v55 = vsel %vm297_vm0, %v1121_v54, 0.0  ;;  %v3499_v54 = vld [vmem:[%s5029_s21 + $0x48] sm:$0xff] }
 0x978   :  { %1126 = vadd.xlane.f32.xlu1 %v1125_v55  ;;  %1484 = vmatpush.msra.mxu0 %v3499_v54  ;;  %v1195_v55 = vld [vmem:[%s5029_s21] sm:$0xff] }
 0x979   :  { %1228 = vmatpush.msrb.mxu1 %v1195_v55 }
 0x97a   :  { %1485 = vmatpush.msra.mxu0 %v3498_v34 }
 0x9e3   :  { %v1124_v59 = vpop.xlane.xlu0 %1123 }
 0x9e4   :  { %v1128_v40 = vmul.f32 %v1124_v59, %v4218_v42  ;;  %v3625_v59 = vld [vmem:[%s5035_s19] ss:$0 sm:$0xff] }
 0x9e6   :  { %v1130_v56 = vadd.f32 1e-05, %v1128_v40 }
 0x9e8   :  { %3669 = vrsqrt.f32 %v1130_v56  ;;  %vm1138_vm2 = vweird.f32 %v1130_v56 }
 0x9eb   :  { %v1127_v3 = vpop.xlane.xlu1 %1126 }
 0x9ec   :  { %v1129_v50 = vmul.f32 %v1127_v3, %v4218_v42 }
 0x9ee   :  { %v3670_v63 = vpop.eup %3669  ;;  %v1131_v62 = vadd.f32 1e-05, %v1129_v50 }
 0x9ef   :  { %v1133_v32 = vmul.f32 %v3670_v63, %v1130_v56  ;;  %vm1139_vm1 = vweird.f32 %v3670_v63 }
 0x9f0   :  { %3671 = vrsqrt.f32 %v1131_v62  ;;  %vm1140_vm3 = vmor %vm1138_vm2, %vm1139_vm1  ;;  %vm1148_vm5 = vweird.f32 %v1131_v62 }
 0x9f1   :  { %v1134_v35 = vmul.f32 %v3670_v63, %v1133_v32  ;;  %v3622_v32 = vld [vmem:[%s5036_s24] ss:$0 sm:$0xff] }
 0x9f3   :  { %v1135_v58 = vmul.f32 0.5, %v1134_v35 }
 0x9f5   :  { %v1136_v33 = vsub.f32 1.5, %v1135_v58  ;;  %v3516_v58 = vld [vmem:[%s5030_s25 + $0x78] sm:$0xff] }
 0x9f6   :  { %v3672_v61 = vpop.eup %3671 }
 0x9f7   :  { %v1137_v45 = vmul.f32 %v3670_v63, %v1136_v33  ;;  %v1143_v41 = vmul.f32 %v3672_v61, %v1131_v62  ;;  %vm1149_vm4 = vweird.f32 %v3672_v61 }
 0x9f8   :  { %vm1150_vm6 = vmor %vm1148_vm5, %vm1149_vm4 }
 0x9f9   :  { %v1141_v51 = vsel %vm1140_vm3, %v3670_v63, %v1137_v45  ;;  %v1144_v38 = vmul.f32 %v3672_v61, %v1143_v41  ;;  %v3514_v45 = vld [vmem:[%s5030_s25 + $0x68] sm:$0xff] }
 0x9fa   :  { %v1152_v53 = vmul.f32 %v1141_v51, %v4438_v46  ;;  %v3512_v51 = vld [vmem:[%s5030_s25 + $0x58] sm:$0xff] }
 0x9fb   :  { %v1145_v48 = vmul.f32 0.5, %v1144_v38  ;;  %v3510_v38 = vld [vmem:[%s5030_s25 + $0x48] sm:$0xff] }
 0x9fc   :  { %v1157_v37 = vmul.f32 %v3620_v44, %v1152_v53  ;;  %v3511_v53 = vld [vmem:[%s5030_s25 + $0x50] sm:$0xff] }
 0x9fd   :  { %v1146_v52 = vsub.f32 1.5, %v1145_v48  ;;  %v1421_v48 = vld [vmem:[%s5037_s30 + $0x18] sm:$0xff] }
 0x9fe   :  { %v4486_v57 = vadd.f32 %v3621_v39, %v1157_v37  ;;  %v3509_v37 = vld [vmem:[%s5030_s25 + $0x40] sm:$0xff]  ;;  %1440 = vmatpush.msrb.mxu3 %v1421_v48  ;;  %v3525_v48 = vld [vmem:[%s5031_s29 + $0x68] sm:$0xff] }
 0x9ff   :  { %v1147_v49 = vmul.f32 %v3672_v61, %v1146_v52  ;;  %v1420_v52 = vld [vmem:[%s5037_s30 + $0x10] sm:$0xff] }
 0xa00   :  { %3484 = vmatmul.msk.f32.vlgmr.msrb.gmra.mxu1 %vm297_vm0, %v4486_v57  ;;  %3486 = vmatmul.msk.f32.vlgmr.msrb.gmra.mxu2 %vm297_vm0, %v4486_v57 }
 0xa01   :  { %3488 = vmatmul.msk.f32.vlgmr.msra.gmra.mxu3 %vm297_vm0, %v4486_v57  ;;  %3507 = vmatmul.msk.f32.vlgmr.msra.gmra.mxu0 %vm297_vm0, %v4486_v57  ;;  %v1151_v46 = vsel %vm1150_vm6, %v3672_v61, %v1147_v49  ;;  %v3515_v61 = vld [vmem:[%s5030_s25 + $0x70] sm:$0xff]  ;;  %v1419_v49 = vld [vmem:[%s5037_s30 + $0x8] sm:$0xff] }
 0xa02   :  { %v1153_v54 = vmul.f32 %v1151_v46, %v4444_v36  ;;  %v3624_v36 = vld [vmem:[%s5034_s14] ss:$0 sm:$0xff]  ;;  %1441 = vmatpush.msrb.mxu3 %v1420_v52 }
 0xa03   :  { %v1418_v46 = vld [vmem:[%s5037_s30] sm:$0xff] }
 0xa04   :  { %v1158_v55 = vmul.f32 %v3620_v44, %v1153_v54  ;;  %v3513_v44 = vld [vmem:[%s5030_s25 + $0x60] sm:$0xff]  ;;  %1442 = vmatpush.msrb.mxu3 %v1419_v49  ;;  %v3523_v49 = vld [vmem:[%s5031_s29 + $0x58] sm:$0xff] }
 0xa05   :  { %v3524_v52 = vld [vmem:[%s5031_s29 + $0x60] sm:$0xff] }
 0xa06   :  { %v4497_v43 = vadd.f32 %v3621_v39, %v1158_v55  ;;  %1443 = vmatpush.msrb.mxu3 %v1418_v46  ;;  %v4531_v55 = vld [vmem:[%s3891_s9] sm:$0xff]  ;;  %v3522_v46 = vld [vmem:[%s5031_s29 + $0x50] sm:$0xff] }
 0xa08   :  { %3485 = vmatmul.msk.f32.gmra.mxu1 %vm297_vm0, %v4497_v43  ;;  %3487 = vmatmul.msk.f32.gmra.mxu2 %vm297_vm0, %v4497_v43 }
 0xa09   :  { %3489 = vmatmul.msk.f32.gmra.mxu3 %vm297_vm0, %v4497_v43  ;;  %3508 = vmatmul.msk.f32.gmra.mxu0 %vm297_vm0, %v4497_v43 }
 0xa7d   :  { %v1230_v63 = vpop.f32.mrf.mxu1 }
 0xa7e   :  { %v1231_v33 = vadd.f32 %v3622_v32, %v1230_v63 }
 0xa83   :  { %v1265_v47 = vpop.f32.mrf.mxu2 }
 0xa84   :  { %v1300_v34 = vpop.f32.mrf.mxu3  ;;  %v1266_v35 = vadd.f32 %v3624_v36, %v1265_v47 }
 0xa85   :  { %v1301_v62 = vadd.f32 %v3625_v59, %v1300_v34  ;;  %v1233_v41 = vpop.f32.mrf.mxu1 }
 0xa86   :  { %v1234_v39 = vadd.f32 %v3622_v32, %v1233_v41 }
 0xa8b   :  { %v1268_v40 = vpop.f32.mrf.mxu2 }
 0xa8c   :  { %v1269_v56 = vadd.f32 %v3624_v36, %v1268_v40  ;;  %v1303_v3 = vpop.f32.mrf.mxu3 }
 0xa8d   :  { %v1304_v50 = vadd.f32 %v3625_v59, %v1303_v3  ;;  %v4536_v59 = vld [vmem:[%s3891_s9 + $0x8] sm:$0xff]  ;;  %s5038_s9 = sld [smem:[#allocation32_spill]] }
 0xa8e   :  { %3490 = vmatpush.xpose.msk.msra.mxu1 %vm503_vm8, %v1269_v56 }
 0xa8f   :  { %1409 = vmatpush.msra.mxu2 %v1304_v50  ;;  %v3626_v50 = vld [vmem:[%s5034_s14 + $0x1] ss:$0 sm:$0xff] }
 0xa91   :  { %1410 = vmatpush.msra.mxu2 %v1301_v62 }
 0xa92   :  { %3491 = vmatpush.xpose.msk.msra.mxu1 %vm503_vm8, %v1266_v35 }
 0xa95   :  { %3492 = vmatmul.msk.f32.vlgmr.msra.gmra.mxu1 %vm503_vm8, %v1231_v33 }
 0xa96   :  { %1515 = vmatpush.msrb.mxu1 %v3516_v58 }
 0xa98   :  { %1516 = vmatpush.msrb.mxu1 %v3515_v61 }
 0xa9a   :  { %1517 = vmatpush.msrb.mxu1 %v3514_v45 }
 0xa9c   :  { %1518 = vmatpush.msrb.mxu1 %v3513_v44 }
 0xa9d   :  { %3493 = vmatmul.msk.f32.gmra.mxu1 %vm503_vm8, %v1234_v39 }
 0xa9e   :  { %1519 = vmatpush.msrb.mxu1 %v3512_v51 }
 0xaa0   :  { %1520 = vmatpush.msrb.mxu1 %v3511_v53 }
 0xaa2   :  { %1521 = vmatpush.msrb.mxu1 %v3510_v38  ;;  %v3527_v38 = vld [vmem:[%s5031_s29 + $0x78] sm:$0xff] }
 0xaa3   :  { %1552 = vmatpush.msrb.mxu2 %v3527_v38 }
 0xaa4   :  { %1522 = vmatpush.msrb.mxu1 %v3509_v37  ;;  %v3526_v37 = vld [vmem:[%s5031_s29 + $0x70] sm:$0xff] }
 0xaa5   :  { %3518 = vmatmul.msk.f32.vlgmr.msrb.gmra.mxu1 %vm297_vm0, %v4486_v57  ;;  %1553 = vmatpush.msrb.mxu2 %v3526_v37 }
 0xaa7   :  { %1554 = vmatpush.msrb.mxu2 %v3525_v48 }
 0xaa9   :  { %1555 = vmatpush.msrb.mxu2 %v3524_v52 }
 0xaab   :  { %1556 = vmatpush.msrb.mxu2 %v3523_v49 }
 0xaad   :  { %3519 = vmatmul.msk.f32.gmra.mxu1 %vm297_vm0, %v4497_v43  ;;  %1557 = vmatpush.msrb.mxu2 %v3522_v46 }
 0xb12   :  { %v1335_v54 = vpop.f32.mrf.mxu1 }
 0xb13   :  { %v1336_v47 = vadd.f32 %v4531_v55, %v1335_v54  ;;  %v3521_v54 = vld [vmem:[%s5031_s29 + $0x48] sm:$0xff] }
 0xb14   :  { %1558 = vmatpush.msrb.mxu2 %v3521_v54 }
 0xb15   :  { %v1341_v34 = vsel %vm539_vm9, %v1336_v47, -inf }
 0xb16   :  { %1342 = vmax.xlane.f32.xlu2 %v1341_v34  ;;  %v3520_v34 = vld [vmem:[%s5031_s29 + $0x40] sm:$0xff] }
 0xb17   :  { %1559 = vmatpush.msrb.mxu2 %v3520_v34  ;;  %v1487_v34 = vpop.f32.mrf.mxu0 }
 0xb1a   :  { %v1338_v36 = vpop.f32.mrf.mxu1 }
 0xb1b   :  { %v1339_v40 = vadd.f32 %v4536_v59, %v1338_v36 }
 0xb1d   :  { %v1344_v56 = vsel %vm539_vm9, %v1339_v40, -inf }
 0xb1e   :  { %1345 = vmax.xlane.f32.xlu0 %v1344_v56 }
 0xb22   :  { %v1524_v3 = vpop.f32.mrf.mxu1 }
 0xb23   :  { %v1525_v62 = vadd.f32 %v3626_v50, %v1524_v3 }
 0xb2a   :  { %v1527_v63 = vpop.f32.mrf.mxu1 }
 0xb2b   :  { %v1528_v32 = vadd.f32 %v3626_v50, %v1527_v63 }
 0xb2d   :  { %3531 = vmatpush.xpose.msk.msra.mxu3 %vm503_vm8, %v1528_v32 }
 0xb31   :  { %3532 = vmatpush.xpose.msk.msra.mxu3 %vm503_vm8, %v1525_v62 }
 0xb89   :  { %v1343_v35 = vpop.xlane.xlu2 %1342 }
 0xb8a   :  { %v1347_v58 = vsub.f32 %v1336_v47, %v1343_v35 }
 0xb8c   :  { %v1349_v33 = vmul.f32 1.442695, %v1347_v58 }
 0xb8e   :  { %3673 = vpow2.f32 %v1349_v33 }
 0xb91   :  { %v1346_v61 = vpop.xlane.xlu0 %1345 }
 0xb92   :  { %v1348_v45 = vsub.f32 %v1339_v40, %v1346_v61 }
 0xb94   :  { %v3674_v44 = vpop.eup %3673  ;;  %v1351_v41 = vmul.f32 1.442695, %v1348_v45 }
 0xb95   :  { %v1353_v51 = vsel %vm539_vm9, %v3674_v44, 0.0 }
 0xb96   :  { %3675 = vpow2.f32 %v1351_v41  ;;  %1354 = vadd.xlane.f32.xlu1 %v1353_v51 }
 0xb9c   :  { %v3676_v39 = vpop.eup %3675 }
 0xb9d   :  { %v1356_v53 = vsel %vm539_vm9, %v3676_v39, 0.0 }
 0xb9e   :  { %1357 = vadd.xlane.f32.xlu2 %v1356_v53 }
 0xc09   :  { %v1355_v47 = vpop.xlane.xlu1 %1354 }
 0xc0a   :  { %3677 = vrcp.f32 %v1355_v47  ;;  %v1370_v50 = vand.u32 2147483648, %v1355_v47  ;;  %v1368_v32 = vand.u32 2147483647, %v1355_v47  ;;  %vm1364_vm10 = vweird.f32 %v1355_v47 }
 0xc0c   :  { %v1371_v58 = vor.u32 1.1754944e-38, %v1370_v50  ;;  %vm1369_vm12 = vcmp.eq.f32.partialorder %v1368_v32, 8.507059e+37  ;;  %v3627_v50 = vld [vmem:[%s5035_s19 + $0x1] ss:$0 sm:$0xff] }
 0xc10   :  { %v3678_v36 = vpop.eup %3677 }
 0xc11   :  { %v1360_v40 = vmul.f32 %v3678_v36, %v1355_v47  ;;  %v1358_v56 = vpop.xlane.xlu2 %1357  ;;  %vm1365_vm7 = vweird.f32 %v3678_v36 }
 0xc12   :  { %3679 = vrcp.f32 %v1358_v56  ;;  %vm1366_vm11 = vmor %vm1364_vm10, %vm1365_vm7  ;;  %v1385_v53 = vand.u32 2147483648, %v1358_v56  ;;  %v1383_v37 = vand.u32 2147483647, %v1358_v56  ;;  %vm1379_vm14 = vweird.f32 %v1358_v56 }
 0xc13   :  { %v1361_v3 = vsub.f32 1.0, %v1360_v40 }
 0xc14   :  { %v1386_v52 = vor.u32 1.1754944e-38, %v1385_v53  ;;  %vm1384_vm1 = vcmp.eq.f32.partialorder %v1383_v37, 8.507059e+37 }
 0xc15   :  { %v1362_v63 = vmul.f32 %v3678_v36, %v1361_v3 }
 0xc17   :  { %v1363_v62 = vadd.f32 %v3678_v36, %v1362_v63 }
 0xc18   :  { %v3680_v35 = vpop.eup %3679 }
 0xc19   :  { %v1367_v33 = vsel %vm1366_vm11, %v3678_v36, %v1363_v62  ;;  %v1375_v61 = vmul.f32 %v3680_v35, %v1358_v56  ;;  %vm1380_vm13 = vweird.f32 %v3680_v35  ;;  %v3623_v36 = vld [vmem:[%s5036_s24 + $0x1] ss:$0 sm:$0xff] }
 0xc1a   :  { %v1372_v45 = vsel %vm1369_vm12, %v1371_v58, %v1367_v33  ;;  %vm1381_vm15 = vmor %vm1379_vm14, %vm1380_vm13  ;;  %v1488_v40 = vadd.f32 %v3623_v36, %v1487_v34  ;;  %v3539_v34 = vld [vmem:[%s5037_s30 + $0x30] sm:$0xff] }
 0xc1b   :  { %v1376_v41 = vsub.f32 1.0, %v1375_v61  ;;  %v1373_v51 = vmul.f32 %v3674_v44, %v1372_v45 }
 0xc1d   :  { %v1377_v38 = vmul.f32 %v3680_v35, %v1376_v41  ;;  %3494 = vmatmul.msk.f32.vlgmr.msra.gmra.mxu2 %vm539_vm9, %v1373_v51 }
 0xc1f   :  { %v1378_v48 = vadd.f32 %v3680_v35, %v1377_v38 }
 0xc21   :  { %v1382_v49 = vsel %vm1381_vm15, %v3680_v35, %v1378_v48 }
 0xc22   :  { %v1387_v46 = vsel %vm1384_vm1, %v1386_v52, %v1382_v49 }
 0xc23   :  { %v1388_v54 = vmul.f32 %v3676_v39, %v1387_v46  ;;  %v1490_v39 = vpop.f32.mrf.mxu0 }
 0xc24   :  { %v1491_v3 = vadd.f32 %v3623_v36, %v1490_v39  ;;  %v3538_v36 = vld [vmem:[%s5037_s30 + $0x28] sm:$0xff] }
 0xc25   :  { %3495 = vmatmul.msk.f32.gmra.mxu2 %vm539_vm9, %v1388_v54 }
 0xc2d   :  { %3529 = vmatmul.msk.f32.vlgmr.msrb.gmra.mxu2 %vm297_vm0, %v4486_v57 }
 0xc35   :  { %3530 = vmatmul.msk.f32.gmra.mxu2 %vm297_vm0, %v4497_v43 }
 0xca0   :  { %v1412_v44 = vpop.f32.mrf.mxu2 }
 0xca1   :  { %3496 = vmatmul.msk.f32.vlgmr.msrb.gmra.mxu3 %vm503_vm8, %v1412_v44 }
 0xca8   :  { %v1415_v47 = vpop.f32.mrf.mxu2 }
 0xca9   :  { %3497 = vmatmul.msk.f32.gmra.mxu3 %vm503_vm8, %v1415_v47  ;;  %v3540_v47 = vld [vmem:[%s5037_s30 + $0x38] sm:$0xff] }
 0xcaa   :  { %1702 = vmatpush.msra.mxu1 %v3540_v47 }
 0xcac   :  { %1703 = vmatpush.msra.mxu1 %v3539_v34 }
 0xcae   :  { %1704 = vmatpush.msra.mxu1 %v3538_v36  ;;  %v3537_v36 = vld [vmem:[%s5037_s30 + $0x20] sm:$0xff] }
 0xcb0   :  { %v1561_v56 = vpop.f32.mrf.mxu2  ;;  %1705 = vmatpush.msra.mxu1 %v3537_v36  ;;  %v1167_v36 = vld [vmem:[%s5039_s12] sm:$0xff] }
 0xcb1   :  { %3533 = vmatmul.msk.f32.vlgmr.msra.gmra.mxu3 %vm503_vm8, %v1488_v40  ;;  %v1562_v62 = vadd.f32 %v3627_v50, %v1561_v56 }
 0xcb8   :  { %v1564_v63 = vpop.f32.mrf.mxu2 }
 0xcb9   :  { %v1565_v32 = vadd.f32 %v3627_v50, %v1564_v63  ;;  %3534 = vmatmul.msk.f32.gmra.mxu3 %vm503_vm8, %v1491_v3 }
 0xcbb   :  { %1670 = vmatpush.msrb.mxu0 %v1565_v32 }
 0xcbd   :  { %1671 = vmatpush.msrb.mxu0 %v1562_v62 }
 0xd24   :  { %v4565_v35 = vpop.f32.mrf.mxu3 }
 0xd2c   :  { %v4567_v58 = vpop.f32.mrf.mxu3 }
 0xd34   :  { %v1596_v33 = vpop.f32.mrf.mxu3 }
 0xd35   :  { %v1597_v61 = vadd.f32 %v4531_v55, %v1596_v33 }
 0xd37   :  { %v1602_v45 = vsel %vm539_vm9, %v1597_v61, -inf }
 0xd38   :  { %1603 = vmax.xlane.f32.xlu0 %v1602_v45 }
 0xd3c   :  { %v1599_v41 = vpop.f32.mrf.mxu3 }
 0xd3d   :  { %v1600_v51 = vadd.f32 %v4536_v59, %v1599_v41 }
 0xd3f   :  { %v1605_v53 = vsel %vm539_vm9, %v1600_v51, -inf }
 0xd40   :  { %1606 = vmax.xlane.f32.xlu1 %v1605_v53 }
 0xdab   :  { %v1604_v38 = vpop.xlane.xlu0 %1603 }
 0xdac   :  { %v1608_v37 = vsub.f32 %v1597_v61, %v1604_v38 }
 0xdae   :  { %v1610_v48 = vmul.f32 1.442695, %v1608_v37 }
 0xdb0   :  { %3681 = vpow2.f32 %v1610_v48 }
 0xdb3   :  { %v1607_v52 = vpop.xlane.xlu1 %1606 }
 0xdb4   :  { %v1609_v49 = vsub.f32 %v1600_v51, %v1607_v52 }
 0xdb6   :  { %v3682_v46 = vpop.eup %3681  ;;  %v1612_v55 = vmul.f32 1.442695, %v1609_v49 }
 0xdb7   :  { %v1614_v54 = vsel %vm539_vm9, %v3682_v46, 0.0 }
 0xdb8   :  { %3683 = vpow2.f32 %v1612_v55  ;;  %1615 = vadd.xlane.f32.xlu2 %v1614_v54 }
 0xdbe   :  { %v3684_v44 = vpop.eup %3683 }
 0xdbf   :  { %v1617_v59 = vsel %vm539_vm9, %v3684_v44, 0.0 }
 0xdc0   :  { %1618 = vadd.xlane.f32.xlu0 %v1617_v59 }
 0xe2b   :  { %v1616_v40 = vpop.xlane.xlu2 %1615 }
 0xe2c   :  { %3685 = vrcp.f32 %v1616_v40  ;;  %v1631_v63 = vand.u32 2147483648, %v1616_v40  ;;  %v1629_v62 = vand.u32 2147483647, %v1616_v40  ;;  %vm1625_vm3 = vweird.f32 %v1616_v40 }
 0xe2e   :  { %v1632_v45 = vor.u32 1.1754944e-38, %v1631_v63  ;;  %vm1630_vm5 = vcmp.eq.f32.partialorder %v1629_v62, 8.507059e+37 }
 0xe32   :  { %v3686_v56 = vpop.eup %3685 }
 0xe33   :  { %v1621_v39 = vmul.f32 %v3686_v56, %v1616_v40  ;;  %v1619_v3 = vpop.xlane.xlu0 %1618  ;;  %vm1626_vm2 = vweird.f32 %v3686_v56 }
 0xe34   :  { %3687 = vrcp.f32 %v1619_v3  ;;  %vm1627_vm4 = vmor %vm1625_vm3, %vm1626_vm2  ;;  %v1646_v48 = vand.u32 2147483648, %v1619_v3  ;;  %v1644_v49 = vand.u32 2147483647, %v1619_v3  ;;  %vm1640_vm7 = vweird.f32 %v1619_v3 }
 0xe35   :  { %v1622_v50 = vsub.f32 1.0, %v1621_v39 }
 0xe36   :  { %v1647_v54 = vor.u32 1.1754944e-38, %v1646_v48  ;;  %vm1645_vm11 = vcmp.eq.f32.partialorder %v1644_v49, 8.507059e+37  ;;  %v1173_v49 = vld [vmem:[%s5039_s12 + $0x30] sm:$0xff] }
 0xe37   :  { %v1623_v32 = vmul.f32 %v3686_v56, %v1622_v50 }
 0xe39   :  { %v1624_v33 = vadd.f32 %v3686_v56, %v1623_v32 }
 0xe3a   :  { %v3688_v61 = vpop.eup %3687 }
 0xe3b   :  { %v1628_v41 = vsel %vm1627_vm4, %v3686_v56, %v1624_v33  ;;  %v1636_v51 = vmul.f32 %v3688_v61, %v1619_v3  ;;  %vm1641_vm6 = vweird.f32 %v3688_v61  ;;  %v3628_v56 = vld [vmem:[%s5038_s9] ss:$0 sm:$0xff] }
 0xe3c   :  { %v1633_v53 = vsel %vm1630_vm5, %v1632_v45, %v1628_v41  ;;  %vm1642_vm10 = vmor %vm1640_vm7, %vm1641_vm6  ;;  %v1454_v39 = vadd.f32 %v3628_v56, %v4565_v35 }
 0xe3d   :  { %v1637_v38 = vsub.f32 1.0, %v1636_v51  ;;  %v1634_v37 = vmul.f32 %v3682_v46, %v1633_v53 }
 0xe3f   :  { %v1638_v52 = vmul.f32 %v3688_v61, %v1637_v38  ;;  %3535 = vmatmul.msk.f32.vlgmr.msrb.gmra.mxu0 %vm539_vm9, %v1634_v37 }
 0xe41   :  { %v1639_v55 = vadd.f32 %v3688_v61, %v1638_v52  ;;  %v1174_v52 = vld [vmem:[%s5039_s12 + $0x38] sm:$0xff] }
 0xe42   :  { %1788 = vmatpush.msra.mxu2 %v1174_v52 }
 0xe43   :  { %v1643_v59 = vsel %vm1642_vm10, %v3688_v61, %v1639_v55  ;;  %v1172_v55 = vld [vmem:[%s5039_s12 + $0x28] sm:$0xff] }
 0xe44   :  { %v1648_v47 = vsel %vm1645_vm11, %v1647_v54, %v1643_v59  ;;  %1789 = vmatpush.msra.mxu2 %v1173_v49  ;;  %v1171_v54 = vld [vmem:[%s5039_s12 + $0x20] sm:$0xff]  ;;  %v1170_v59 = vld [vmem:[%s5039_s12 + $0x18] sm:$0xff] }
 0xe45   :  { %v1649_v34 = vmul.f32 %v3684_v44, %v1648_v47  ;;  %v1455_v44 = vadd.f32 %v3628_v56, %v4567_v58  ;;  %v1169_v47 = vld [vmem:[%s5039_s12 + $0x10] sm:$0xff] }
 0xe46   :  { %1790 = vmatpush.msra.mxu2 %v1172_v55 }
 0xe47   :  { %3536 = vmatmul.msk.f32.gmra.mxu0 %vm539_vm9, %v1649_v34  ;;  %v1168_v34 = vld [vmem:[%s5039_s12 + $0x8] sm:$0xff] }
 0xe48   :  { %1791 = vmatpush.msra.mxu2 %v1171_v54 }
 0xe4a   :  { %1792 = vmatpush.msra.mxu2 %v1170_v59 }
 0xe4c   :  { %1793 = vmatpush.msra.mxu2 %v1169_v47 }
 0xe4e   :  { %1794 = vmatpush.msra.mxu2 %v1168_v34  ;;  %v1191_v34 = vld [vmem:[%s5042_s16 + $0x78] sm:$0xff] }
 0xe4f   :  { %1886 = vmatpush.msrb.mxu3 %v1191_v34 }
 0xe50   :  { %1795 = vmatpush.msra.mxu2 %v1167_v36  ;;  %v1190_v36 = vld [vmem:[%s5042_s16 + $0x70] sm:$0xff] }
 0xe51   :  { %1887 = vmatpush.msrb.mxu3 %v1190_v36 }
 0xebc   :  { %v1673_v46 = vpop.f32.mrf.mxu0 }
 0xebd   :  { %3541 = vmatmul.msk.f32.vlgmr.msra.gmra.mxu1 %vm503_vm8, %v1673_v46 }
 0xec4   :  { %v1676_v40 = vpop.f32.mrf.mxu0 }
 0xec5   :  { %3542 = vmatmul.msk.f32.gmra.mxu1 %vm503_vm8, %v1676_v40 }
 0xf3a   :  { %v1707_v3 = vpop.f32.mrf.mxu1 }
 0xf3b   :  { %v1713_v50 = vadd.f32 %v1707_v3, %v1454_v39 }
 0xf3d   :  { %v1715_v63 = vadd.f32 %v1713_v50, %v4486_v57 }
 0xf3f   :  { %v1717_v32 = vsel %vm297_vm0, %v1715_v63, 0.0 }
 0xf40   :  { %1718 = vadd.xlane.f32.xlu1 %v1717_v32 }
 0xf42   :  { %v1710_v62 = vpop.f32.mrf.mxu1 }
 0xf43   :  { %v1714_v33 = vadd.f32 %v1710_v62, %v1455_v44 }
 0xf45   :  { %v1716_v61 = vadd.f32 %v1714_v33, %v4497_v43 }
 0xf47   :  { %v1720_v45 = vsel %vm297_vm0, %v1716_v61, 0.0 }
 0xf48   :  { %1721 = vadd.xlane.f32.xlu2 %v1720_v45 }
 0xfb3   :  { %v1719_v41 = vpop.xlane.xlu1 %1718 }
 0xfb4   :  { %v1723_v35 = vmul.f32 %v1719_v41, %v4218_v42 }
 0xfb6   :  { %v1725_v51 = vsub.f32 %v1715_v63, %v1723_v35  ;;  %v3629_v35 = vld [vmem:[%s5040_s20] ss:$0 sm:$0xff] }
 0xfb8   :  { %v1727_v57 = vmul.f32 %v1725_v51, %v1725_v51 }
 0xfba   :  { %v1729_v53 = vsel %vm297_vm0, %v1727_v57, 0.0 }
 0xfbb   :  { %1730 = vadd.xlane.f32.xlu0 %v1729_v53  ;;  %v1722_v58 = vpop.xlane.xlu2 %1721 }
 0xfbc   :  { %v1724_v38 = vmul.f32 %v1722_v58, %v4218_v42 }
 0xfbe   :  { %v1726_v43 = vsub.f32 %v1716_v61, %v1724_v38  ;;  %v3630_v38 = vld [vmem:[%s5041_s15] ss:$0 sm:$0xff] }
 0xfc0   :  { %v1728_v37 = vmul.f32 %v1726_v43, %v1726_v43 }
 0xfc2   :  { %v1732_v48 = vsel %vm297_vm0, %v1728_v37, 0.0 }
 0xfc3   :  { %1733 = vadd.xlane.f32.xlu1 %v1732_v48 }
0x102e   :  { %v1731_v46 = vpop.xlane.xlu0 %1730 }
0x102f   :  { %v1735_v40 = vmul.f32 %v1731_v46, %v4218_v42  ;;  %v3631_v46 = vld [vmem:[%s5043_s18] ss:$0 sm:$0xff] }
0x1031   :  { %v1737_v56 = vadd.f32 1e-05, %v1735_v40  ;;  %v1189_v40 = vld [vmem:[%s5042_s16 + $0x68] sm:$0xff] }
0x1032   :  { %1888 = vmatpush.msrb.mxu3 %v1189_v40 }
0x1033   :  { %3689 = vrsqrt.f32 %v1737_v56  ;;  %vm1745_vm12 = vweird.f32 %v1737_v56 }
0x1036   :  { %v1734_v39 = vpop.xlane.xlu1 %1733 }
0x1037   :  { %v1736_v3 = vmul.f32 %v1734_v39, %v4218_v42 }
0x1039   :  { %v3690_v50 = vpop.eup %3689  ;;  %v1738_v63 = vadd.f32 1e-05, %v1736_v3  ;;  %v1187_v3 = vld [vmem:[%s5042_s16 + $0x58] sm:$0xff] }
0x103a   :  { %v1740_v32 = vmul.f32 %v3690_v50, %v1737_v56  ;;  %vm1746_vm8 = vweird.f32 %v3690_v50  ;;  %v1188_v56 = vld [vmem:[%s5042_s16 + $0x60] sm:$0xff] }
0x103b   :  { %3691 = vrsqrt.f32 %v1738_v63  ;;  %vm1747_vm13 = vmor %vm1745_vm12, %vm1746_vm8  ;;  %vm1755_vm15 = vweird.f32 %v1738_v63  ;;  %1889 = vmatpush.msrb.mxu3 %v1188_v56 }
0x103c   :  { %v1741_v44 = vmul.f32 %v3690_v50, %v1740_v32 }
0x103d   :  { %1890 = vmatpush.msrb.mxu3 %v1187_v3 }
0x103e   :  { %v1742_v62 = vmul.f32 0.5, %v1741_v44  ;;  %v1185_v44 = vld [vmem:[%s5042_s16 + $0x48] sm:$0xff] }
0x1040   :  { %v1743_v33 = vsub.f32 1.5, %v1742_v62 }
0x1041   :  { %v3692_v61 = vpop.eup %3691 }
0x1042   :  { %v1744_v45 = vmul.f32 %v3690_v50, %v1743_v33  ;;  %v1750_v41 = vmul.f32 %v3692_v61, %v1738_v63  ;;  %vm1756_vm14 = vweird.f32 %v3692_v61  ;;  %v1186_v63 = vld [vmem:[%s5042_s16 + $0x50] sm:$0xff]  ;;  %v1184_v33 = vld [vmem:[%s5042_s16 + $0x40] sm:$0xff] }
0x1043   :  { %vm1757_vm1 = vmor %vm1755_vm15, %vm1756_vm14  ;;  %1891 = vmatpush.msrb.mxu3 %v1186_v63 }
0x1044   :  { %v1748_v57 = vsel %vm1747_vm13, %v3690_v50, %v1744_v45  ;;  %v1751_v53 = vmul.f32 %v3692_v61, %v1750_v41 }
0x1045   :  { %v1759_v58 = vmul.f32 %v1748_v57, %v1725_v51  ;;  %1892 = vmatpush.msrb.mxu3 %v1185_v44  ;;  %v1182_v57 = vld [vmem:[%s5042_s16 + $0x30] sm:$0xff] }
0x1046   :  { %v1752_v37 = vmul.f32 0.5, %v1751_v53 }
0x1047   :  { %v1764_v48 = vmul.f32 %v3629_v35, %v1759_v58  ;;  %1893 = vmatpush.msrb.mxu3 %v1184_v33  ;;  %v1181_v58 = vld [vmem:[%s5042_s16 + $0x28] sm:$0xff] }
0x1048   :  { %v1753_v52 = vsub.f32 1.5, %v1752_v37  ;;  %v1180_v37 = vld [vmem:[%s5042_s16 + $0x20] sm:$0xff] }
0x1049   :  { %v4606_v49 = vadd.f32 %v3630_v38, %v1764_v48 }
0x104a   :  { %v1754_v55 = vmul.f32 %v3692_v61, %v1753_v52 }
0x104b   :  { %3543 = vmatmul.msk.f32.vlgmr.msra.gmra.mxu2 %vm297_vm0, %v4606_v49 }
0x104c   :  { %v1758_v54 = vsel %vm1757_vm1, %v3692_v61, %v1754_v55  ;;  %v1179_v55 = vld [vmem:[%s5042_s16 + $0x18] sm:$0xff] }
0x104d   :  { %v1760_v51 = vmul.f32 %v1758_v54, %v1726_v43 }
0x104f   :  { %v1765_v59 = vmul.f32 %v3629_v35, %v1760_v51  ;;  %v1183_v35 = vld [vmem:[%s5042_s16 + $0x38] sm:$0xff] }
0x1050   :  { %1894 = vmatpush.msrb.mxu3 %v1183_v35 }
0x1051   :  { %v4610_v47 = vadd.f32 %v3630_v38, %v1765_v59  ;;  %v1178_v59 = vld [vmem:[%s5042_s16 + $0x10] sm:$0xff] }
0x1052   :  { %1895 = vmatpush.msrb.mxu3 %v1182_v57 }
0x1053   :  { %3544 = vmatmul.msk.f32.gmra.mxu2 %vm297_vm0, %v4610_v47 }
0x1054   :  { %1896 = vmatpush.msrb.mxu3 %v1181_v58 }
0x1056   :  { %1897 = vmatpush.msrb.mxu3 %v1180_v37 }
0x1058   :  { %1898 = vmatpush.msrb.mxu3 %v1179_v55 }
0x105a   :  { %1899 = vmatpush.msrb.mxu3 %v1178_v59 }
0x10ce   :  { %v1797_v39 = vpop.f32.mrf.mxu2 }
0x10cf   :  { %v4619_v43 = vadd.f32 %v3631_v46, %v1797_v39  ;;  %v1176_v39 = vld [vmem:[%s5042_s16] sm:$0xff] }
0x10d1   :  { %v4623_v50 = vmul.f32 0.70710677, %v4619_v43 }
0x10d3   :  { %v1811_v32 = vand.u32 2147483647, %v4623_v50  ;;  %vm1807_vm8 = vcmp.lt.f32.partialorder %v4623_v50, 0.0 }
0x10d5   :  { %v1813_v62 = vmul.f32 0.3275911, %v1811_v32 }
0x10d6   :  { %v1800_v61 = vpop.f32.mrf.mxu2 }
0x10d7   :  { %v1815_v45 = vadd.f32 1.0, %v1813_v62  ;;  %v4629_v41 = vadd.f32 %v3631_v46, %v1800_v61  ;;  %v1177_v46 = vld [vmem:[%s5042_s16 + $0x8] sm:$0xff]  ;;  %v1865_v61 = vsub.f32 0.0, %v1811_v32 }
0x10d8   :  { %1900 = vmatpush.msrb.mxu3 %v1177_v46 }
0x10d9   :  { %3693 = vrcp.f32 %v1815_v45  ;;  %v4634_v53 = vmul.f32 0.70710677, %v4629_v41  ;;  %v1828_v36 = vand.u32 2147483648, %v1815_v45  ;;  %v1826_v56 = vand.u32 2147483647, %v1815_v45 }
0x10da   :  { %vm1822_vm3 = vweird.f32 %v1815_v45  ;;  %1901 = vmatpush.msrb.mxu3 %v1176_v39  ;;  %v1867_v55 = vmul.f32 %v1865_v61, %v1811_v32 }
0x10db   :  { %v1812_v38 = vand.u32 2147483647, %v4634_v53  ;;  %v1829_v63 = vor.u32 1.1754944e-38, %v1828_v36  ;;  %vm1827_vm5 = vcmp.eq.f32.partialorder %v1826_v56, 8.507059e+37  ;;  %vm1808_vm12 = vcmp.lt.f32.partialorder %v4634_v53, 0.0 }
0x10dd   :  { %v1814_v48 = vmul.f32 0.3275911, %v1812_v38  ;;  %v1866_v39 = vsub.f32 0.0, %v1812_v38 }
0x10df   :  { %v3694_v52 = vpop.eup %3693  ;;  %v1816_v51 = vadd.f32 1.0, %v1814_v48  ;;  %v1868_v61 = vmul.f32 %v1866_v39, %v1812_v38  ;;  %v1803_v38 = vmul.f32 0.5, %v4619_v43 }
0x10e0   :  { %v1818_v54 = vmul.f32 %v3694_v52, %v1815_v45  ;;  %vm1823_vm2 = vweird.f32 %v3694_v52 }
0x10e1   :  { %3695 = vrcp.f32 %v1816_v51  ;;  %vm1824_vm4 = vmor %vm1822_vm3, %vm1823_vm2  ;;  %v1843_v48 = vand.u32 2147483648, %v1816_v51  ;;  %v1841_v59 = vand.u32 2147483647, %v1816_v51  ;;  %vm1837_vm7 = vweird.f32 %v1816_v51 }
0x10e2   :  { %v1819_v34 = vsub.f32 1.0, %v1818_v54 }
0x10e3   :  { %v1844_v36 = vor.u32 1.1754944e-38, %v1843_v48  ;;  %vm1842_vm11 = vcmp.eq.f32.partialorder %v1841_v59, 8.507059e+37  ;;  %v5044_v59 = vmov 1.0  }
0x10e4   :  { %v1820_v40 = vmul.f32 %v3694_v52, %v1819_v34 }
0x10e6   :  { %v1821_v3 = vadd.f32 %v3694_v52, %v1820_v40  ;;  %v1869_v40 = vmul.f32 1.442695, %v1867_v55 }
0x10e7   :  { %v3696_v44 = vpop.eup %3695 }
0x10e8   :  { %v1825_v62 = vsel %vm1824_vm4, %v3694_v52, %v1821_v3  ;;  %v1833_v35 = vmul.f32 %v3696_v44, %v1816_v51  ;;  %vm1838_vm6 = vweird.f32 %v3696_v44  ;;  %3697 = vpow2.f32 %v1869_v40 }
0x10e9   :  { %v1830_v33 = vsel %vm1827_vm5, %v1829_v63, %v1825_v62  ;;  %vm1839_vm10 = vmor %vm1837_vm7, %vm1838_vm6  ;;  %v1871_v51 = vmul.f32 1.442695, %v1868_v61 }
0x10ea   :  { %v1847_v57 = vmul.f32 1.0614054, %v1830_v33  ;;  %v1834_v58 = vsub.f32 1.0, %v1833_v35 }
0x10eb   :  { %3699 = vpow2.f32 %v1871_v51 }
0x10ec   :  { %v1849_v37 = vadd.f32 -1.4531521, %v1847_v57  ;;  %v1835_v54 = vmul.f32 %v3696_v44, %v1834_v58 }
0x10ee   :  { %v1851_v34 = vmul.f32 %v1849_v37, %v1830_v33  ;;  %v1836_v46 = vadd.f32 %v3696_v44, %v1835_v54 }
0x10f0   :  { %v1853_v45 = vadd.f32 1.4214138, %v1851_v34  ;;  %v1840_v52 = vsel %vm1839_vm10, %v3696_v44, %v1836_v46  ;;  %v3698_v34 = vpop.eup %3697  ;;  %v1809_v46 = vsel %vm1807_vm8, -1.0, %v5044_v59 }
0x10f1   :  { %v1845_v3 = vsel %vm1842_vm11, %v1844_v36, %v1840_v52 }
0x10f2   :  { %v1855_v56 = vmul.f32 %v1853_v45, %v1830_v33  ;;  %v1848_v63 = vmul.f32 1.0614054, %v1845_v3 }
0x10f4   :  { %v1857_v62 = vadd.f32 -0.28449672, %v1855_v56  ;;  %v1850_v35 = vadd.f32 -1.4531521, %v1848_v63 }
0x10f6   :  { %v1859_v32 = vmul.f32 %v1857_v62, %v1830_v33  ;;  %v1852_v57 = vmul.f32 %v1850_v35, %v1845_v3  ;;  %v1804_v35 = vmul.f32 0.5, %v4629_v41 }
0x10f8   :  { %v1861_v58 = vadd.f32 0.2548296, %v1859_v32  ;;  %v1854_v37 = vadd.f32 1.4214138, %v1852_v57  ;;  %v3632_v57 = vld [vmem:[%s5045_s22] ss:$0 sm:$0xff] }
0x10fa   :  { %v1863_v54 = vmul.f32 %v1861_v58, %v1830_v33  ;;  %v1856_v60 = vmul.f32 %v1854_v37, %v1845_v3  ;;  %v3700_v33 = vpop.eup %3699 }
0x10fc   :  { %v1873_v44 = vmul.f32 %v3698_v34, %v1863_v54  ;;  %v1858_v48 = vadd.f32 -0.28449672, %v1856_v60  ;;  %v1810_v60 = vsel %vm1808_vm12, -1.0, %v5044_v59 }
0x10fe   :  { %v1875_v55 = vsub.f32 1.0, %v1873_v44  ;;  %v1860_v45 = vmul.f32 %v1858_v48, %v1845_v3 }
0x1100   :  { %v1877_v36 = vmul.f32 %v1875_v55, %v1809_v46  ;;  %v1862_v40 = vadd.f32 0.2548296, %v1860_v45 }
0x1102   :  { %v1879_v52 = vadd.f32 1.0, %v1877_v36  ;;  %v1864_v56 = vmul.f32 %v1862_v40, %v1845_v3 }
0x1104   :  { %v1881_v39 = vmul.f32 %v1879_v52, %v1803_v38  ;;  %v1874_v63 = vmul.f32 %v3700_v33, %v1864_v56 }
0x1106   :  { %1902 = vmatmul.f32.vlgmr.msrb.gmra.mxu3 %v1881_v39  ;;  %v1876_v50 = vsub.f32 1.0, %v1874_v63 }
0x1108   :  { %v1878_v62 = vmul.f32 %v1876_v50, %v1810_v60 }
0x110a   :  { %v1880_v32 = vadd.f32 1.0, %v1878_v62 }
0x110c   :  { %v1882_v61 = vmul.f32 %v1880_v32, %v1804_v35 }
0x110e   :  { %1905 = vmatmul.f32.gmra.mxu3 %v1882_v61 }
0x1189   :  { %v1903_v58 = vpop.f32.mrf.mxu3 }
0x118a   :  { %v1904_v43 = vadd.f32 %v3632_v57, %v1903_v58 }
0x118c   :  { %v1909_v3 = vadd.f32 %v1904_v43, %v4606_v49 }
0x118e   :  { %v1911_v37 = vsel %vm297_vm0, %v1909_v3, 0.0 }
0x118f   :  { %1912 = vadd.xlane.f32.xlu0 %v1911_v37 }
0x1191   :  { %v1906_v53 = vpop.f32.mrf.mxu3 }
0x1192   :  { %v1907_v54 = vadd.f32 %v3632_v57, %v1906_v53 }
0x1194   :  { %v1910_v51 = vadd.f32 %v1907_v54, %v4610_v47 }
0x1196   :  { %v1914_v34 = vsel %vm297_vm0, %v1910_v51, 0.0 }
0x1197   :  { %1915 = vadd.xlane.f32.xlu2 %v1914_v34 }
0x1202   :  { %v1913_v41 = vpop.xlane.xlu0 %1912 }
0x1203   :  { %v1917_v44 = vmul.f32 %v1913_v41, %v4218_v42 }
0x1205   :  { %v4655_v48 = vsub.f32 %v1909_v3, %v1917_v44 }
0x1207   :  { %v1921_v49 = vmul.f32 %v4655_v48, %v4655_v48 }
0x1209   :  { %v1923_v55 = vsel %vm297_vm0, %v1921_v49, 0.0 }
0x120a   :  { %1924 = vadd.xlane.f32.xlu2 %v1923_v55  ;;  %v1916_v46 = vpop.xlane.xlu2 %1915 }
0x120b   :  { %v1918_v45 = vmul.f32 %v1916_v46, %v4218_v42 }
0x120d   :  { %v4661_v47 = vsub.f32 %v1910_v51, %v1918_v45 }
0x120f   :  { %v1922_v36 = vmul.f32 %v4661_v47, %v4661_v47 }
0x1211   :  { %v1926_v40 = vsel %vm297_vm0, %v1922_v36, 0.0 }
0x1212   :  { %1927 = vadd.xlane.f32.xlu1 %v1926_v40 }
0x1213   :  { %3756 = shalt.err (!%p3753_p4)  }
0x1214   :  { %278 = dma.hbm_to_vmem [thread:$0]  %s274_s23, 32768, %s276_s28, [#allocation5 + $0x1] }
0x1215   :  { %s3874_s11 = smov [#allocation4]   ;;  %s3769_s5 = sshra.s32 %s288_s1, 4  ;;  %s3770_s5 = int_to_ptr.hbm [resolvable:$true] %s3769_s5 }
0x1216   :  { %s289_s0 = sshll.u32 %s3874_s11, 4  ;;  %s3771_s13 = scalar_lea.hbm %s3770_s5, 512  ;;  %s290_s0 = int_to_ptr.vmem [resolvable:$true] %s289_s0 }
0x1217   :  { %p3772_p5 = scmp.ne.s32.totalorder %s3770_s5, %s3771_s13  ;;  %s3773_s17 = scalar_lea.hbm %s4111_s4, 512 }
0x1218   :  { %p3774_p6 = scmp.lt.s32.totalorder %s3770_s5, %s4111_s4  ;;  %p3775_p7 = scmp.lt.s32.totalorder %s3773_s17, %s3771_s13 }
0x121a   :  { %p3776_p8 = por %p3775_p7, %p3774_p6 }
0x121c   :  { %p3777_p9 = pnand %p3776_p8, %p3772_p5 }
0x121e   :  { %3780 = shalt.err (!%p3777_p9)  }
0x121f   :  { %292 = dma.hbm_to_vmem [thread:$0]  %s288_s1, 8192, %s290_s0, [#allocation5 + $0x2]  ;;  %v1965_v3 = vlaneseq  ;;  %2059 = vmatpush.msrb.mxu1 %v4203_v28  ;;  %2079 = vmatpush.msrb.mxu2 %v4206_v29 }
0x1220   :  { %s5046_s27 = sld [smem:[#allocation39_spill]] }
0x1221   :  { %s5047_s4 = sld [smem:[#allocation40_spill]]  ;;  %v1966_v54 = vshrl.u32 %v1965_v3, 7  ;;  %v1968_v49 = vand.u32 127, %v1965_v3 }
0x1222   :  { %s5048_s21 = sld [smem:[#allocation41_spill]] }
0x1223   :  { %s5049_s25 = sld [smem:[#allocation42_spill]]  ;;  %v1969_v55 = vmul.u32 8, %v1966_v54 }
0x1224   :  { %s5050_s29 = sld [smem:[#allocation43_spill]] }
0x1225   :  { %s5051_s3 = sld [smem:[#allocation44_spill]]  ;;  %vm1970_vm4 = vcmp.eq.s32.totalorder %v1968_v49, %v1969_v55 }
0x1226   :  { %v3633_v34 = vld [vmem:[%s5046_s27] ss:$0 sm:$0xff]  ;;  %s5052_s8 = sld [smem:[#allocation45_spill]] }
0x1227   :  { %s5053_s14 = sld [smem:[#allocation46_spill]]  ;;  %v3634_v36 = vld [vmem:[%s5047_s4] ss:$0 sm:$0xff] }
0x1228   :  { %s5054_s19 = sld [smem:[#allocation47_spill]] }
0x127d   :  { %v1925_v38 = vpop.xlane.xlu2 %1924 }
0x127e   :  { %v1929_v52 = vmul.f32 %v1925_v38, %v4218_v42 }
0x1280   :  { %v1931_v56 = vadd.f32 1e-05, %v1929_v52 }
0x1282   :  { %3701 = vrsqrt.f32 %v1931_v56  ;;  %vm1939_vm14 = vweird.f32 %v1931_v56 }
0x1285   :  { %v1928_v33 = vpop.xlane.xlu1 %1927 }
0x1286   :  { %v1930_v39 = vmul.f32 %v1928_v33, %v4218_v42  ;;  %v4680_v33 = vld [vmem:[%s5048_s21] sm:$0xf] }
0x1288   :  { %v3702_v63 = vpop.eup %3701  ;;  %v1932_v60 = vadd.f32 1e-05, %v1930_v39  ;;  %v4683_v39 = vld [vmem:[%s5049_s25] sm:$0xf] }
0x1289   :  { %v1934_v50 = vmul.f32 %v3702_v63, %v1931_v56  ;;  %vm1940_vm13 = vweird.f32 %v3702_v63 }
0x128a   :  { %3703 = vrsqrt.f32 %v1932_v60  ;;  %vm1941_vm15 = vmor %vm1939_vm14, %vm1940_vm13  ;;  %vm1949_vm2 = vweird.f32 %v1932_v60 }
0x128b   :  { %v1935_v62 = vmul.f32 %v3702_v63, %v1934_v50  ;;  %v4692_v50 = vld [vmem:[%s5052_s8] sm:$0xf] }
0x128d   :  { %v1936_v35 = vmul.f32 0.5, %v1935_v62  ;;  %v4698_v62 = vld [vmem:[%s5054_s19] sm:$0x1] }
0x128f   :  { %v1937_v32 = vsub.f32 1.5, %v1936_v35 }
0x1290   :  { %v3704_v61 = vpop.eup %3703 }
0x1291   :  { %v1944_v57 = vmul.f32 %v3704_v61, %v1932_v60  ;;  %v1938_v58 = vmul.f32 %v3702_v63, %v1937_v32  ;;  %vm1950_vm1 = vweird.f32 %v3704_v61  ;;  %v4695_v60 = vld [vmem:[%s5053_s14] sm:$0xf] }
0x1292   :  { %vm1951_vm3 = vmor %vm1949_vm2, %vm1950_vm1 }
0x1293   :  { %v1945_v43 = vmul.f32 %v3704_v61, %v1944_v57  ;;  %v1942_v53 = vsel %vm1941_vm15, %v3702_v63, %v1938_v58  ;;  %v4689_v63 = vld [vmem:[%s5051_s3] sm:$0xf] }
0x1294   :  { %v1953_v41 = vmul.f32 %v1942_v53, %v4655_v48  ;;  %v3875_v48 = vmov 0.0  }
0x1295   :  { %v1946_v37 = vmul.f32 0.5, %v1945_v43  ;;  %v3545_v56 = vsel %vm1970_vm4, 1.0, %v3875_v48 }
0x1296   :  { %v1958_v40 = vmul.f32 %v3633_v34, %v1953_v41 }
0x1297   :  { %v1947_v42 = vsub.f32 1.5, %v1946_v37 }
0x1298   :  { %v1963_v52 = vadd.f32 %v3634_v36, %v1958_v40 }
0x1299   :  { %v1948_v51 = vmul.f32 %v3704_v61, %v1947_v42 }
0x129b   :  { %v1952_v44 = vsel %vm1951_vm3, %v3704_v61, %v1948_v51 }
0x129c   :  { %v1954_v46 = vmul.f32 %v1952_v44, %v4661_v47  ;;  %v4686_v47 = vld [vmem:[%s5050_s29] sm:$0xf] }
0x129e   :  { %v1959_v45 = vmul.f32 %v3633_v34, %v1954_v46 }
0x12a0   :  { %v1964_v38 = vadd.f32 %v3634_v36, %v1959_v45 }
0x12a2   :  { %1990 = vmatpush.msra.mxu0 %v1964_v38 }
0x12a4   :  { %1991 = vmatpush.msra.mxu0 %v1963_v52 }
0x12a5   :  { %3546 = vmatmul.msk.f32.vlgmr.msra.gmra.mxu0 %vm539_vm9, %v3545_v56 }
0x1322   :  { %v1993_v35 = vpop.f32.mrf.mxu0 }
0x1323   :  { %3817 = dma.done.wait [#allocation5], 4096 }
0x1324   :  { %3818 = vsyncadd [#allocation5], 4294963200  ;;  %2099 = vmatpush.msrb.mxu0 %v4209_v30  ;;  %2060 = vmatpush.msrb.mxu1 %v4191_v24  ;;  %vm2131_vm9 = vcmask 1041408   ;;  %v2183_v52 = vperm.slane %v4683_v39, 0  ;;  %v2184_v56 = vperm.slane %v4683_v39, 1 }
0x1325   :  { %2080 = vmatpush.msrb.mxu2 %v4194_v25 }
0x1326   :  { %2100 = vmatpush.msrb.mxu0 %v4197_v26  ;;  %2061 = vmatpush.msrb.mxu1 %v4179_v20 }
0x1327   :  { %2081 = vmatpush.msrb.mxu2 %v4182_v21  ;;  %v3876_v21 = vmov 512.0  }
0x1328   :  { %2101 = vmatpush.msrb.mxu0 %v4185_v22  ;;  %2062 = vmatpush.msrb.mxu1 %v4167_v16  ;;  %3707 = vrcp.f32 %v3876_v21 }
0x1329   :  { %2082 = vmatpush.msrb.mxu2 %v4170_v17 }
0x132a   :  { %2102 = vmatpush.msrb.mxu0 %v4173_v18  ;;  %2063 = vmatpush.msrb.mxu1 %v4155_v12 }
0x132b   :  { %2083 = vmatpush.msrb.mxu2 %v4158_v13  ;;  %v2043_v13 = vperm.slane %v4680_v33, 3 }
0x132c   :  { %2103 = vmatpush.msrb.mxu0 %v4161_v14  ;;  %2064 = vmatpush.msrb.mxu1 %v4143_v8  ;;  %v2042_v8 = vperm.slane %v4680_v33, 2 }
0x132d   :  { %2084 = vmatpush.msrb.mxu2 %v4146_v9 }
0x132e   :  { %2104 = vmatpush.msrb.mxu0 %v4149_v10  ;;  %2065 = vmatpush.msrb.mxu1 %v4131_v4  ;;  %v2041_v4 = vperm.slane %v4680_v33, 1  ;;  %v3708_v22 = vpop.eup %3707 }
0x132f   :  { %2085 = vmatpush.msrb.mxu2 %v4134_v5 }
0x1330   :  { %2105 = vmatpush.msrb.mxu0 %v4137_v6  ;;  %2066 = vmatpush.msrb.mxu1 %v4119_v0  ;;  %v5055_v0 = vld [vmem:[#allocation48_spill] sm:$0xff] }
0x1331   :  { %2086 = vmatpush.msrb.mxu2 %v4122_v1  ;;  %3547 = vmatmul.msk.f32.vlgmr.msrb.gmra.mxu1 %vm297_vm0, %v1993_v35  ;;  %v2040_v1 = vperm.slane %v4680_v33, 0  ;;  %v2185_v33 = vperm.slane %v4683_v39, 2 }
0x1332   :  { %2119 = vmatpush.msra.mxu1 %v4212_v31  ;;  %3548 = vmatmul.msk.f32.vlgmr.msrb.gmra.mxu2 %vm297_vm0, %v1993_v35 }
0x1333   :  { %2106 = vmatpush.msrb.mxu0 %v4125_v2 }
0x1334   :  { %2120 = vmatpush.msra.mxu1 %v4200_v27  ;;  %3549 = vmatmul.msk.f32.vlgmr.msrb.gmra.mxu0 %vm297_vm0, %v1993_v35 }
0x1336   :  { %2121 = vmatpush.msra.mxu1 %v4188_v23  ;;  %v2142_v23 = vmul.f32 512.0, %v3708_v22 }
0x1338   :  { %2122 = vmatpush.msra.mxu1 %v4176_v19  ;;  %v2143_v24 = vsub.f32 1.0, %v2142_v23 }
0x133a   :  { %2123 = vmatpush.msra.mxu1 %v4164_v15  ;;  %v2144_v25 = vmul.f32 %v3708_v22, %v2143_v24 }
0x133c   :  { %2124 = vmatpush.msra.mxu1 %v4152_v11  ;;  %v2145_v26 = vadd.f32 %v3708_v22, %v2144_v25 }
0x133e   :  { %2125 = vmatpush.msra.mxu1 %v4140_v7 }
0x1340   :  { %2126 = vmatpush.msra.mxu1 %v5055_v0  ;;  %v2196_v0 = vperm.slane %v4686_v47, 0 }
0x1341   :  { %3550 = vmatmul.msk.f32.vlgmr.msra.gmra.mxu1 %vm297_vm0, %v1993_v35  ;;  %vm2146_vm0 = vweird.f32 %v3708_v22  ;;  %v2186_v35 = vperm.slane %v4683_v39, 3 }
0x1342   :  { %v4744_v27 = vsel %vm2146_vm0, %v3708_v22, %v2145_v26 }
0x13ae   :  { %v2068_v2 = vpop.f32.mrf.mxu1 }
0x13af   :  { %v2069_v5 = vadd.f32 %v2068_v2, %v2040_v1  ;;  %v2197_v1 = vperm.slane %v4686_v47, 1  ;;  %v2198_v2 = vperm.slane %v4686_v47, 2 }
0x13b1   :  { %v2108_v10 = vpop.f32.mrf.mxu0  ;;  %v2132_v11 = vsel %vm2131_vm9, %v2069_v5, 0.0 }
0x13b2   :  { %v2109_v12 = vadd.f32 %v2108_v10, %v2042_v8 }
0x13b4   :  { %v2135_v15 = vsel %vm2131_vm9, %v2109_v12, 0.0 }
0x13b5   :  { %v2088_v6 = vpop.f32.mrf.mxu2 }
0x13b6   :  { %v2089_v9 = vadd.f32 %v2088_v6, %v2041_v4  ;;  %v2199_v4 = vperm.slane %v4686_v47, 3 }
0x13b8   :  { %v2133_v7 = vsel %vm2131_vm9, %v2089_v9, 0.0 }
0x13b9   :  { %v2134_v14 = vadd.f32 %v2133_v7, %v2132_v11 }
0x13bb   :  { %v2136_v18 = vadd.f32 %v2135_v15, %v2134_v14 }
0x13be   :  { %v2128_v16 = vpop.f32.mrf.mxu1 }
0x13bf   :  { %v2129_v17 = vadd.f32 %v2128_v16, %v2043_v13 }
0x13c1   :  { %v2137_v19 = vsel %vm2131_vm9, %v2129_v17, 0.0 }
0x13c2   :  { %v2138_v20 = vadd.f32 %v2137_v19, %v2136_v18 }
0x13c4   :  { %2139 = vadd.xlane.f32.xlu0 %v2138_v20 }
0x1437   :  { %v2140_v28 = vpop.xlane.xlu0 %2139 }
0x1438   :  { %v2148_v29 = vmul.f32 %v4744_v27, %v2140_v28 }
0x143a   :  { %v2149_v30 = vsub.f32 %v2069_v5, %v2148_v29  ;;  %v2150_v31 = vsub.f32 %v2089_v9, %v2148_v29  ;;  %v2151_v32 = vsub.f32 %v2109_v12, %v2148_v29  ;;  %v2152_v61 = vsub.f32 %v2129_v17, %v2148_v29 }
0x143c   :  { %v2153_v57 = vmul.f32 %v2149_v30, %v2149_v30  ;;  %v2154_v58 = vmul.f32 %v2150_v31, %v2150_v31  ;;  %v2155_v43 = vmul.f32 %v2151_v32, %v2151_v32  ;;  %v2156_v3 = vmul.f32 %v2152_v61, %v2152_v61 }
0x143e   :  { %v2157_v37 = vsel %vm2131_vm9, %v2153_v57, 0.0  ;;  %v2158_v53 = vsel %vm2131_vm9, %v2154_v58, 0.0  ;;  %v2160_v54 = vsel %vm2131_vm9, %v2155_v43, 0.0  ;;  %v2162_v34 = vsel %vm2131_vm9, %v2156_v3, 0.0 }
0x143f   :  { %v2159_v42 = vadd.f32 %v2158_v53, %v2157_v37 }
0x1441   :  { %v2161_v51 = vadd.f32 %v2160_v54, %v2159_v42 }
0x1443   :  { %v2163_v41 = vadd.f32 %v2162_v34, %v2161_v51 }
0x1445   :  { %2164 = vadd.xlane.f32.xlu0 %v2163_v41 }
0x14b8   :  { %v2165_v44 = vpop.xlane.xlu0 %2164 }
0x14b9   :  { %v2166_v49 = vmul.f32 %v2165_v44, %v4744_v27 }
0x14bb   :  { %v2167_v55 = vadd.f32 1e-05, %v2166_v49 }
0x14bd   :  { %3709 = vrsqrt.f32 %v2167_v55  ;;  %vm2174_vm6 = vweird.f32 %v2167_v55 }
0x14c3   :  { %v3710_v46 = vpop.eup %3709 }
0x14c4   :  { %v2169_v45 = vmul.f32 %v3710_v46, %v2167_v55  ;;  %vm2175_vm5 = vweird.f32 %v3710_v46 }
0x14c5   :  { %vm2176_vm7 = vmor %vm2174_vm6, %vm2175_vm5 }
0x14c6   :  { %v2170_v36 = vmul.f32 %v3710_v46, %v2169_v45 }
0x14c8   :  { %v2171_v40 = vmul.f32 0.5, %v2170_v36 }
0x14ca   :  { %v2172_v38 = vsub.f32 1.5, %v2171_v40 }
0x14cc   :  { %v2173_v48 = vmul.f32 %v3710_v46, %v2172_v38 }
0x14ce   :  { %v2177_v5 = vsel %vm2176_vm7, %v3710_v46, %v2173_v48 }
0x14cf   :  { %v2178_v6 = vmul.f32 %v2177_v5, %v2149_v30  ;;  %v2179_v8 = vmul.f32 %v2177_v5, %v2150_v31  ;;  %v2180_v9 = vmul.f32 %v2177_v5, %v2151_v32  ;;  %v2181_v10 = vmul.f32 %v2177_v5, %v2152_v61 }
0x14d1   :  { %v2191_v11 = vmul.f32 %v2183_v52, %v2178_v6  ;;  %v2192_v7 = vmul.f32 %v2184_v56, %v2179_v8  ;;  %v2193_v12 = vmul.f32 %v2185_v33, %v2180_v9  ;;  %v2194_v13 = vmul.f32 %v2186_v35, %v2181_v10 }
0x14d3   :  { %v4760_v14 = vadd.f32 %v2196_v0, %v2191_v11  ;;  %v4762_v39 = vadd.f32 %v2197_v1, %v2192_v7  ;;  %v4764_v15 = vadd.f32 %v2198_v2, %v2193_v12  ;;  %v4766_v16 = vadd.f32 %v2199_v4, %v2194_v13 }
0x14d5   :  { %v4769_v17 = vmul.f32 0.70710677, %v4760_v14  ;;  %v4772_v47 = vmul.f32 0.70710677, %v4762_v39  ;;  %v4775_v18 = vmul.f32 0.70710677, %v4764_v15 }
0x14d6   :  { %v4778_v19 = vmul.f32 0.70710677, %v4766_v16 }
0x14d7   :  { %v4781_v20 = vand.u32 2147483647, %v4769_v17  ;;  %v4784_v21 = vand.u32 2147483647, %v4772_v47  ;;  %v4787_v22 = vand.u32 2147483647, %v4775_v18 }
0x14d8   :  { %v4790_v23 = vand.u32 2147483647, %v4778_v19 }
0x14d9   :  { %v2228_v24 = vmul.f32 0.3275911, %v4781_v20  ;;  %v2229_v25 = vmul.f32 0.3275911, %v4784_v21  ;;  %v2230_v26 = vmul.f32 0.3275911, %v4787_v22 }
0x14da   :  { %v2231_v28 = vmul.f32 0.3275911, %v4790_v23  ;;  %v2332_v53 = vsub.f32 0.0, %v4781_v20  ;;  %v2333_v42 = vsub.f32 0.0, %v4784_v21 }
0x14db   :  { %v2232_v29 = vadd.f32 1.0, %v2228_v24  ;;  %v2233_v30 = vadd.f32 1.0, %v2229_v25  ;;  %v2234_v31 = vadd.f32 1.0, %v2230_v26 }
0x14dc   :  { %v4796_v32 = vadd.f32 1.0, %v2231_v28 }
0x14dd   :  { %3711 = vrcp.f32 %v2232_v29  ;;  %v2245_v61 = vand.u32 2147483647, %v2232_v29  ;;  %v2247_v58 = vand.u32 2147483648, %v2232_v29  ;;  %v2260_v43 = vand.u32 2147483647, %v2233_v30 }
0x14de   :  { %3713 = vrcp.f32 %v2233_v30  ;;  %vm2241_vm10 = vweird.f32 %v2232_v29  ;;  %vm2256_vm11 = vweird.f32 %v2233_v30  ;;  %v2262_v34 = vand.u32 2147483648, %v2233_v30 }
0x14df   :  { %3715 = vrcp.f32 %v2234_v31  ;;  %vm4801_vm8 = vcmp.eq.f32.partialorder %v2245_v61, 8.507059e+37  ;;  %vm2271_vm12 = vweird.f32 %v2234_v31  ;;  %v2248_v46 = vor.u32 1.1754944e-38, %v2247_v58 }
0x14e0   :  { %3717 = vrcp.f32 %v4796_v32  ;;  %vm4805_vm13 = vcmp.eq.f32.partialorder %v2260_v43, 8.507059e+37  ;;  %v2275_v40 = vand.u32 2147483647, %v2234_v31  ;;  %v2263_v33 = vor.u32 1.1754944e-38, %v2262_v34 }
0x14e1   :  { %v2277_v35 = vand.u32 2147483648, %v2234_v31  ;;  %vm2286_vm3 = vweird.f32 %v4796_v32  ;;  %v2290_v5 = vand.u32 2147483647, %v4796_v32  ;;  %v2292_v6 = vand.u32 2147483648, %v4796_v32 }
0x14e2   :  { %vm2276_vm6 = vcmp.eq.f32.partialorder %v2275_v40, 8.507059e+37  ;;  %v2334_v61 = vsub.f32 0.0, %v4787_v22 }
0x14e3   :  { %v3712_v57 = vpop.eup %3711  ;;  %v2278_v12 = vor.u32 1.1754944e-38, %v2277_v35 }
0x14e4   :  { %v3714_v3 = vpop.eup %3713  ;;  %v2237_v37 = vmul.f32 %v3712_v57, %v2232_v29  ;;  %vm2242_vm14 = vweird.f32 %v3712_v57  ;;  %v2293_v29 = vor.u32 1.1754944e-38, %v2292_v6 }
0x14e5   :  { %v3716_v54 = vpop.eup %3715  ;;  %v2252_v51 = vmul.f32 %v3714_v3, %v2233_v30  ;;  %vm2257_vm15 = vweird.f32 %v3714_v3  ;;  %vm2243_vm2 = vmor %vm2241_vm10, %vm2242_vm14  ;;  %vm2291_vm10 = vcmp.eq.f32.partialorder %v2290_v5, 8.507059e+37 }
0x14e6   :  { %v2238_v41 = vsub.f32 1.0, %v2237_v37  ;;  %v2267_v49 = vmul.f32 %v3716_v54, %v2234_v31  ;;  %v3718_v55 = vpop.eup %3717  ;;  %vm2272_vm1 = vweird.f32 %v3716_v54  ;;  %vm2258_vm4 = vmor %vm2256_vm11, %vm2257_vm15  ;;  %v2335_v37 = vsub.f32 0.0, %v4790_v23 }
0x14e7   :  { %v2253_v45 = vsub.f32 1.0, %v2252_v51  ;;  %v2282_v48 = vmul.f32 %v3718_v55, %v4796_v32  ;;  %vm2287_vm0 = vweird.f32 %v3718_v55  ;;  %vm2273_vm5 = vmor %vm2271_vm12, %vm2272_vm1  ;;  %v2337_v32 = vmul.f32 %v2333_v42, %v4784_v21 }
0x14e8   :  { %v2239_v38 = vmul.f32 %v3712_v57, %v2238_v41  ;;  %v2268_v52 = vsub.f32 1.0, %v2267_v49  ;;  %vm2288_vm7 = vmor %vm2286_vm3, %vm2287_vm0  ;;  %v2338_v49 = vmul.f32 %v2334_v61, %v4787_v22  ;;  %v2339_v40 = vmul.f32 %v2335_v37, %v4790_v23 }
0x14e9   :  { %v2254_v56 = vmul.f32 %v3714_v3, %v2253_v45  ;;  %v2283_v2 = vsub.f32 1.0, %v2282_v48  ;;  %vm2216_vm11 = vcmp.lt.f32.partialorder %v4769_v17, 0.0  ;;  %vm2218_vm12 = vcmp.lt.f32.partialorder %v4775_v18, 0.0 }
0x14ea   :  { %v2240_v0 = vadd.f32 %v3712_v57, %v2239_v38  ;;  %v2269_v1 = vmul.f32 %v3716_v54, %v2268_v52  ;;  %v2346_v42 = vmul.f32 1.442695, %v2339_v40 }
0x14eb   :  { %v2255_v4 = vadd.f32 %v3714_v3, %v2254_v56  ;;  %v2284_v10 = vmul.f32 %v3718_v55, %v2283_v2 }
0x14ec   :  { %v2244_v8 = vsel %vm2243_vm2, %v3712_v57, %v2240_v0  ;;  %v2270_v9 = vadd.f32 %v3716_v54, %v2269_v1 }
0x14ed   :  { %v2249_v11 = vsel %vm4801_vm8, %v2248_v46, %v2244_v8  ;;  %v2259_v7 = vsel %vm2258_vm4, %v3714_v3, %v2255_v4  ;;  %v2285_v25 = vadd.f32 %v3718_v55, %v2284_v10  ;;  %vm2217_vm8 = vcmp.lt.f32.partialorder %v4772_v47, 0.0 }
0x14ee   :  { %v2264_v13 = vsel %vm4805_vm13, %v2263_v33, %v2259_v7  ;;  %v2274_v24 = vsel %vm2273_vm5, %v3716_v54, %v2270_v9  ;;  %v2296_v26 = vmul.f32 1.0614054, %v2249_v11  ;;  %v2336_v54 = vmul.f32 %v2332_v53, %v4781_v20 }
0x14ef   :  { %v2279_v28 = vsel %vm2276_vm6, %v2278_v12, %v2274_v24  ;;  %v2297_v30 = vmul.f32 1.0614054, %v2264_v13  ;;  %v2289_v57 = vsel %vm2288_vm7, %v3718_v55, %v2285_v25  ;;  %v2342_v33 = vmul.f32 1.442695, %v2337_v32 }
0x14f0   :  { %v2298_v31 = vmul.f32 1.0614054, %v2279_v28  ;;  %v2300_v58 = vadd.f32 -1.4531521, %v2296_v26  ;;  %v2294_v43 = vsel %vm2291_vm10, %v2293_v29, %v2289_v57  ;;  %v2340_v38 = vmul.f32 1.442695, %v2336_v54 }
0x14f1   :  { %v2301_v3 = vadd.f32 -1.4531521, %v2297_v30  ;;  %v2299_v51 = vmul.f32 1.0614054, %v2294_v43  ;;  %v2344_v53 = vmul.f32 1.442695, %v2338_v49 }
0x14f2   :  { %v2302_v34 = vadd.f32 -1.4531521, %v2298_v31  ;;  %v2304_v41 = vmul.f32 %v2300_v58, %v2249_v11  ;;  %3719 = vpow2.f32 %v2340_v38  ;;  %vm2219_vm13 = vcmp.lt.f32.partialorder %v4778_v19, 0.0 }
0x14f3   :  { %v2305_v44 = vmul.f32 %v2301_v3, %v2264_v13  ;;  %v2303_v46 = vadd.f32 -1.4531521, %v2299_v51  ;;  %3721 = vpow2.f32 %v2342_v33  ;;  %v2221_v17 = vsel %vm2217_vm8, -1.0, %v5044_v59 }
0x14f4   :  { %v2306_v45 = vmul.f32 %v2302_v34, %v2279_v28  ;;  %v2308_v55 = vadd.f32 1.4214138, %v2304_v41  ;;  %3723 = vpow2.f32 %v2344_v53  ;;  %v2222_v41 = vsel %vm2218_vm12, -1.0, %v5044_v59 }
0x14f5   :  { %v2309_v36 = vadd.f32 1.4214138, %v2305_v44  ;;  %v2307_v52 = vmul.f32 %v2303_v46, %v2294_v43  ;;  %3725 = vpow2.f32 %v2346_v42  ;;  %v2208_v32 = vmul.f32 0.5, %v4760_v14 }
0x14f6   :  { %v2310_v48 = vadd.f32 1.4214138, %v2306_v45  ;;  %v2312_v56 = vmul.f32 %v2308_v55, %v2249_v11  ;;  %v2209_v49 = vmul.f32 0.5, %v4762_v39  ;;  %v2223_v19 = vsel %vm2219_vm13, -1.0, %v5044_v59 }
0x14f7   :  { %v2313_v20 = vmul.f32 %v2309_v36, %v2264_v13  ;;  %v2311_v35 = vadd.f32 1.4214138, %v2307_v52  ;;  %v2210_v45 = vmul.f32 0.5, %v4764_v15  ;;  %v2211_v52 = vmul.f32 0.5, %v4766_v16 }
0x14f8   :  { %v2314_v0 = vmul.f32 %v2310_v48, %v2279_v28  ;;  %v2316_v1 = vadd.f32 -0.28449672, %v2312_v56  ;;  %v3720_v24 = vpop.eup %3719 }
0x14f9   :  { %v2317_v21 = vadd.f32 -0.28449672, %v2313_v20  ;;  %v2315_v22 = vmul.f32 %v2311_v35, %v2294_v43  ;;  %v3722_v26 = vpop.eup %3721 }
0x14fa   :  { %v2318_v2 = vadd.f32 -0.28449672, %v2314_v0  ;;  %v2320_v4 = vmul.f32 %v2316_v1, %v2249_v11  ;;  %v3724_v57 = vpop.eup %3723 }
0x14fb   :  { %v2321_v5 = vmul.f32 %v2317_v21, %v2264_v13  ;;  %v2319_v23 = vadd.f32 -0.28449672, %v2315_v22  ;;  %v3726_v54 = vpop.eup %3725 }
0x14fc   :  { %v2322_v6 = vmul.f32 %v2318_v2, %v2279_v28  ;;  %v2324_v8 = vadd.f32 0.2548296, %v2320_v4 }
0x14fd   :  { %v2325_v9 = vadd.f32 0.2548296, %v2321_v5  ;;  %v2323_v10 = vmul.f32 %v2319_v23, %v2294_v43 }
0x14fe   :  { %v2326_v7 = vadd.f32 0.2548296, %v2322_v6  ;;  %v2328_v12 = vmul.f32 %v2324_v8, %v2249_v11  ;;  %v2220_v11 = vsel %vm2216_vm11, -1.0, %v5044_v59 }
0x14ff   :  { %v2329_v25 = vmul.f32 %v2325_v9, %v2264_v13  ;;  %v2327_v29 = vadd.f32 0.2548296, %v2323_v10 }
0x1500   :  { %v2330_v30 = vmul.f32 %v2326_v7, %v2279_v28  ;;  %v2348_v61 = vmul.f32 %v3720_v24, %v2328_v12 }
0x1501   :  { %v2349_v31 = vmul.f32 %v3722_v26, %v2329_v25  ;;  %v2331_v58 = vmul.f32 %v2327_v29, %v2294_v43 }
0x1502   :  { %v2350_v3 = vmul.f32 %v3724_v57, %v2330_v30  ;;  %v2352_v37 = vsub.f32 1.0, %v2348_v61 }
0x1503   :  { %v2353_v13 = vsub.f32 1.0, %v2349_v31  ;;  %v2351_v51 = vmul.f32 %v3726_v54, %v2331_v58 }
0x1504   :  { %v2354_v28 = vsub.f32 1.0, %v2350_v3  ;;  %v2356_v34 = vmul.f32 %v2352_v37, %v2220_v11 }
0x1505   :  { %v2357_v47 = vmul.f32 %v2353_v13, %v2221_v17  ;;  %v2355_v18 = vsub.f32 1.0, %v2351_v51 }
0x1506   :  { %v2358_v43 = vmul.f32 %v2354_v28, %v2222_v41  ;;  %v2360_v44 = vadd.f32 1.0, %v2356_v34 }
0x1507   :  { %v2361_v46 = vadd.f32 1.0, %v2357_v47  ;;  %v2359_v55 = vmul.f32 %v2355_v18, %v2223_v19 }
0x1508   :  { %v2362_v36 = vadd.f32 1.0, %v2358_v43  ;;  %v4839_v40 = vmul.f32 %v2360_v44, %v2208_v32 }
0x1509   :  { %v4841_v38 = vmul.f32 %v2361_v46, %v2209_v49  ;;  %v2363_v48 = vadd.f32 1.0, %v2359_v55 }
0x150a   :  { %v4844_v14 = vmul.f32 %v2362_v36, %v2210_v45 }
0x150b   :  { %v4846_v56 = vmul.f32 %v2363_v48, %v2211_v52 }
0x150c   :  { %3819 = dma.done.wait [#allocation5 + $0x1], 32768 }
0x150d   :  { %3820 = vsyncadd [#allocation5 + $0x1], 4294934528  ;;  %v2432_v39 = vld [vmem:[#allocation3 + $0x1e0] sm:$0xff] }
0x150e   :  { %v2428_v33 = vld [vmem:[#allocation3 + $0x1c0] sm:$0xff]  ;;  %2637 = vmatpush.msra.mxu2 %v2432_v39 }
0x150f   :  { %v2496_v20 = vld [vmem:[#allocation3 + $0x3e0] sm:$0xff] }
0x1510   :  { %2657 = vmatpush.msra.mxu3 %v2496_v20  ;;  %v2492_v15 = vld [vmem:[#allocation3 + $0x3c0] sm:$0xff]  ;;  %2638 = vmatpush.msra.mxu2 %v2428_v33 }
0x1511   :  { %v2424_v53 = vld [vmem:[#allocation3 + $0x1a0] sm:$0xff] }
0x1512   :  { %v2488_v35 = vld [vmem:[#allocation3 + $0x3a0] sm:$0xff]  ;;  %2658 = vmatpush.msra.mxu3 %v2492_v15  ;;  %2639 = vmatpush.msra.mxu2 %v2424_v53 }
0x1513   :  { %v2560_v0 = vld [vmem:[#allocation3 + $0x5e0] sm:$0xff] }
0x1514   :  { %v2420_v1 = vld [vmem:[#allocation3 + $0x180] sm:$0xff]  ;;  %2677 = vmatpush.msra.mxu0 %v2560_v0  ;;  %2659 = vmatpush.msra.mxu3 %v2488_v35  ;;  %v2433_v35 = vld [vmem:[#allocation3 + $0x1e8] sm:$0xff] }
0x1515   :  { %v2484_v16 = vld [vmem:[#allocation3 + $0x380] sm:$0xff]  ;;  %2640 = vmatpush.msra.mxu2 %v2420_v1  ;;  %v2497_v0 = vld [vmem:[#allocation3 + $0x3e8] sm:$0xff] }
0x1516   :  { %v2556_v21 = vld [vmem:[#allocation3 + $0x5c0] sm:$0xff]  ;;  %2660 = vmatpush.msra.mxu3 %v2484_v16 }
0x1517   :  { %v2416_v42 = vld [vmem:[#allocation3 + $0x160] sm:$0xff]  ;;  %2678 = vmatpush.msra.mxu0 %v2556_v21  ;;  %v2429_v21 = vld [vmem:[#allocation3 + $0x1c8] sm:$0xff] }
0x1518   :  { %v2624_v22 = vld [vmem:[#allocation3 + $0x7e0] sm:$0xff]  ;;  %2641 = vmatpush.msra.mxu2 %v2416_v42  ;;  %v2493_v42 = vld [vmem:[#allocation3 + $0x3c8] sm:$0xff] }
0x1519   :  { %v2480_v2 = vld [vmem:[#allocation3 + $0x360] sm:$0xff]  ;;  %2697 = vmatpush.msrb.mxu1 %v2624_v22 }
0x151a   :  { %v2552_v4 = vld [vmem:[#allocation3 + $0x5a0] sm:$0xff]  ;;  %2661 = vmatpush.msra.mxu3 %v2480_v2 }
0x151b   :  { %v2620_v5 = vld [vmem:[#allocation3 + $0x7c0] sm:$0xff]  ;;  %2679 = vmatpush.msra.mxu0 %v2552_v4  ;;  %v2425_v4 = vld [vmem:[#allocation3 + $0x1a8] sm:$0xff] }
0x151c   :  { %v2548_v23 = vld [vmem:[#allocation3 + $0x580] sm:$0xff]  ;;  %2698 = vmatpush.msrb.mxu1 %v2620_v5  ;;  %v2489_v5 = vld [vmem:[#allocation3 + $0x3a8] sm:$0xff] }
0x151d   :  { %v2616_v6 = vld [vmem:[#allocation3 + $0x7a0] sm:$0xff]  ;;  %2680 = vmatpush.msra.mxu0 %v2548_v23  ;;  %v2561_v23 = vld [vmem:[#allocation3 + $0x5e8] sm:$0xff] }
0x151e   :  { %v2412_v8 = vld [vmem:[#allocation3 + $0x140] sm:$0xff]  ;;  %2699 = vmatpush.msrb.mxu1 %v2616_v6 }
0x151f   :  { %v2476_v9 = vld [vmem:[#allocation3 + $0x340] sm:$0xff]  ;;  %2642 = vmatpush.msra.mxu2 %v2412_v8  ;;  %v2421_v8 = vld [vmem:[#allocation3 + $0x188] sm:$0xff] }
0x1520   :  { %v2544_v10 = vld [vmem:[#allocation3 + $0x560] sm:$0xff]  ;;  %2662 = vmatpush.msra.mxu3 %v2476_v9  ;;  %v2485_v9 = vld [vmem:[#allocation3 + $0x388] sm:$0xff] }
0x1521   :  { %v2612_v7 = vld [vmem:[#allocation3 + $0x780] sm:$0xff]  ;;  %2681 = vmatpush.msra.mxu0 %v2544_v10  ;;  %v2557_v10 = vld [vmem:[#allocation3 + $0x5c8] sm:$0xff] }
0x1522   :  { %v2408_v12 = vld [vmem:[#allocation3 + $0x120] sm:$0xff]  ;;  %2700 = vmatpush.msrb.mxu1 %v2612_v7  ;;  %v2625_v7 = vld [vmem:[#allocation3 + $0x7e8] sm:$0xff] }
0x1523   :  { %v2472_v24 = vld [vmem:[#allocation3 + $0x320] sm:$0xff]  ;;  %2643 = vmatpush.msra.mxu2 %v2408_v12  ;;  %v2417_v12 = vld [vmem:[#allocation3 + $0x168] sm:$0xff] }
0x1524   :  { %v2540_v25 = vld [vmem:[#allocation3 + $0x540] sm:$0xff]  ;;  %2663 = vmatpush.msra.mxu3 %v2472_v24  ;;  %v2481_v24 = vld [vmem:[#allocation3 + $0x368] sm:$0xff] }
0x1525   :  { %v2608_v26 = vld [vmem:[#allocation3 + $0x760] sm:$0xff]  ;;  %2682 = vmatpush.msra.mxu0 %v2540_v25  ;;  %v2553_v25 = vld [vmem:[#allocation3 + $0x5a8] sm:$0xff] }
0x1526   :  { %v2404_v29 = vld [vmem:[#allocation3 + $0x100] sm:$0xff]  ;;  %2701 = vmatpush.msrb.mxu1 %v2608_v26  ;;  %v2621_v26 = vld [vmem:[#allocation3 + $0x7c8] sm:$0xff] }
0x1527   :  { %v2468_v30 = vld [vmem:[#allocation3 + $0x300] sm:$0xff]  ;;  %2644 = vmatpush.msra.mxu2 %v2404_v29  ;;  %v2413_v29 = vld [vmem:[#allocation3 + $0x148] sm:$0xff] }
0x1528   :  { %v2536_v61 = vld [vmem:[#allocation3 + $0x520] sm:$0xff]  ;;  %2664 = vmatpush.msra.mxu3 %v2468_v30  ;;  %v2477_v30 = vld [vmem:[#allocation3 + $0x348] sm:$0xff] }
0x1529   :  { %v2604_v57 = vld [vmem:[#allocation3 + $0x740] sm:$0xff]  ;;  %2683 = vmatpush.msra.mxu0 %v2536_v61  ;;  %v2549_v61 = vld [vmem:[#allocation3 + $0x588] sm:$0xff] }
0x152a   :  { %v2400_v31 = vld [vmem:[#allocation3 + $0xe0] sm:$0xff]  ;;  %2702 = vmatpush.msrb.mxu1 %v2604_v57  ;;  %v2617_v57 = vld [vmem:[#allocation3 + $0x7a8] sm:$0xff] }
0x152b   :  { %v2464_v58 = vld [vmem:[#allocation3 + $0x2e0] sm:$0xff]  ;;  %2645 = vmatpush.msra.mxu2 %v2400_v31  ;;  %v2409_v31 = vld [vmem:[#allocation3 + $0x128] sm:$0xff] }
0x152c   :  { %v2532_v3 = vld [vmem:[#allocation3 + $0x500] sm:$0xff]  ;;  %2665 = vmatpush.msra.mxu3 %v2464_v58  ;;  %v2473_v58 = vld [vmem:[#allocation3 + $0x328] sm:$0xff] }
0x152d   :  { %v2600_v37 = vld [vmem:[#allocation3 + $0x720] sm:$0xff]  ;;  %2684 = vmatpush.msra.mxu0 %v2532_v3  ;;  %v2545_v3 = vld [vmem:[#allocation3 + $0x568] sm:$0xff] }
0x152e   :  { %v2396_v54 = vld [vmem:[#allocation3 + $0xc0] sm:$0xff]  ;;  %2703 = vmatpush.msrb.mxu1 %v2600_v37  ;;  %v2613_v37 = vld [vmem:[#allocation3 + $0x788] sm:$0xff] }
0x152f   :  { %v2460_v11 = vld [vmem:[#allocation3 + $0x2c0] sm:$0xff]  ;;  %2646 = vmatpush.msra.mxu2 %v2396_v54  ;;  %v2405_v54 = vld [vmem:[#allocation3 + $0x108] sm:$0xff] }
0x1530   :  { %v2528_v13 = vld [vmem:[#allocation3 + $0x4e0] sm:$0xff]  ;;  %2666 = vmatpush.msra.mxu3 %v2460_v11  ;;  %v2469_v11 = vld [vmem:[#allocation3 + $0x308] sm:$0xff] }
0x1531   :  { %v2596_v17 = vld [vmem:[#allocation3 + $0x700] sm:$0xff]  ;;  %2685 = vmatpush.msra.mxu0 %v2528_v13  ;;  %v2541_v13 = vld [vmem:[#allocation3 + $0x548] sm:$0xff] }
0x1532   :  { %v2392_v51 = vld [vmem:[#allocation3 + $0xa0] sm:$0xff]  ;;  %2704 = vmatpush.msrb.mxu1 %v2596_v17  ;;  %v2609_v17 = vld [vmem:[#allocation3 + $0x768] sm:$0xff] }
0x1533   :  { %v2456_v28 = vld [vmem:[#allocation3 + $0x2a0] sm:$0xff]  ;;  %2647 = vmatpush.msra.mxu2 %v2392_v51  ;;  %v2401_v51 = vld [vmem:[#allocation3 + $0xe8] sm:$0xff] }
0x1534   :  { %v2524_v34 = vld [vmem:[#allocation3 + $0x4c0] sm:$0xff]  ;;  %2667 = vmatpush.msra.mxu3 %v2456_v28  ;;  %v2465_v28 = vld [vmem:[#allocation3 + $0x2e8] sm:$0xff] }
0x1535   :  { %v2592_v41 = vld [vmem:[#allocation3 + $0x6e0] sm:$0xff]  ;;  %2686 = vmatpush.msra.mxu0 %v2524_v34  ;;  %v2537_v34 = vld [vmem:[#allocation3 + $0x528] sm:$0xff] }
0x1536   :  { %v2388_v47 = vld [vmem:[#allocation3 + $0x80] sm:$0xff]  ;;  %2705 = vmatpush.msrb.mxu1 %v2592_v41  ;;  %v2605_v41 = vld [vmem:[#allocation3 + $0x748] sm:$0xff] }
0x1537   :  { %v2452_v32 = vld [vmem:[#allocation3 + $0x280] sm:$0xff]  ;;  %2648 = vmatpush.msra.mxu2 %v2388_v47  ;;  %v2397_v47 = vld [vmem:[#allocation3 + $0xc8] sm:$0xff] }
0x1538   :  { %v2520_v18 = vld [vmem:[#allocation3 + $0x4a0] sm:$0xff]  ;;  %2668 = vmatpush.msra.mxu3 %v2452_v32  ;;  %v2461_v32 = vld [vmem:[#allocation3 + $0x2c8] sm:$0xff] }
0x1539   :  { %v2588_v43 = vld [vmem:[#allocation3 + $0x6c0] sm:$0xff]  ;;  %2687 = vmatpush.msra.mxu0 %v2520_v18  ;;  %v2533_v18 = vld [vmem:[#allocation3 + $0x508] sm:$0xff] }
0x153a   :  { %v2384_v44 = vld [vmem:[#allocation3 + $0x60] sm:$0xff]  ;;  %2706 = vmatpush.msrb.mxu1 %v2588_v43  ;;  %v2393_v43 = vld [vmem:[#allocation3 + $0xa8] sm:$0xff] }
0x153b   :  { %v2448_v49 = vld [vmem:[#allocation3 + $0x260] sm:$0xff]  ;;  %2649 = vmatpush.msra.mxu2 %v2384_v44  ;;  %v2457_v44 = vld [vmem:[#allocation3 + $0x2a8] sm:$0xff] }
0x153c   :  { %v2516_v19 = vld [vmem:[#allocation3 + $0x480] sm:$0xff]  ;;  %2669 = vmatpush.msra.mxu3 %v2448_v49  ;;  %v2601_v49 = vld [vmem:[#allocation3 + $0x728] sm:$0xff] }
0x153d   :  { %v2584_v46 = vld [vmem:[#allocation3 + $0x6a0] sm:$0xff]  ;;  %2688 = vmatpush.msra.mxu0 %v2516_v19  ;;  %v2389_v19 = vld [vmem:[#allocation3 + $0x88] sm:$0xff] }
0x153e   :  { %v2380_v45 = vld [vmem:[#allocation3 + $0x40] sm:$0xff]  ;;  %2707 = vmatpush.msrb.mxu1 %v2584_v46  ;;  %v2453_v46 = vld [vmem:[#allocation3 + $0x288] sm:$0xff] }
0x153f   :  { %v2444_v55 = vld [vmem:[#allocation3 + $0x240] sm:$0xff]  ;;  %2650 = vmatpush.msra.mxu2 %v2380_v45  ;;  %v2529_v45 = vld [vmem:[#allocation3 + $0x4e8] sm:$0xff] }
0x1540   :  { %v2512_v36 = vld [vmem:[#allocation3 + $0x460] sm:$0xff]  ;;  %2670 = vmatpush.msra.mxu3 %v2444_v55  ;;  %v2597_v55 = vld [vmem:[#allocation3 + $0x708] sm:$0xff] }
0x1541   :  { %v2580_v52 = vld [vmem:[#allocation3 + $0x680] sm:$0xff]  ;;  %2689 = vmatpush.msra.mxu0 %v2512_v36  ;;  %v2385_v36 = vld [vmem:[#allocation3 + $0x68] sm:$0xff] }
0x1542   :  { %v2376_v48 = vld [vmem:[#allocation3 + $0x20] sm:$0xff]  ;;  %2708 = vmatpush.msrb.mxu1 %v2580_v52  ;;  %v2449_v52 = vld [vmem:[#allocation3 + $0x268] sm:$0xff] }
0x1543   :  { %v2440_v39 = vld [vmem:[#allocation3 + $0x220] sm:$0xff]  ;;  %2651 = vmatpush.msra.mxu2 %v2376_v48  ;;  %v2525_v48 = vld [vmem:[#allocation3 + $0x4c8] sm:$0xff] }
0x1544   :  { %v2508_v33 = vld [vmem:[#allocation3 + $0x440] sm:$0xff]  ;;  %2671 = vmatpush.msra.mxu3 %v2440_v39  ;;  %v2593_v39 = vld [vmem:[#allocation3 + $0x6e8] sm:$0xff] }
0x1545   :  { %v2576_v20 = vld [vmem:[#allocation3 + $0x660] sm:$0xff]  ;;  %2690 = vmatpush.msra.mxu0 %v2508_v33  ;;  %v2381_v33 = vld [vmem:[#allocation3 + $0x48] sm:$0xff] }
0x1546   :  { %v2372_v15 = vld [vmem:[#allocation3] sm:$0xff]  ;;  %2709 = vmatpush.msrb.mxu1 %v2576_v20  ;;  %v2445_v20 = vld [vmem:[#allocation3 + $0x248] sm:$0xff] }
0x1547   :  { %v2436_v53 = vld [vmem:[#allocation3 + $0x200] sm:$0xff]  ;;  %2652 = vmatpush.msra.mxu2 %v2372_v15  ;;  %v2521_v15 = vld [vmem:[#allocation3 + $0x4a8] sm:$0xff] }
0x1548   :  { %v2504_v1 = vld [vmem:[#allocation3 + $0x420] sm:$0xff]  ;;  %2672 = vmatpush.msra.mxu3 %v2436_v53  ;;  %2653 = vmatmul.f32.vlgmr.msra.gmra.mxu2 %v4839_v40  ;;  %v2589_v53 = vld [vmem:[#allocation3 + $0x6c8] sm:$0xff] }
0x1549   :  { %v2572_v16 = vld [vmem:[#allocation3 + $0x640] sm:$0xff]  ;;  %2717 = vmatpush.msrb.mxu2 %v2433_v35  ;;  %2691 = vmatpush.msra.mxu0 %v2504_v1  ;;  %v2377_v35 = vld [vmem:[#allocation3 + $0x28] sm:$0xff] }
0x154a   :  { %2737 = vmatpush.msrb.mxu3 %v2497_v0  ;;  %v2500_v22 = vld [vmem:[#allocation3 + $0x400] sm:$0xff]  ;;  %2710 = vmatpush.msrb.mxu1 %v2572_v16  ;;  %v2441_v0 = vld [vmem:[#allocation3 + $0x228] sm:$0xff] }
0x154b   :  { %v2568_v2 = vld [vmem:[#allocation3 + $0x620] sm:$0xff]  ;;  %2718 = vmatpush.msrb.mxu2 %v2429_v21  ;;  %2692 = vmatpush.msra.mxu0 %v2500_v22  ;;  %v2517_v1 = vld [vmem:[#allocation3 + $0x488] sm:$0xff]  ;;  %v2434_v22 = vld [vmem:[#allocation3 + $0x1f0] sm:$0xff] }
0x154c   :  { %2738 = vmatpush.msrb.mxu3 %v2493_v42  ;;  %v2564_v6 = vld [vmem:[#allocation3 + $0x600] sm:$0xff]  ;;  %2711 = vmatpush.msrb.mxu1 %v2568_v2  ;;  %v2585_v16 = vld [vmem:[#allocation3 + $0x6a8] sm:$0xff]  ;;  %v2498_v2 = vld [vmem:[#allocation3 + $0x3f0] sm:$0xff] }
0x154d   :  { %2719 = vmatpush.msrb.mxu2 %v2425_v4  ;;  %2757 = vmatpush.msrb.mxu0 %v2561_v23  ;;  %v2373_v21 = vld [vmem:[#allocation3 + $0x8] sm:$0xff] }
0x154e   :  { %2739 = vmatpush.msrb.mxu3 %v2489_v5  ;;  %2712 = vmatpush.msrb.mxu1 %v2564_v6  ;;  %v2437_v42 = vld [vmem:[#allocation3 + $0x208] sm:$0xff]  ;;  %v2430_v5 = vld [vmem:[#allocation3 + $0x1d0] sm:$0xff] }
0x154f   :  { %2720 = vmatpush.msrb.mxu2 %v2421_v8  ;;  %2758 = vmatpush.msrb.mxu0 %v2557_v10  ;;  %v2513_v4 = vld [vmem:[#allocation3 + $0x468] sm:$0xff]  ;;  %v2494_v6 = vld [vmem:[#allocation3 + $0x3d0] sm:$0xff] }
0x1550   :  { %2740 = vmatpush.msrb.mxu3 %v2485_v9  ;;  %2777 = vmatpush.msra.mxu1 %v2625_v7  ;;  %v2581_v23 = vld [vmem:[#allocation3 + $0x688] sm:$0xff]  ;;  %v2426_v8 = vld [vmem:[#allocation3 + $0x1b0] sm:$0xff] }
0x1551   :  { %2721 = vmatpush.msrb.mxu2 %v2417_v12  ;;  %2759 = vmatpush.msrb.mxu0 %v2553_v25  ;;  %v2509_v9 = vld [vmem:[#allocation3 + $0x448] sm:$0xff]  ;;  %v2490_v7 = vld [vmem:[#allocation3 + $0x3b0] sm:$0xff] }
0x1552   :  { %2741 = vmatpush.msrb.mxu3 %v2481_v24  ;;  %2778 = vmatpush.msra.mxu1 %v2621_v26  ;;  %v2577_v10 = vld [vmem:[#allocation3 + $0x668] sm:$0xff]  ;;  %v2422_v12 = vld [vmem:[#allocation3 + $0x190] sm:$0xff] }
0x1553   :  { %2722 = vmatpush.msrb.mxu2 %v2413_v29  ;;  %2760 = vmatpush.msrb.mxu0 %v2549_v61  ;;  %v2505_v24 = vld [vmem:[#allocation3 + $0x428] sm:$0xff]  ;;  %v2486_v26 = vld [vmem:[#allocation3 + $0x390] sm:$0xff] }
0x1554   :  { %2742 = vmatpush.msrb.mxu3 %v2477_v30  ;;  %2779 = vmatpush.msra.mxu1 %v2617_v57  ;;  %v2573_v25 = vld [vmem:[#allocation3 + $0x648] sm:$0xff]  ;;  %v2418_v29 = vld [vmem:[#allocation3 + $0x170] sm:$0xff] }
0x1555   :  { %2723 = vmatpush.msrb.mxu2 %v2409_v31  ;;  %2761 = vmatpush.msrb.mxu0 %v2545_v3  ;;  %v2501_v30 = vld [vmem:[#allocation3 + $0x408] sm:$0xff]  ;;  %v2414_v57 = vld [vmem:[#allocation3 + $0x150] sm:$0xff] }
0x1556   :  { %2743 = vmatpush.msrb.mxu3 %v2473_v58  ;;  %2780 = vmatpush.msra.mxu1 %v2613_v37  ;;  %v2569_v61 = vld [vmem:[#allocation3 + $0x628] sm:$0xff]  ;;  %v2482_v31 = vld [vmem:[#allocation3 + $0x370] sm:$0xff] }
0x1557   :  { %2724 = vmatpush.msrb.mxu2 %v2405_v54  ;;  %2762 = vmatpush.msrb.mxu0 %v2541_v13  ;;  %v2562_v58 = vld [vmem:[#allocation3 + $0x5f0] sm:$0xff]  ;;  %v2565_v3 = vld [vmem:[#allocation3 + $0x608] sm:$0xff] }
0x1558   :  { %2744 = vmatpush.msrb.mxu3 %v2469_v11  ;;  %2781 = vmatpush.msra.mxu1 %v2609_v17  ;;  %v2410_v37 = vld [vmem:[#allocation3 + $0x130] sm:$0xff] }
0x1559   :  { %2725 = vmatpush.msrb.mxu2 %v2401_v51  ;;  %2763 = vmatpush.msrb.mxu0 %v2537_v34  ;;  %v2478_v54 = vld [vmem:[#allocation3 + $0x350] sm:$0xff] }
0x155a   :  { %2745 = vmatpush.msrb.mxu3 %v2465_v28  ;;  %2782 = vmatpush.msra.mxu1 %v2605_v41  ;;  %v2558_v11 = vld [vmem:[#allocation3 + $0x5d0] sm:$0xff] }
0x155b   :  { %2726 = vmatpush.msrb.mxu2 %v2397_v47  ;;  %2764 = vmatpush.msrb.mxu0 %v2533_v18  ;;  %v2626_v13 = vld [vmem:[#allocation3 + $0x7f0] sm:$0xff] }
0x155c   :  { %2746 = vmatpush.msrb.mxu3 %v2461_v32  ;;  %2783 = vmatpush.msra.mxu1 %v2601_v49  ;;  %v2406_v17 = vld [vmem:[#allocation3 + $0x110] sm:$0xff] }
0x155d   :  { %2727 = vmatpush.msrb.mxu2 %v2393_v43  ;;  %2673 = vmatmul.f32.vlgmr.msra.gmra.mxu3 %v4841_v38  ;;  %v2474_v51 = vld [vmem:[#allocation3 + $0x330] sm:$0xff] }
0x155e   :  { %2747 = vmatpush.msrb.mxu3 %v2457_v44  ;;  %2765 = vmatpush.msrb.mxu0 %v2529_v45  ;;  %v2554_v28 = vld [vmem:[#allocation3 + $0x5b0] sm:$0xff] }
0x155f   :  { %2728 = vmatpush.msrb.mxu2 %v2389_v19  ;;  %2784 = vmatpush.msra.mxu1 %v2597_v55  ;;  %v2622_v34 = vld [vmem:[#allocation3 + $0x7d0] sm:$0xff] }
0x1560   :  { %2748 = vmatpush.msrb.mxu3 %v2453_v46  ;;  %2766 = vmatpush.msrb.mxu0 %v2525_v48  ;;  %v2402_v41 = vld [vmem:[#allocation3 + $0xf0] sm:$0xff] }
0x1561   :  { %2729 = vmatpush.msrb.mxu2 %v2385_v36  ;;  %2785 = vmatpush.msra.mxu1 %v2593_v39  ;;  %v2470_v47 = vld [vmem:[#allocation3 + $0x310] sm:$0xff] }
0x1562   :  { %2749 = vmatpush.msrb.mxu3 %v2449_v52  ;;  %2767 = vmatpush.msrb.mxu0 %v2521_v15  ;;  %v2550_v32 = vld [vmem:[#allocation3 + $0x590] sm:$0xff] }
0x1563   :  { %2730 = vmatpush.msrb.mxu2 %v2381_v33  ;;  %2786 = vmatpush.msra.mxu1 %v2589_v53  ;;  %v2618_v18 = vld [vmem:[#allocation3 + $0x7b0] sm:$0xff] }
0x1564   :  { %2750 = vmatpush.msrb.mxu3 %v2445_v20  ;;  %2768 = vmatpush.msrb.mxu0 %v2517_v1  ;;  %v2398_v43 = vld [vmem:[#allocation3 + $0xd0] sm:$0xff] }
0x1565   :  { %2731 = vmatpush.msrb.mxu2 %v2377_v35  ;;  %2787 = vmatpush.msra.mxu1 %v2585_v16  ;;  %v2466_v44 = vld [vmem:[#allocation3 + $0x2f0] sm:$0xff] }
0x1566   :  { %2751 = vmatpush.msrb.mxu3 %v2441_v0  ;;  %2693 = vmatmul.f32.vlgmr.msra.gmra.mxu0 %v4844_v14  ;;  %v2546_v49 = vld [vmem:[#allocation3 + $0x570] sm:$0xff] }
0x1567   :  { %2732 = vmatpush.msrb.mxu2 %v2373_v21  ;;  %2769 = vmatpush.msrb.mxu0 %v2513_v4  ;;  %v2614_v19 = vld [vmem:[#allocation3 + $0x790] sm:$0xff] }
0x1568   :  { %2752 = vmatpush.msrb.mxu3 %v2437_v42  ;;  %2733 = vmatmul.f32.vlgmr.msrb.gmra.mxu2 %v4839_v40  ;;  %v2394_v46 = vld [vmem:[#allocation3 + $0xb0] sm:$0xff] }
0x1569   :  { %2797 = vmatpush.msra.mxu2 %v2434_v22  ;;  %2753 = vmatmul.f32.vlgmr.msrb.gmra.mxu3 %v4841_v38  ;;  %v2462_v45 = vld [vmem:[#allocation3 + $0x2d0] sm:$0xff] }
0x156a   :  { %2817 = vmatpush.msra.mxu3 %v2498_v2  ;;  %2788 = vmatpush.msra.mxu1 %v2581_v23  ;;  %v2542_v55 = vld [vmem:[#allocation3 + $0x550] sm:$0xff] }
0x156b   :  { %2798 = vmatpush.msra.mxu2 %v2430_v5  ;;  %2713 = vmatmul.f32.vlgmr.msrb.gmra.mxu1 %v4846_v56  ;;  %v2610_v36 = vld [vmem:[#allocation3 + $0x770] sm:$0xff] }
0x156c   :  { %2818 = vmatpush.msra.mxu3 %v2494_v6  ;;  %2770 = vmatpush.msrb.mxu0 %v2509_v9  ;;  %v2390_v52 = vld [vmem:[#allocation3 + $0x90] sm:$0xff]  ;;  %v2435_v9 = vld [vmem:[#allocation3 + $0x1f8] sm:$0xff] }
0x156d   :  { %2799 = vmatpush.msra.mxu2 %v2426_v8  ;;  %2789 = vmatpush.msra.mxu1 %v2577_v10  ;;  %v2458_v48 = vld [vmem:[#allocation3 + $0x2b0] sm:$0xff] }
0x156e   :  { %2819 = vmatpush.msra.mxu3 %v2490_v7  ;;  %2771 = vmatpush.msrb.mxu0 %v2505_v24  ;;  %v2538_v39 = vld [vmem:[#allocation3 + $0x530] sm:$0xff]  ;;  %v2431_v24 = vld [vmem:[#allocation3 + $0x1d8] sm:$0xff] }
0x156f   :  { %2800 = vmatpush.msra.mxu2 %v2422_v12  ;;  %2790 = vmatpush.msra.mxu1 %v2573_v25  ;;  %v2606_v33 = vld [vmem:[#allocation3 + $0x750] sm:$0xff]  ;;  %v2499_v25 = vld [vmem:[#allocation3 + $0x3f8] sm:$0xff] }
0x1570   :  { %2820 = vmatpush.msra.mxu3 %v2486_v26  ;;  %2772 = vmatpush.msrb.mxu0 %v2501_v30  ;;  %v2386_v20 = vld [vmem:[#allocation3 + $0x70] sm:$0xff]  ;;  %v2427_v30 = vld [vmem:[#allocation3 + $0x1b8] sm:$0xff] }
0x1571   :  { %2801 = vmatpush.msra.mxu2 %v2418_v29  ;;  %2791 = vmatpush.msra.mxu1 %v2569_v61  ;;  %v2454_v15 = vld [vmem:[#allocation3 + $0x290] sm:$0xff]  ;;  %v2495_v61 = vld [vmem:[#allocation3 + $0x3d8] sm:$0xff] }
0x1572   :  { %2773 = vmatmul.f32.vlgmr.msrb.gmra.mxu0 %v4844_v14  ;;  %2821 = vmatpush.msra.mxu3 %v2482_v31  ;;  %v2534_v53 = vld [vmem:[#allocation3 + $0x510] sm:$0xff] }
0x1573   :  { %2802 = vmatpush.msra.mxu2 %v2414_v57  ;;  %2837 = vmatpush.msra.mxu0 %v2562_v58  ;;  %v2602_v35 = vld [vmem:[#allocation3 + $0x730] sm:$0xff]  ;;  %v2423_v58 = vld [vmem:[#allocation3 + $0x198] sm:$0xff] }
0x1574   :  { %2792 = vmatpush.msra.mxu1 %v2565_v3  ;;  %2822 = vmatpush.msra.mxu3 %v2478_v54  ;;  %v2382_v0 = vld [vmem:[#allocation3 + $0x50] sm:$0xff]  ;;  %v2491_v3 = vld [vmem:[#allocation3 + $0x3b8] sm:$0xff] }
0x1575   :  { %2793 = vmatmul.f32.vlgmr.msra.gmra.mxu1 %v4846_v56  ;;  %2803 = vmatpush.msra.mxu2 %v2410_v37  ;;  %v2450_v1 = vld [vmem:[#allocation3 + $0x270] sm:$0xff] }
0x1576   :  { %2838 = vmatpush.msra.mxu0 %v2558_v11  ;;  %2857 = vmatpush.msrb.mxu1 %v2626_v13  ;;  %v2530_v16 = vld [vmem:[#allocation3 + $0x4f0] sm:$0xff]  ;;  %v2419_v11 = vld [vmem:[#allocation3 + $0x178] sm:$0xff] }
0x1577   :  { %2804 = vmatpush.msra.mxu2 %v2406_v17  ;;  %2823 = vmatpush.msra.mxu3 %v2474_v51  ;;  %v2598_v21 = vld [vmem:[#allocation3 + $0x710] sm:$0xff]  ;;  %v2487_v13 = vld [vmem:[#allocation3 + $0x398] sm:$0xff] }
0x1578   :  { %2839 = vmatpush.msra.mxu0 %v2554_v28  ;;  %2858 = vmatpush.msrb.mxu1 %v2622_v34  ;;  %v2378_v42 = vld [vmem:[#allocation3 + $0x30] sm:$0xff]  ;;  %v2415_v28 = vld [vmem:[#allocation3 + $0x158] sm:$0xff] }
0x1579   :  { %2805 = vmatpush.msra.mxu2 %v2402_v41  ;;  %2824 = vmatpush.msra.mxu3 %v2470_v47  ;;  %v2446_v22 = vld [vmem:[#allocation3 + $0x250] sm:$0xff]  ;;  %v2483_v34 = vld [vmem:[#allocation3 + $0x378] sm:$0xff] }
0x157a   :  { %2840 = vmatpush.msra.mxu0 %v2550_v32  ;;  %2859 = vmatpush.msrb.mxu1 %v2618_v18  ;;  %v2526_v2 = vld [vmem:[#allocation3 + $0x4d0] sm:$0xff]  ;;  %v2563_v41 = vld [vmem:[#allocation3 + $0x5f8] sm:$0xff] }
0x157b   :  { %2806 = vmatpush.msra.mxu2 %v2398_v43  ;;  %2825 = vmatpush.msra.mxu3 %v2466_v44  ;;  %v2594_v4 = vld [vmem:[#allocation3 + $0x6f0] sm:$0xff]  ;;  %v2411_v32 = vld [vmem:[#allocation3 + $0x138] sm:$0xff] }
0x157c   :  { %2841 = vmatpush.msra.mxu0 %v2546_v49  ;;  %2860 = vmatpush.msrb.mxu1 %v2614_v19  ;;  %v2374_v5 = vld [vmem:[#allocation3 + $0x10] sm:$0xff]  ;;  %v2479_v18 = vld [vmem:[#allocation3 + $0x358] sm:$0xff] }
0x157d   :  { %2807 = vmatpush.msra.mxu2 %v2394_v46  ;;  %2826 = vmatpush.msra.mxu3 %v2462_v45  ;;  %v2442_v23 = vld [vmem:[#allocation3 + $0x230] sm:$0xff]  ;;  %v2559_v43 = vld [vmem:[#allocation3 + $0x5d8] sm:$0xff] }
0x157e   :  { %2842 = vmatpush.msra.mxu0 %v2542_v55  ;;  %2861 = vmatpush.msrb.mxu1 %v2610_v36  ;;  %v2522_v6 = vld [vmem:[#allocation3 + $0x4b0] sm:$0xff]  ;;  %v2627_v44 = vld [vmem:[#allocation3 + $0x7f8] sm:$0xff] }
0x157f   :  { %2808 = vmatpush.msra.mxu2 %v2390_v52  ;;  %2827 = vmatpush.msra.mxu3 %v2458_v48  ;;  %v2590_v8 = vld [vmem:[#allocation3 + $0x6d0] sm:$0xff]  ;;  %v2407_v49 = vld [vmem:[#allocation3 + $0x118] sm:$0xff] }
0x1580   :  { %2843 = vmatpush.msra.mxu0 %v2538_v39  ;;  %2862 = vmatpush.msrb.mxu1 %v2606_v33  ;;  %v2438_v10 = vld [vmem:[#allocation3 + $0x210] sm:$0xff]  ;;  %v2475_v19 = vld [vmem:[#allocation3 + $0x338] sm:$0xff] }
0x1581   :  { %2809 = vmatpush.msra.mxu2 %v2386_v20  ;;  %2828 = vmatpush.msra.mxu3 %v2454_v15  ;;  %v2518_v7 = vld [vmem:[#allocation3 + $0x490] sm:$0xff]  ;;  %v2555_v46 = vld [vmem:[#allocation3 + $0x5b8] sm:$0xff] }
0x1582   :  { %2844 = vmatpush.msra.mxu0 %v2534_v53  ;;  %2863 = vmatpush.msrb.mxu1 %v2602_v35  ;;  %v2586_v12 = vld [vmem:[#allocation3 + $0x6b0] sm:$0xff]  ;;  %v2623_v45 = vld [vmem:[#allocation3 + $0x7d8] sm:$0xff] }
0x1583   :  { %2810 = vmatpush.msra.mxu2 %v2382_v0  ;;  %2829 = vmatpush.msra.mxu3 %v2450_v1  ;;  %v2514_v26 = vld [vmem:[#allocation3 + $0x470] sm:$0xff]  ;;  %v2403_v55 = vld [vmem:[#allocation3 + $0xf8] sm:$0xff] }
0x1584   :  { %2845 = vmatpush.msra.mxu0 %v2530_v16  ;;  %2864 = vmatpush.msrb.mxu1 %v2598_v21  ;;  %v2582_v29 = vld [vmem:[#allocation3 + $0x690] sm:$0xff]  ;;  %v2471_v36 = vld [vmem:[#allocation3 + $0x318] sm:$0xff] }
0x1585   :  { %2811 = vmatpush.msra.mxu2 %v2378_v42  ;;  %2830 = vmatpush.msra.mxu3 %v2446_v22  ;;  %v2510_v57 = vld [vmem:[#allocation3 + $0x450] sm:$0xff]  ;;  %v2551_v52 = vld [vmem:[#allocation3 + $0x598] sm:$0xff] }
0x1586   :  { %2846 = vmatpush.msra.mxu0 %v2526_v2  ;;  %2865 = vmatpush.msrb.mxu1 %v2594_v4  ;;  %v2578_v31 = vld [vmem:[#allocation3 + $0x670] sm:$0xff]  ;;  %v2619_v48 = vld [vmem:[#allocation3 + $0x7b8] sm:$0xff] }
0x1587   :  { %2812 = vmatpush.msra.mxu2 %v2374_v5  ;;  %2831 = vmatpush.msra.mxu3 %v2442_v23  ;;  %v2506_v37 = vld [vmem:[#allocation3 + $0x430] sm:$0xff]  ;;  %v2399_v39 = vld [vmem:[#allocation3 + $0xd8] sm:$0xff] }
0x1588   :  { %2847 = vmatpush.msra.mxu0 %v2522_v6  ;;  %2866 = vmatpush.msrb.mxu1 %v2590_v8  ;;  %v2574_v54 = vld [vmem:[#allocation3 + $0x650] sm:$0xff]  ;;  %v2467_v33 = vld [vmem:[#allocation3 + $0x2f8] sm:$0xff] }
0x1589   :  { %2813 = vmatmul.f32.vlgmr.msra.gmra.mxu2 %v4839_v40  ;;  %2832 = vmatpush.msra.mxu3 %v2438_v10  ;;  %v2502_v17 = vld [vmem:[#allocation3 + $0x410] sm:$0xff]  ;;  %v2547_v20 = vld [vmem:[#allocation3 + $0x578] sm:$0xff] }
0x158a   :  { %2877 = vmatpush.msrb.mxu2 %v2435_v9  ;;  %2848 = vmatpush.msra.mxu0 %v2518_v7  ;;  %v2570_v51 = vld [vmem:[#allocation3 + $0x630] sm:$0xff]  ;;  %v2615_v15 = vld [vmem:[#allocation3 + $0x798] sm:$0xff] }
0x158b   :  { %2867 = vmatpush.msrb.mxu1 %v2586_v12  ;;  %2833 = vmatmul.f32.vlgmr.msra.gmra.mxu3 %v4841_v38  ;;  %v2566_v47 = vld [vmem:[#allocation3 + $0x610] sm:$0xff]  ;;  %v2395_v53 = vld [vmem:[#allocation3 + $0xb8] sm:$0xff] }
0x158c   :  { %2878 = vmatpush.msrb.mxu2 %v2431_v24  ;;  %2897 = vmatpush.msrb.mxu3 %v2499_v25  ;;  %v2463_v35 = vld [vmem:[#allocation3 + $0x2d8] sm:$0xff] }
0x158d   :  { %2849 = vmatpush.msra.mxu0 %v2514_v26  ;;  %2868 = vmatpush.msrb.mxu1 %v2582_v29  ;;  %v2543_v0 = vld [vmem:[#allocation3 + $0x558] sm:$0xff] }
0x158e   :  { %2879 = vmatpush.msrb.mxu2 %v2427_v30  ;;  %2898 = vmatpush.msrb.mxu3 %v2495_v61  ;;  %v2611_v1 = vld [vmem:[#allocation3 + $0x778] sm:$0xff] }
0x158f   :  { %2850 = vmatpush.msra.mxu0 %v2510_v57  ;;  %2869 = vmatpush.msrb.mxu1 %v2578_v31  ;;  %v2391_v16 = vld [vmem:[#allocation3 + $0x98] sm:$0xff] }
0x1590   :  { %2880 = vmatpush.msrb.mxu2 %v2423_v58  ;;  %2899 = vmatpush.msrb.mxu3 %v2491_v3  ;;  %v2459_v21 = vld [vmem:[#allocation3 + $0x2b8] sm:$0xff] }
0x1591   :  { %2851 = vmatpush.msra.mxu0 %v2506_v37  ;;  %2870 = vmatpush.msrb.mxu1 %v2574_v54  ;;  %v2539_v42 = vld [vmem:[#allocation3 + $0x538] sm:$0xff] }
0x1592   :  { %2881 = vmatpush.msrb.mxu2 %v2419_v11  ;;  %2900 = vmatpush.msrb.mxu3 %v2487_v13  ;;  %v2607_v22 = vld [vmem:[#allocation3 + $0x758] sm:$0xff] }
0x1593   :  { %2852 = vmatpush.msra.mxu0 %v2502_v17  ;;  %2871 = vmatpush.msrb.mxu1 %v2570_v51  ;;  %v2387_v2 = vld [vmem:[#allocation3 + $0x78] sm:$0xff] }
0x1594   :  { %2853 = vmatmul.f32.vlgmr.msra.gmra.mxu0 %v4844_v14  ;;  %2882 = vmatpush.msrb.mxu2 %v2415_v28  ;;  %v2455_v4 = vld [vmem:[#allocation3 + $0x298] sm:$0xff] }
0x1595   :  { %2901 = vmatpush.msrb.mxu3 %v2483_v34  ;;  %2917 = vmatpush.msrb.mxu0 %v2563_v41  ;;  %v2535_v5 = vld [vmem:[#allocation3 + $0x518] sm:$0xff] }
0x1596   :  { %2872 = vmatpush.msrb.mxu1 %v2566_v47  ;;  %2883 = vmatpush.msrb.mxu2 %v2411_v32  ;;  %v2603_v23 = vld [vmem:[#allocation3 + $0x738] sm:$0xff] }
0x1597   :  { %2873 = vmatmul.f32.vlgmr.msrb.gmra.mxu1 %v4846_v56  ;;  %2902 = vmatpush.msrb.mxu3 %v2479_v18  ;;  %v2383_v6 = vld [vmem:[#allocation3 + $0x58] sm:$0xff] }
0x1598   :  { %2918 = vmatpush.msrb.mxu0 %v2559_v43  ;;  %2937 = vmatpush.msra.mxu1 %v2627_v44  ;;  %v2451_v8 = vld [vmem:[#allocation3 + $0x278] sm:$0xff]  ;;  %v2629_v43 = vperm.slane %v4689_v63, 0  ;;  %v2630_v44 = vperm.slane %v4689_v63, 1 }
0x1599   :  { %2884 = vmatpush.msrb.mxu2 %v2407_v49  ;;  %2903 = vmatpush.msrb.mxu3 %v2475_v19  ;;  %v2531_v9 = vld [vmem:[#allocation3 + $0x4f8] sm:$0xff]  ;;  %v2631_v49 = vperm.slane %v4689_v63, 2 }
0x159a   :  { %2919 = vmatpush.msrb.mxu0 %v2555_v46  ;;  %2938 = vmatpush.msra.mxu1 %v2623_v45  ;;  %v2599_v10 = vld [vmem:[#allocation3 + $0x718] sm:$0xff] }
0x159b   :  { %2885 = vmatpush.msrb.mxu2 %v2403_v55  ;;  %2904 = vmatpush.msrb.mxu3 %v2471_v36  ;;  %v2379_v7 = vld [vmem:[#allocation3 + $0x38] sm:$0xff] }
0x159c   :  { %2920 = vmatpush.msrb.mxu0 %v2551_v52  ;;  %2939 = vmatpush.msra.mxu1 %v2619_v48  ;;  %v2447_v12 = vld [vmem:[#allocation3 + $0x258] sm:$0xff] }
0x159d   :  { %2886 = vmatpush.msrb.mxu2 %v2399_v39  ;;  %2905 = vmatpush.msrb.mxu3 %v2467_v33  ;;  %v2527_v24 = vld [vmem:[#allocation3 + $0x4d8] sm:$0xff] }
0x159e   :  { %2921 = vmatpush.msrb.mxu0 %v2547_v20  ;;  %2940 = vmatpush.msra.mxu1 %v2615_v15  ;;  %v2595_v25 = vld [vmem:[#allocation3 + $0x6f8] sm:$0xff] }
0x159f   :  { %2887 = vmatpush.msrb.mxu2 %v2395_v53  ;;  %2906 = vmatpush.msrb.mxu3 %v2463_v35  ;;  %v2375_v26 = vld [vmem:[#allocation3 + $0x18] sm:$0xff]  ;;  %v2632_v53 = vperm.slane %v4689_v63, 3 }
0x15a0   :  { %2922 = vmatpush.msrb.mxu0 %v2543_v0  ;;  %2941 = vmatpush.msra.mxu1 %v2611_v1  ;;  %v2443_v29 = vld [vmem:[#allocation3 + $0x238] sm:$0xff] }
0x15a1   :  { %2888 = vmatpush.msrb.mxu2 %v2391_v16  ;;  %2907 = vmatpush.msrb.mxu3 %v2459_v21  ;;  %v2523_v30 = vld [vmem:[#allocation3 + $0x4b8] sm:$0xff] }
0x15a2   :  { %2923 = vmatpush.msrb.mxu0 %v2539_v42  ;;  %2942 = vmatpush.msra.mxu1 %v2607_v22  ;;  %v2591_v61 = vld [vmem:[#allocation3 + $0x6d8] sm:$0xff] }
0x15a3   :  { %2889 = vmatpush.msrb.mxu2 %v2387_v2  ;;  %2908 = vmatpush.msrb.mxu3 %v2455_v4  ;;  %v2439_v57 = vld [vmem:[#allocation3 + $0x218] sm:$0xff] }
0x15a4   :  { %2924 = vmatpush.msrb.mxu0 %v2535_v5  ;;  %2943 = vmatpush.msra.mxu1 %v2603_v23  ;;  %v2519_v31 = vld [vmem:[#allocation3 + $0x498] sm:$0xff] }
0x15a5   :  { %2890 = vmatpush.msrb.mxu2 %v2383_v6  ;;  %2909 = vmatpush.msrb.mxu3 %v2451_v8  ;;  %v2587_v58 = vld [vmem:[#allocation3 + $0x6b8] sm:$0xff] }
0x15a6   :  { %2925 = vmatpush.msrb.mxu0 %v2531_v9  ;;  %2944 = vmatpush.msra.mxu1 %v2599_v10  ;;  %v2515_v3 = vld [vmem:[#allocation3 + $0x478] sm:$0xff] }
0x15a7   :  { %2891 = vmatpush.msrb.mxu2 %v2379_v7  ;;  %2910 = vmatpush.msrb.mxu3 %v2447_v12  ;;  %v2583_v37 = vld [vmem:[#allocation3 + $0x698] sm:$0xff] }
0x15a8   :  { %2926 = vmatpush.msrb.mxu0 %v2527_v24  ;;  %2945 = vmatpush.msra.mxu1 %v2595_v25  ;;  %v2511_v54 = vld [vmem:[#allocation3 + $0x458] sm:$0xff] }
0x15a9   :  { %2892 = vmatpush.msrb.mxu2 %v2375_v26  ;;  %2911 = vmatpush.msrb.mxu3 %v2443_v29  ;;  %v2579_v11 = vld [vmem:[#allocation3 + $0x678] sm:$0xff] }
0x15aa   :  { %2927 = vmatpush.msrb.mxu0 %v2523_v30  ;;  %2946 = vmatpush.msra.mxu1 %v2591_v61  ;;  %v2507_v13 = vld [vmem:[#allocation3 + $0x438] sm:$0xff] }
0x15ab   :  { %2893 = vmatmul.f32.vlgmr.msrb.gmra.mxu2 %v4839_v40  ;;  %2912 = vmatpush.msrb.mxu3 %v2439_v57  ;;  %v2575_v17 = vld [vmem:[#allocation3 + $0x658] sm:$0xff] }
0x15ac   :  { %2928 = vmatpush.msrb.mxu0 %v2519_v31  ;;  %2947 = vmatpush.msra.mxu1 %v2587_v58  ;;  %v2503_v51 = vld [vmem:[#allocation3 + $0x418] sm:$0xff] }
0x15ad   :  { %2913 = vmatmul.f32.vlgmr.msrb.gmra.mxu3 %v4841_v38  ;;  %v2571_v28 = vld [vmem:[#allocation3 + $0x638] sm:$0xff] }
0x15ae   :  { %2929 = vmatpush.msrb.mxu0 %v2515_v3  ;;  %2948 = vmatpush.msra.mxu1 %v2583_v37  ;;  %v2567_v40 = vld [vmem:[#allocation3 + $0x618] sm:$0xff] }
0x15b0   :  { %2930 = vmatpush.msrb.mxu0 %v2511_v54  ;;  %2949 = vmatpush.msra.mxu1 %v2579_v11 }
0x15b2   :  { %2931 = vmatpush.msrb.mxu0 %v2507_v13  ;;  %2950 = vmatpush.msra.mxu1 %v2575_v17 }
0x15b4   :  { %2932 = vmatpush.msrb.mxu0 %v2503_v51  ;;  %2951 = vmatpush.msra.mxu1 %v2571_v28 }
0x15b5   :  { %2933 = vmatmul.f32.vlgmr.msrb.gmra.mxu0 %v4844_v14 }
0x15b6   :  { %2952 = vmatpush.msra.mxu1 %v2567_v40 }
0x15b7   :  { %2953 = vmatmul.f32.vlgmr.msra.gmra.mxu1 %v4846_v56 }
0x15cb   :  { %v2654_v38 = vpop.f32.mrf.mxu2 }
0x15cc   :  { %v2655_v45 = vadd.f32 %v2654_v38, %v2629_v43 }
0x15e0   :  { %v2674_v34 = vpop.f32.mrf.mxu3 }
0x15e1   :  { %v2675_v56 = vadd.f32 %v2674_v34, %v2655_v45  ;;  %v3002_v45 = vperm.slane %v4692_v50, 1 }
0x15e3   :  { %v2694_v41 = vpop.f32.mrf.mxu0 }
0x15e4   :  { %v2695_v20 = vadd.f32 %v2694_v41, %v2675_v56  ;;  %v3017_v56 = vperm.slane %v4695_v60, 3 }
0x15e8   :  { %v2714_v32 = vpop.f32.mrf.mxu1 }
0x15e9   :  { %v2715_v1 = vadd.f32 %v2714_v32, %v2695_v20 }
0x15eb   :  { %v2734_v47 = vpop.f32.mrf.mxu2  ;;  %v2957_v5 = vsel %vm2131_vm9, %v2715_v1, 0.0 }
0x15ec   :  { %v2754_v18 = vpop.f32.mrf.mxu3  ;;  %v2735_v55 = vadd.f32 %v2734_v47, %v2630_v44 }
0x15ee   :  { %v2755_v48 = vadd.f32 %v2754_v18, %v2735_v55  ;;  %v3003_v55 = vperm.slane %v4692_v50, 2 }
0x15ef   :  { %v2774_v19 = vpop.f32.mrf.mxu0 }
0x15f0   :  { %v2775_v15 = vadd.f32 %v2774_v19, %v2755_v48  ;;  %v3001_v19 = vperm.slane %v4692_v50, 0 }
0x15f2   :  { %v2794_v36 = vpop.f32.mrf.mxu1 }
0x15f3   :  { %v2795_v16 = vadd.f32 %v2794_v36, %v2775_v15  ;;  %v3015_v36 = vperm.slane %v4695_v60, 1 }
0x15f5   :  { %v2958_v23 = vsel %vm2131_vm9, %v2795_v16, 0.0 }
0x15f6   :  { %v2959_v10 = vadd.f32 %v2958_v23, %v2957_v5 }
0x160c   :  { %v2814_v46 = vpop.f32.mrf.mxu2 }
0x160d   :  { %v2815_v14 = vadd.f32 %v2814_v46, %v2631_v49 }
0x160e   :  { %v2834_v52 = vpop.f32.mrf.mxu3 }
0x160f   :  { %v2835_v39 = vadd.f32 %v2834_v52, %v2815_v14  ;;  %v3004_v14 = vperm.slane %v4692_v50, 3  ;;  %v3016_v52 = vperm.slane %v4695_v60, 2 }
0x1611   :  { %v2854_v33 = vpop.f32.mrf.mxu0 }
0x1612   :  { %v2855_v35 = vadd.f32 %v2854_v33, %v2835_v39 }
0x1614   :  { %v2874_v0 = vpop.f32.mrf.mxu1 }
0x1615   :  { %v2875_v22 = vadd.f32 %v2874_v0, %v2855_v35 }
0x1617   :  { %v2960_v9 = vsel %vm2131_vm9, %v2875_v22, 0.0 }
0x1618   :  { %v2961_v12 = vadd.f32 %v2960_v9, %v2959_v10 }
0x162e   :  { %v2894_v21 = vpop.f32.mrf.mxu2 }
0x162f   :  { %v2895_v42 = vadd.f32 %v2894_v21, %v2632_v53 }
0x1630   :  { %v2914_v2 = vpop.f32.mrf.mxu3 }
0x1631   :  { %v2915_v4 = vadd.f32 %v2914_v2, %v2895_v42 }
0x1632   :  { %v2934_v6 = vpop.f32.mrf.mxu0 }
0x1633   :  { %v2935_v8 = vadd.f32 %v2934_v6, %v2915_v4 }
0x1634   :  { %v2954_v7 = vpop.f32.mrf.mxu1 }
0x1635   :  { %v2955_v63 = vadd.f32 %v2954_v7, %v2935_v8 }
0x1637   :  { %v2962_v24 = vsel %vm2131_vm9, %v2955_v63, 0.0 }
0x1638   :  { %v2963_v25 = vadd.f32 %v2962_v24, %v2961_v12 }
0x163a   :  { %2964 = vadd.xlane.f32.xlu0 %v2963_v25 }
0x16ad   :  { %v2965_v26 = vpop.xlane.xlu0 %2964 }
0x16ae   :  { %v2966_v29 = vmul.f32 %v2965_v26, %v4744_v27 }
0x16b0   :  { %v2967_v30 = vsub.f32 %v2715_v1, %v2966_v29  ;;  %v2968_v61 = vsub.f32 %v2795_v16, %v2966_v29  ;;  %v2969_v57 = vsub.f32 %v2875_v22, %v2966_v29  ;;  %v2970_v31 = vsub.f32 %v2955_v63, %v2966_v29 }
0x16b2   :  { %v2971_v58 = vmul.f32 %v2967_v30, %v2967_v30  ;;  %v2972_v3 = vmul.f32 %v2968_v61, %v2968_v61  ;;  %v2973_v37 = vmul.f32 %v2969_v57, %v2969_v57  ;;  %v2974_v54 = vmul.f32 %v2970_v31, %v2970_v31 }
0x16b4   :  { %v2975_v11 = vsel %vm2131_vm9, %v2971_v58, 0.0  ;;  %v2976_v13 = vsel %vm2131_vm9, %v2972_v3, 0.0  ;;  %v2978_v51 = vsel %vm2131_vm9, %v2973_v37, 0.0  ;;  %v2980_v40 = vsel %vm2131_vm9, %v2974_v54, 0.0 }
0x16b5   :  { %v2977_v17 = vadd.f32 %v2976_v13, %v2975_v11 }
0x16b7   :  { %v2979_v28 = vadd.f32 %v2978_v51, %v2977_v17 }
0x16b9   :  { %v2981_v38 = vadd.f32 %v2980_v40, %v2979_v28 }
0x16bb   :  { %2982 = vadd.xlane.f32.xlu0 %v2981_v38 }
0x172e   :  { %v2983_v34 = vpop.xlane.xlu0 %2982 }
0x172f   :  { %v2984_v41 = vmul.f32 %v2983_v34, %v4744_v27  ;;  %v3014_v27 = vperm.slane %v4695_v60, 0 }
0x1731   :  { %v2985_v47 = vadd.f32 1e-05, %v2984_v41 }
0x1733   :  { %3727 = vrsqrt.f32 %v2985_v47  ;;  %vm2992_vm15 = vweird.f32 %v2985_v47 }
0x1739   :  { %v3728_v32 = vpop.eup %3727 }
0x173a   :  { %v2987_v18 = vmul.f32 %v3728_v32, %v2985_v47  ;;  %vm2993_vm14 = vweird.f32 %v3728_v32 }
0x173b   :  { %vm2994_vm9 = vmor %vm2992_vm15, %vm2993_vm14 }
0x173c   :  { %v2988_v43 = vmul.f32 %v3728_v32, %v2987_v18 }
0x173e   :  { %v2989_v44 = vmul.f32 0.5, %v2988_v43 }
0x1740   :  { %v2990_v49 = vsub.f32 1.5, %v2989_v44 }
0x1742   :  { %v2991_v46 = vmul.f32 %v3728_v32, %v2990_v49 }
0x1744   :  { %v2995_v48 = vsel %vm2994_vm9, %v3728_v32, %v2991_v46 }
0x1745   :  { %v2996_v39 = vmul.f32 %v2995_v48, %v2967_v30  ;;  %v2997_v33 = vmul.f32 %v2995_v48, %v2968_v61  ;;  %v2998_v20 = vmul.f32 %v2995_v48, %v2969_v57  ;;  %v2999_v15 = vmul.f32 %v2995_v48, %v2970_v31 }
0x1747   :  { %v3009_v53 = vmul.f32 %v3001_v19, %v2996_v39  ;;  %v3010_v35 = vmul.f32 %v3002_v45, %v2997_v33  ;;  %v3011_v0 = vmul.f32 %v3003_v55, %v2998_v20  ;;  %v3012_v1 = vmul.f32 %v3004_v14, %v2999_v15 }
0x1749   :  { %v4886_v16 = vadd.f32 %v3014_v27, %v3009_v53  ;;  %v4888_v50 = vadd.f32 %v3015_v36, %v3010_v35  ;;  %v4890_v21 = vadd.f32 %v3016_v52, %v3011_v0  ;;  %v4892_v42 = vadd.f32 %v3017_v56, %v3012_v1 }
0x174b   :  { %v4895_v22 = vmul.f32 0.70710677, %v4886_v16  ;;  %v4898_v60 = vmul.f32 0.70710677, %v4888_v50  ;;  %v4901_v2 = vmul.f32 0.70710677, %v4890_v21 }
0x174c   :  { %v4904_v4 = vmul.f32 0.70710677, %v4892_v42 }
0x174d   :  { %v4907_v5 = vand.u32 2147483647, %v4895_v22  ;;  %v4910_v23 = vand.u32 2147483647, %v4898_v60  ;;  %v4913_v6 = vand.u32 2147483647, %v4901_v2 }
0x174e   :  { %v4916_v8 = vand.u32 2147483647, %v4904_v4 }
0x174f   :  { %v3046_v9 = vmul.f32 0.3275911, %v4907_v5  ;;  %v3047_v10 = vmul.f32 0.3275911, %v4910_v23  ;;  %v3048_v7 = vmul.f32 0.3275911, %v4913_v6 }
0x1750   :  { %v3049_v63 = vmul.f32 0.3275911, %v4916_v8  ;;  %v3150_v3 = vsub.f32 0.0, %v4907_v5  ;;  %v3151_v37 = vsub.f32 0.0, %v4910_v23 }
0x1751   :  { %v3050_v12 = vadd.f32 1.0, %v3046_v9  ;;  %v3051_v24 = vadd.f32 1.0, %v3047_v10  ;;  %v3052_v25 = vadd.f32 1.0, %v3048_v7  ;;  %v3152_v7 = vsub.f32 0.0, %v4913_v6 }
0x1752   :  { %v4922_v26 = vadd.f32 1.0, %v3049_v63 }
0x1753   :  { %3729 = vrcp.f32 %v3050_v12  ;;  %v3063_v29 = vand.u32 2147483647, %v3050_v12  ;;  %v3065_v61 = vand.u32 2147483648, %v3050_v12  ;;  %v3078_v57 = vand.u32 2147483647, %v3051_v24 }
0x1754   :  { %3731 = vrcp.f32 %v3051_v24  ;;  %vm3059_vm1 = vweird.f32 %v3050_v12  ;;  %vm3074_vm2 = vweird.f32 %v3051_v24  ;;  %v3080_v13 = vand.u32 2147483648, %v3051_v24 }
0x1755   :  { %3733 = vrcp.f32 %v3052_v25  ;;  %vm4927_vm3 = vcmp.eq.f32.partialorder %v3063_v29, 8.507059e+37  ;;  %vm3089_vm4 = vweird.f32 %v3052_v25  ;;  %v3066_v38 = vor.u32 1.1754944e-38, %v3065_v61 }
0x1756   :  { %3735 = vrcp.f32 %v4922_v26  ;;  %vm4931_vm0 = vcmp.eq.f32.partialorder %v3078_v57, 8.507059e+37  ;;  %v3093_v47 = vand.u32 2147483647, %v3052_v25  ;;  %v3081_v49 = vor.u32 1.1754944e-38, %v3080_v13 }
0x1757   :  { %v3095_v19 = vand.u32 2147483648, %v3052_v25  ;;  %vm3104_vm11 = vweird.f32 %v4922_v26  ;;  %v3108_v27 = vand.u32 2147483647, %v4922_v26  ;;  %v3110_v36 = vand.u32 2147483648, %v4922_v26 }
0x1758   :  { %vm3094_vm14 = vcmp.eq.f32.partialorder %v3093_v47, 8.507059e+37  ;;  %v3154_v61 = vmul.f32 %v3150_v3, %v4907_v5 }
0x1759   :  { %v3730_v30 = vpop.eup %3729  ;;  %v3096_v20 = vor.u32 1.1754944e-38, %v3095_v19  ;;  %v3111_v9 = vor.u32 1.1754944e-38, %v3110_v36  ;;  %vm3109_vm9 = vcmp.eq.f32.partialorder %v3108_v27, 8.507059e+37 }
0x175a   :  { %v3732_v31 = vpop.eup %3731  ;;  %v3055_v58 = vmul.f32 %v3730_v30, %v3050_v12  ;;  %vm3060_vm5 = vweird.f32 %v3730_v30 }
0x175b   :  { %v3734_v54 = vpop.eup %3733  ;;  %v3070_v11 = vmul.f32 %v3732_v31, %v3051_v24  ;;  %vm3075_vm6 = vweird.f32 %v3732_v31  ;;  %vm3061_vm10 = vmor %vm3059_vm1, %vm3060_vm5  ;;  %vm3034_vm1 = vcmp.lt.f32.partialorder %v4895_v22, 0.0 }
0x175c   :  { %v3056_v17 = vsub.f32 1.0, %v3055_v58  ;;  %v3085_v28 = vmul.f32 %v3734_v54, %v3052_v25  ;;  %v3736_v40 = vpop.eup %3735  ;;  %vm3090_vm7 = vweird.f32 %v3734_v54  ;;  %vm3076_vm8 = vmor %vm3074_vm2, %vm3075_vm6  ;;  %vm3035_vm2 = vcmp.lt.f32.partialorder %v4898_v60, 0.0 }
0x175d   :  { %v3071_v34 = vsub.f32 1.0, %v3070_v11  ;;  %v3100_v43 = vmul.f32 %v3736_v40, %v4922_v26  ;;  %vm3105_vm12 = vweird.f32 %v3736_v40  ;;  %vm3091_vm13 = vmor %vm3089_vm4, %vm3090_vm7  ;;  %v3155_v26 = vmul.f32 %v3151_v37, %v4910_v23 }
0x175e   :  { %v3057_v32 = vmul.f32 %v3730_v30, %v3056_v17  ;;  %v3086_v18 = vsub.f32 1.0, %v3085_v28  ;;  %vm3106_vm15 = vmor %vm3104_vm11, %vm3105_vm12  ;;  %v3156_v11 = vmul.f32 %v3152_v7, %v4913_v6  ;;  %vm3037_vm4 = vcmp.lt.f32.partialorder %v4904_v4, 0.0 }
0x175f   :  { %v3072_v44 = vmul.f32 %v3732_v31, %v3071_v34  ;;  %v3101_v55 = vsub.f32 1.0, %v3100_v43  ;;  %v3039_v22 = vsel %vm3035_vm2, -1.0, %v5044_v59  ;;  %v3041_v4 = vsel %vm3037_vm4, -1.0, %v5044_v59 }
0x1760   :  { %v3058_v46 = vadd.f32 %v3730_v30, %v3057_v32  ;;  %v3087_v45 = vmul.f32 %v3734_v54, %v3086_v18  ;;  %v3160_v32 = vmul.f32 1.442695, %v3155_v26  ;;  %v3162_v3 = vmul.f32 1.442695, %v3156_v11 }
0x1761   :  { %v3073_v14 = vadd.f32 %v3732_v31, %v3072_v44  ;;  %v3102_v48 = vmul.f32 %v3736_v40, %v3101_v55  ;;  %v3028_v26 = vmul.f32 0.5, %v4890_v21 }
0x1762   :  { %v3062_v52 = vsel %vm3061_vm10, %v3730_v30, %v3058_v46  ;;  %v3088_v56 = vadd.f32 %v3734_v54, %v3087_v45  ;;  %v3153_v30 = vsub.f32 0.0, %v4916_v8 }
0x1763   :  { %v3067_v39 = vsel %vm4927_vm3, %v3066_v38, %v3062_v52  ;;  %v3077_v33 = vsel %vm3076_vm8, %v3732_v31, %v3073_v14  ;;  %v3103_v35 = vadd.f32 %v3736_v40, %v3102_v48  ;;  %v3158_v38 = vmul.f32 1.442695, %v3154_v61 }
0x1764   :  { %v3082_v15 = vsel %vm4931_vm0, %v3081_v49, %v3077_v33  ;;  %v3092_v53 = vsel %vm3091_vm13, %v3734_v54, %v3088_v56  ;;  %v3114_v0 = vmul.f32 1.0614054, %v3067_v39  ;;  %vm3036_vm3 = vcmp.lt.f32.partialorder %v4901_v2, 0.0 }
0x1765   :  { %v3097_v1 = vsel %vm3094_vm14, %v3096_v20, %v3092_v53  ;;  %v3115_v10 = vmul.f32 1.0614054, %v3082_v15  ;;  %v3107_v63 = vsel %vm3106_vm15, %v3736_v40, %v3103_v35  ;;  %v3157_v40 = vmul.f32 %v3153_v30, %v4916_v8 }
0x1766   :  { %v3116_v12 = vmul.f32 1.0614054, %v3097_v1  ;;  %v3118_v24 = vadd.f32 -1.4531521, %v3114_v0  ;;  %v3112_v25 = vsel %vm3109_vm9, %v3111_v9, %v3107_v63  ;;  %3737 = vpow2.f32 %v3158_v38 }
0x1767   :  { %v3119_v29 = vadd.f32 -1.4531521, %v3115_v10  ;;  %v3117_v57 = vmul.f32 1.0614054, %v3112_v25  ;;  %v3164_v37 = vmul.f32 1.442695, %v3157_v40  ;;  %3739 = vpow2.f32 %v3160_v32 }
0x1768   :  { %v3120_v31 = vadd.f32 -1.4531521, %v3116_v12  ;;  %v3122_v58 = vmul.f32 %v3118_v24, %v3067_v39  ;;  %3741 = vpow2.f32 %v3162_v3  ;;  %v3040_v30 = vsel %vm3036_vm3, -1.0, %v5044_v59 }
0x1769   :  { %v3123_v54 = vmul.f32 %v3119_v29, %v3082_v15  ;;  %v3121_v13 = vadd.f32 -1.4531521, %v3117_v57  ;;  %3743 = vpow2.f32 %v3164_v37  ;;  %v3026_v61 = vmul.f32 0.5, %v4886_v16 }
0x176a   :  { %v3124_v17 = vmul.f32 %v3120_v31, %v3097_v1  ;;  %v3126_v51 = vadd.f32 1.4214138, %v3122_v58  ;;  %v3027_v31 = vmul.f32 0.5, %v4888_v50 }
0x176b   :  { %v3127_v28 = vadd.f32 1.4214138, %v3123_v54  ;;  %v3125_v34 = vmul.f32 %v3121_v13, %v3112_v25 }
0x176c   :  { %v3128_v41 = vadd.f32 1.4214138, %v3124_v17  ;;  %v3130_v47 = vmul.f32 %v3126_v51, %v3067_v39  ;;  %v3738_v56 = vpop.eup %3737  ;;  %v3029_v51 = vmul.f32 0.5, %v4892_v42 }
0x176d   :  { %v3131_v5 = vmul.f32 %v3127_v28, %v3082_v15  ;;  %v3129_v18 = vadd.f32 1.4214138, %v3125_v34  ;;  %v3740_v33 = vpop.eup %3739 }
0x176e   :  { %v3132_v43 = vmul.f32 %v3128_v41, %v3097_v1  ;;  %v3134_v44 = vadd.f32 -0.28449672, %v3130_v47  ;;  %v3742_v0 = vpop.eup %3741 }
0x176f   :  { %v3135_v23 = vadd.f32 -0.28449672, %v3131_v5  ;;  %v3133_v6 = vmul.f32 %v3129_v18, %v3112_v25  ;;  %v3744_v12 = vpop.eup %3743 }
0x1770   :  { %v3136_v49 = vadd.f32 -0.28449672, %v3132_v43  ;;  %v3138_v19 = vmul.f32 %v3134_v44, %v3067_v39 }
0x1771   :  { %v3139_v46 = vmul.f32 %v3135_v23, %v3082_v15  ;;  %v3137_v8 = vadd.f32 -0.28449672, %v3133_v6 }
0x1772   :  { %v3140_v45 = vmul.f32 %v3136_v49, %v3097_v1  ;;  %v3142_v55 = vadd.f32 0.2548296, %v3138_v19 }
0x1773   :  { %v3143_v14 = vadd.f32 0.2548296, %v3139_v46  ;;  %v3141_v27 = vmul.f32 %v3137_v8, %v3112_v25 }
0x1774   :  { %v3144_v36 = vadd.f32 0.2548296, %v3140_v45  ;;  %v3146_v52 = vmul.f32 %v3142_v55, %v3067_v39  ;;  %v3038_v39 = vsel %vm3034_vm1, -1.0, %v5044_v59 }
0x1775   :  { %v3147_v48 = vmul.f32 %v3143_v14, %v3082_v15  ;;  %v3145_v20 = vadd.f32 0.2548296, %v3141_v27 }
0x1776   :  { %v3148_v53 = vmul.f32 %v3144_v36, %v3097_v1  ;;  %v3166_v35 = vmul.f32 %v3738_v56, %v3146_v52 }
0x1777   :  { %v3167_v9 = vmul.f32 %v3740_v33, %v3147_v48  ;;  %v3149_v10 = vmul.f32 %v3145_v20, %v3112_v25 }
0x1778   :  { %v3168_v7 = vmul.f32 %v3742_v0, %v3148_v53  ;;  %v3170_v63 = vsub.f32 1.0, %v3166_v35 }
0x1779   :  { %v3171_v15 = vsub.f32 1.0, %v3167_v9  ;;  %v3169_v24 = vmul.f32 %v3744_v12, %v3149_v10 }
0x177a   :  { %v3172_v1 = vsub.f32 1.0, %v3168_v7  ;;  %v3174_v29 = vmul.f32 %v3170_v63, %v3038_v39 }
0x177b   :  { %v3175_v60 = vmul.f32 %v3171_v15, %v3039_v22  ;;  %v3173_v2 = vsub.f32 1.0, %v3169_v24 }
0x177c   :  { %v3176_v25 = vmul.f32 %v3172_v1, %v3040_v30  ;;  %v3178_v57 = vadd.f32 1.0, %v3174_v29 }
0x177d   :  { %v3179_v58 = vadd.f32 1.0, %v3175_v60  ;;  %v3177_v54 = vmul.f32 %v3173_v2, %v3041_v4 }
0x177e   :  { %v3180_v11 = vadd.f32 1.0, %v3176_v25  ;;  %v4965_v13 = vmul.f32 %v3178_v57, %v3026_v61 }
0x177f   :  { %v4967_v17 = vmul.f32 %v3179_v58, %v3027_v31  ;;  %v3181_v28 = vadd.f32 1.0, %v3177_v54 }
0x1780   :  { %v4970_v16 = vmul.f32 %v3180_v11, %v3028_v26 }
0x1781   :  { %v4972_v40 = vmul.f32 %v3181_v28, %v3029_v51 }
0x1782   :  { %3821 = dma.done.wait [#allocation5 + $0x2], 8192 }
0x1783   :  { %3822 = vsyncadd [#allocation5 + $0x2], 4294959104  ;;  %v3204_v50 = vld [vmem:[#allocation4 + $0x78] sm:$0xff]  ;;  %v3203_v59 = vld [vmem:[#allocation4 + $0x70] sm:$0xff]  ;;  %s3877_s24 = smov [#allocation6]   ;;  %s3344_s9 = sshll.u32 %s4116_s6, 4  ;;  %s3345_s9 = int_to_ptr.hbm [resolvable:$true] %s3344_s9 }
0x1784   :  { %v3220_v38 = vld [vmem:[#allocation4 + $0xf8] sm:$0xff]  ;;  %3256 = vmatpush.msra.mxu2 %v3204_v50  ;;  %v3219_v21 = vld [vmem:[#allocation4 + $0xf0] sm:$0xff]  ;;  %v3202_v34 = vld [vmem:[#allocation4 + $0x68] sm:$0xff]  ;;  %s3342_s30 = sshll.u32 %s3877_s24, 4  ;;  %s3805_s12 = sshra.s32 %s3345_s9, 4  ;;  %s3343_s30 = int_to_ptr.vmem [resolvable:$true] %s3342_s30  ;;  %s3806_s12 = int_to_ptr.hbm [resolvable:$true] %s3805_s12 }
0x1785   :  { %3276 = vmatpush.msra.mxu3 %v3220_v38  ;;  %v3218_v41 = vld [vmem:[#allocation4 + $0xe8] sm:$0xff]  ;;  %v3236_v47 = vld [vmem:[#allocation4 + $0x178] sm:$0xff]  ;;  %v3201_v32 = vld [vmem:[#allocation4 + $0x60] sm:$0xff]  ;;  %s3807_s20 = scalar_lea.hbm %s3806_s12, 2  ;;  %s3809_s15 = scalar_lea.hbm %s4116_s6, 2 }
0x1786   :  { %3257 = vmatpush.msra.mxu2 %v3203_v59  ;;  %v3217_v42 = vld [vmem:[#allocation4 + $0xe0] sm:$0xff]  ;;  %3296 = vmatpush.msra.mxu0 %v3236_v47  ;;  %v3235_v5 = vld [vmem:[#allocation4 + $0x170] sm:$0xff]  ;;  %v3200_v3 = vld [vmem:[#allocation4 + $0x58] sm:$0xff]  ;;  %p3808_p10 = scmp.ne.s32.totalorder %s3806_s12, %s3807_s20  ;;  %p3810_p11 = scmp.lt.s32.totalorder %s3806_s12, %s4116_s6 }
0x1787   :  { %3277 = vmatpush.msra.mxu3 %v3219_v21  ;;  %v3252_v18 = vld [vmem:[#allocation4 + $0x1f8] sm:$0xff]  ;;  %v3234_v44 = vld [vmem:[#allocation4 + $0x168] sm:$0xff]  ;;  %v3251_v23 = vld [vmem:[#allocation4 + $0x1f0] sm:$0xff]  ;;  %p3811_p12 = scmp.lt.s32.totalorder %s3809_s15, %s3807_s20 }
0x1788   :  { %3258 = vmatpush.msra.mxu2 %v3202_v34  ;;  %v3216_v43 = vld [vmem:[#allocation4 + $0xd8] sm:$0xff]  ;;  %3297 = vmatpush.msra.mxu0 %v3235_v5  ;;  %v3233_v37 = vld [vmem:[#allocation4 + $0x160] sm:$0xff]  ;;  %v3250_v6 = vld [vmem:[#allocation4 + $0x1e8] sm:$0xff] }
0x1789   :  { %3278 = vmatpush.msra.mxu3 %v3218_v41  ;;  %3316 = vmatpush.msrb.mxu1 %v3252_v18  ;;  %v3199_v49 = vld [vmem:[#allocation4 + $0x50] sm:$0xff]  ;;  %v3232_v46 = vld [vmem:[#allocation4 + $0x158] sm:$0xff]  ;;  %v3249_v8 = vld [vmem:[#allocation4 + $0x1e0] sm:$0xff]  ;;  %v3254_v41 = vperm.slane %v4698_v62, 0  ;;  %p3812_p13 = por %p3811_p12, %p3810_p11 }
0x178a   :  { %3259 = vmatpush.msra.mxu2 %v3201_v32  ;;  %v3215_v19 = vld [vmem:[#allocation4 + $0xd0] sm:$0xff]  ;;  %3298 = vmatpush.msra.mxu0 %v3234_v44  ;;  %v3198_v45 = vld [vmem:[#allocation4 + $0x48] sm:$0xff]  ;;  %v3248_v27 = vld [vmem:[#allocation4 + $0x1d8] sm:$0xff] }
0x178b   :  { %3279 = vmatpush.msra.mxu3 %v3217_v42  ;;  %3317 = vmatpush.msrb.mxu1 %v3251_v23  ;;  %v3214_v55 = vld [vmem:[#allocation4 + $0xc8] sm:$0xff]  ;;  %v3231_v14 = vld [vmem:[#allocation4 + $0x150] sm:$0xff]  ;;  %v3197_v36 = vld [vmem:[#allocation4 + $0x40] sm:$0xff]  ;;  %p3813_p0 = pnand %p3812_p13, %p3808_p10 }
0x178c   :  { %3260 = vmatpush.msra.mxu2 %v3200_v3  ;;  %3299 = vmatpush.msra.mxu0 %v3233_v37  ;;  %v3213_v52 = vld [vmem:[#allocation4 + $0xc0] sm:$0xff]  ;;  %v3230_v56 = vld [vmem:[#allocation4 + $0x148] sm:$0xff]  ;;  %v3247_v48 = vld [vmem:[#allocation4 + $0x1d0] sm:$0xff] }
0x178d   :  { %3280 = vmatpush.msra.mxu3 %v3216_v43  ;;  %3318 = vmatpush.msrb.mxu1 %v3250_v6  ;;  %v3196_v33 = vld [vmem:[#allocation4 + $0x38] sm:$0xff]  ;;  %v3229_v53 = vld [vmem:[#allocation4 + $0x140] sm:$0xff]  ;;  %v3246_v35 = vld [vmem:[#allocation4 + $0x1c8] sm:$0xff] }
0x178e   :  { %3261 = vmatpush.msra.mxu2 %v3199_v49  ;;  %3300 = vmatpush.msra.mxu0 %v3232_v46  ;;  %v3212_v20 = vld [vmem:[#allocation4 + $0xb8] sm:$0xff]  ;;  %v3195_v0 = vld [vmem:[#allocation4 + $0x30] sm:$0xff]  ;;  %v3245_v7 = vld [vmem:[#allocation4 + $0x1c0] sm:$0xff] }
0x178f   :  { %3281 = vmatpush.msra.mxu3 %v3215_v19  ;;  %3319 = vmatpush.msrb.mxu1 %v3249_v8  ;;  %v3211_v9 = vld [vmem:[#allocation4 + $0xb0] sm:$0xff]  ;;  %v3228_v10 = vld [vmem:[#allocation4 + $0x138] sm:$0xff]  ;;  %v3194_v63 = vld [vmem:[#allocation4 + $0x28] sm:$0xff] }
0x1790   :  { %3262 = vmatpush.msra.mxu2 %v3198_v45  ;;  %3301 = vmatpush.msra.mxu0 %v3231_v14  ;;  %v3210_v12 = vld [vmem:[#allocation4 + $0xa8] sm:$0xff]  ;;  %v3227_v39 = vld [vmem:[#allocation4 + $0x130] sm:$0xff]  ;;  %v3244_v15 = vld [vmem:[#allocation4 + $0x1b8] sm:$0xff] }
0x1791   :  { %3282 = vmatpush.msra.mxu3 %v3214_v55  ;;  %3320 = vmatpush.msrb.mxu1 %v3248_v27  ;;  %v3193_v22 = vld [vmem:[#allocation4 + $0x20] sm:$0xff]  ;;  %v3226_v1 = vld [vmem:[#allocation4 + $0x128] sm:$0xff]  ;;  %v3243_v29 = vld [vmem:[#allocation4 + $0x1b0] sm:$0xff] }
0x1792   :  { %3263 = vmatpush.msra.mxu2 %v3197_v36  ;;  %3302 = vmatpush.msra.mxu0 %v3230_v56  ;;  %v3209_v24 = vld [vmem:[#allocation4 + $0xa0] sm:$0xff]  ;;  %v3192_v30 = vld [vmem:[#allocation4 + $0x18] sm:$0xff]  ;;  %v3242_v2 = vld [vmem:[#allocation4 + $0x1a8] sm:$0xff] }
0x1793   :  { %3283 = vmatpush.msra.mxu3 %v3213_v52  ;;  %3321 = vmatpush.msrb.mxu1 %v3247_v48  ;;  %v3208_v60 = vld [vmem:[#allocation4 + $0x98] sm:$0xff]  ;;  %v3225_v61 = vld [vmem:[#allocation4 + $0x120] sm:$0xff]  ;;  %v3191_v25 = vld [vmem:[#allocation4 + $0x10] sm:$0xff] }
0x1794   :  { %3264 = vmatpush.msra.mxu2 %v3196_v33  ;;  %3303 = vmatpush.msra.mxu0 %v3229_v53  ;;  %v3207_v57 = vld [vmem:[#allocation4 + $0x90] sm:$0xff]  ;;  %v3224_v31 = vld [vmem:[#allocation4 + $0x118] sm:$0xff]  ;;  %v3241_v4 = vld [vmem:[#allocation4 + $0x1a0] sm:$0xff] }
0x1795   :  { %3284 = vmatpush.msra.mxu3 %v3212_v20  ;;  %3322 = vmatpush.msrb.mxu1 %v3246_v35  ;;  %v3190_v58 = vld [vmem:[#allocation4 + $0x8] sm:$0xff]  ;;  %v3223_v54 = vld [vmem:[#allocation4 + $0x110] sm:$0xff]  ;;  %v3240_v11 = vld [vmem:[#allocation4 + $0x198] sm:$0xff] }
0x1796   :  { %3265 = vmatpush.msra.mxu2 %v3195_v0  ;;  %3304 = vmatpush.msra.mxu0 %v3228_v10  ;;  %v3206_v26 = vld [vmem:[#allocation4 + $0x88] sm:$0xff]  ;;  %v3189_v51 = vld [vmem:[#allocation4] sm:$0xff]  ;;  %v3239_v59 = vld [vmem:[#allocation4 + $0x190] sm:$0xff] }
0x1797   :  { %3285 = vmatpush.msra.mxu3 %v3211_v9  ;;  %3323 = vmatpush.msrb.mxu1 %v3245_v7  ;;  %v3205_v28 = vld [vmem:[#allocation4 + $0x80] sm:$0xff]  ;;  %v3222_v50 = vld [vmem:[#allocation4 + $0x108] sm:$0xff] }
0x1798   :  { %3266 = vmatpush.msra.mxu2 %v3194_v63  ;;  %3305 = vmatpush.msra.mxu0 %v3227_v39  ;;  %v3221_v38 = vld [vmem:[#allocation4 + $0x100] sm:$0xff]  ;;  %v3238_v21 = vld [vmem:[#allocation4 + $0x188] sm:$0xff] }
0x1799   :  { %3286 = vmatpush.msra.mxu3 %v3210_v12  ;;  %3324 = vmatpush.msrb.mxu1 %v3244_v15  ;;  %v3237_v34 = vld [vmem:[#allocation4 + $0x180] sm:$0xff] }
0x179a   :  { %3267 = vmatpush.msra.mxu2 %v3193_v22  ;;  %3306 = vmatpush.msra.mxu0 %v3226_v1 }
0x179b   :  { %3287 = vmatpush.msra.mxu3 %v3209_v24  ;;  %3325 = vmatpush.msrb.mxu1 %v3243_v29 }
0x179c   :  { %3268 = vmatpush.msra.mxu2 %v3192_v30  ;;  %3307 = vmatpush.msra.mxu0 %v3225_v61 }
0x179d   :  { %3288 = vmatpush.msra.mxu3 %v3208_v60  ;;  %3326 = vmatpush.msrb.mxu1 %v3242_v2 }
0x179e   :  { %3269 = vmatpush.msra.mxu2 %v3191_v25  ;;  %3308 = vmatpush.msra.mxu0 %v3224_v31 }
0x179f   :  { %3289 = vmatpush.msra.mxu3 %v3207_v57  ;;  %3327 = vmatpush.msrb.mxu1 %v3241_v4 }
0x17a0   :  { %3270 = vmatpush.msra.mxu2 %v3190_v58  ;;  %3309 = vmatpush.msra.mxu0 %v3223_v54 }
0x17a1   :  { %3290 = vmatpush.msra.mxu3 %v3206_v26  ;;  %3328 = vmatpush.msrb.mxu1 %v3240_v11 }
0x17a2   :  { %3271 = vmatpush.msra.mxu2 %v3189_v51  ;;  %3310 = vmatpush.msra.mxu0 %v3222_v50 }
0x17a3   :  { %3291 = vmatpush.msra.mxu3 %v3205_v28  ;;  %3272 = vmatmul.f32.vlgmr.msra.gmra.mxu2 %v4965_v13 }
0x17a4   :  { %3292 = vmatmul.f32.vlgmr.msra.gmra.mxu3 %v4967_v17  ;;  %3329 = vmatpush.msrb.mxu1 %v3239_v59 }
0x17a5   :  { %3311 = vmatpush.msra.mxu0 %v3221_v38 }
0x17a6   :  { %3330 = vmatpush.msrb.mxu1 %v3238_v21  ;;  %3312 = vmatmul.f32.vlgmr.msra.gmra.mxu0 %v4970_v16 }
0x17a8   :  { %3331 = vmatpush.msrb.mxu1 %v3237_v34 }
0x17a9   :  { %3332 = vmatmul.f32.vlgmr.msrb.gmra.mxu1 %v4972_v40 }
0x1823   :  { %v3313_v17 = vpop.f32.mrf.mxu0 }
0x1826   :  { %v3273_v47 = vpop.f32.mrf.mxu2  ;;  %v3333_v5 = vpop.f32.mrf.mxu1 }
0x1827   :  { %v3293_v32 = vpop.f32.mrf.mxu3  ;;  %v3274_v13 = vadd.f32 %v3273_v47, %v3254_v41 }
0x1829   :  { %v3294_v42 = vadd.f32 %v3293_v32, %v3274_v13 }
0x182b   :  { %v3314_v3 = vadd.f32 %v3313_v17, %v3294_v42 }
0x182d   :  { %v3334_v18 = vadd.f32 %v3333_v5, %v3314_v3 }
0x182f   :  { %3336 = vst [vmem:[#allocation6] sm:$0x3] %v3334_v18 }
0x1830   :  { %3816 = shalt.err (!%p3813_p0)
}
0x1831   :  { %3347 = dma.vmem_to_hbm [thread:$0]  %s3343_s30, 32, %s3345_s9, [#allocation7]  }
0x1832   :  { %3823 = dma.done.wait [#allocation7], 32  }
0x1833   :  { %3824 = vsyncadd [#allocation7], 4294967264 }
0x1834   :  { %3352 = vsyncpa [#allocation7], 1 }
0x1835   :  { %3353 = vsyncmov [#allocation5] }
0x1838   :  { %s3354_s16 = vpop.sfrf %3353 }
0x1839   :  { %p3551_p1 = scmp.ne.s32.totalorder %s3354_s16, 0 }
0x183b   :  { %3358 = shalt.err (%p3551_p1)  }
0x183c   :  { %3360 = vsyncmov [#allocation5 + $0x1] }
0x183f   :  { %s3361_s18 = vpop.sfrf %3360 }
0x1840   :  { %p3552_p2 = scmp.ne.s32.totalorder %s3361_s18, 0 }
0x1842   :  { %3365 = shalt.err (%p3552_p2)  }
0x1843   :  { %3367 = vsyncmov [#allocation5 + $0x2] }
0x1846   :  { %s3368_s22 = vpop.sfrf %3367 }
0x1847   :  { %p3553_p3 = scmp.ne.s32.totalorder %s3368_s22, 0 }
0x1849   :  { %3372 = shalt.err (%p3553_p3)  }

</bundles_post_ra>
